<compile_context>
chip_gen: v7x
topology: tpu7x:2x2x1
jax: 0.10.0
libtpu: 0.0.40
codegen_flags: <defaults>
</compile_context>

<pallas_src>
import numpy as np

import jax
import jax.numpy as jnp
from jax import lax
from jax.experimental import pallas as pl
from jax.experimental.pallas import tpu as pltpu

VISION_RANGE = 24
DROPOUT = 0  # default; dropout branch is a no-op when 0


# ---------------------------------------------------------------------------
# Fused kernel: conv1 + conv2 + conv3 + proj1 + proj2_{x,y,o} + proj3_{x,y,o}
# ---------------------------------------------------------------------------
def _fused_pose_kernel(p_ref, w1l_ref, b1l_ref, w2l_ref, b2_ref,
                       w3f_ref, b3f_ref, wp1_ref, bp1_ref,
                       w2cat_ref, b2cat_ref, w3cat_ref, b3cat_ref,
                       o_ref, h2_scr):
    f32 = jnp.float32
    bf16 = jnp.bfloat16
    B = o_ref.shape[0]
    npos = h2_scr.shape[0] // B            # 16 conv2 output positions (4x4)

    # conv1 (dense "local conv1" over each 10x10x4 crop) + ReLU
    #   (16B, 400) @ (400, 1024) -> (16B, 1024), cols ordered (hl, wl, c1out)
    h1 = jnp.dot(p_ref[...].astype(bf16), w1l_ref[...],
                 preferred_element_type=f32)
    h1 = jnp.maximum(h1 + b1l_ref[...], 0.0)

    # conv2 + ReLU:  (16B, 1024) @ (1024, 32) -> (16B, 32)
    h2 = jnp.dot(h1.astype(bf16), w2l_ref[...], preferred_element_type=f32)
    h2_scr[...] = jnp.maximum(h2 + b2_ref[...], 0.0)

    # conv3 + ReLU as a dense (512, 64) matrix over the (oh2, ow2, c2)-ordered
    # conv2 feature map; the 16 spatial positions live in the row dim of h2, so
    # de-interleave them with 16 accumulated (B,32)@(32,64) matmuls.
    acc = jnp.zeros((B, 64), f32)
    for p in range(npos):
        lhs = h2_scr[p * B:(p + 1) * B, :].astype(bf16)     # (B, 32)
        rhs = w3f_ref[p * 32:(p + 1) * 32, :]               # (32, 64)
        acc = acc + jnp.dot(lhs, rhs, preferred_element_type=f32)
    h3 = jnp.maximum(acc + b3f_ref[...], 0.0)               # (B, 64) NCHW-flat

    # proj1 + ReLU
    h4 = jnp.dot(h3.astype(bf16), wp1_ref[...], preferred_element_type=f32)
    h4 = jnp.maximum(h4 + bp1_ref[...], 0.0)                # (B, 1024)

    # proj2_x / proj2_y / proj2_o packed into one lane-dense matmul + ReLU
    h5 = jnp.dot(h4.astype(bf16), w2cat_ref[...], preferred_element_type=f32)
    h5 = jnp.maximum(h5 + b2cat_ref[...], 0.0)              # (B, 384)

    # proj3 heads as a (384, 128) zero-padded block-diagonal; cols 0..2 valid.
    out = jnp.dot(h5.astype(bf16), w3cat_ref[...], preferred_element_type=f32)
    o_ref[...] = (out + b3cat_ref[...]).astype(o_ref.dtype)  # (B, 128)


def fused_forward(packed, x):
    """x: (B, 4, 24, 24) NCHW float32 -> (B, 3) pose prediction."""
    B = x.shape[0]
    x_nhwc = jnp.transpose(x, (0, 2, 3, 1))                  # (B, 24, 24, 4)
    # Single im2col at the conv2 receptive-field granularity: each conv2
    # output position (4x4 grid) sees a 10x10x4 crop; feature order (ci, r, s).
    pat = lax.conv_general_dilated_patches(
        x_nhwc, (10, 10), (4, 4), "VALID",
        dimension_numbers=("NHWC", "HWIO", "NHWC"))          # (B, 4, 4, 400)
    # Rows ordered position-major, batch-minor: row = (oh*4 + ow)*B + b.
    pmat = jnp.transpose(pat, (1, 2, 0, 3)).reshape(16 * B, 400)

    args = (pmat,
            packed["w1l"], packed["b1l"], packed["w2l"], packed["b2"],
            packed["w3f"], packed["b3f"], packed["wp1"], packed["bp1"],
            packed["w2cat"], packed["b2cat"], packed["w3cat"], packed["b3cat"])

    out128 = pl.pallas_call(
        _fused_pose_kernel,
        out_shape=jax.ShapeDtypeStruct((B, 128), jnp.float32),
        grid=(1,),
        in_specs=[pl.BlockSpec(a.shape, lambda i: (0, 0)) for a in args],
        out_specs=pl.BlockSpec((B, 128), lambda i: (0, 0)),
        scratch_shapes=[pltpu.VMEM((16 * B, 32), jnp.float32)],
        compiler_params=pltpu.CompilerParams(
            dimension_semantics=("arbitrary",),
            vmem_limit_bytes=32 * 1024 * 1024),
    )(*args)
    return out128[:, :3]                                     # (dx, dy, do)


# ---------------------------------------------------------------------------
# Parameter init (deterministic, synthetic) -- PyTorch-style shapes
# ---------------------------------------------------------------------------
def init_params(key):
    def nrm(k, shape, fan_in):
        return jax.random.normal(k, shape, jnp.float32) / jnp.sqrt(fan_in)

    ks = jax.random.split(key, 20)
    conv_out_size = 16 * 2 * 2                     # vision_range=24 -> 64
    return {
        "c1_w": nrm(ks[0], (64, 4, 4, 4), 4 * 4 * 4),
        "c1_b": nrm(ks[1], (64,), 64.0),
        "c2_w": nrm(ks[2], (32, 64, 4, 4), 64 * 4 * 4),
        "c2_b": nrm(ks[3], (32,), 32.0),
        "c3_w": nrm(ks[4], (16, 32, 3, 3), 32 * 3 * 3),
        "c3_b": nrm(ks[5], (16,), 16.0),
        "p1_w": nrm(ks[6], (conv_out_size, 1024), conv_out_size),
        "p1_b": nrm(ks[7], (1024,), 1024.0),
        "p2x_w": nrm(ks[8], (1024, 128), 1024),
        "p2x_b": nrm(ks[9], (128,), 128.0),
        "p2y_w": nrm(ks[10], (1024, 128), 1024),
        "p2y_b": nrm(ks[11], (128,), 128.0),
        "p2o_w": nrm(ks[12], (1024, 128), 1024),
        "p2o_b": nrm(ks[13], (128,), 128.0),
        "p3x_w": nrm(ks[14], (128, 1), 128),
        "p3x_b": nrm(ks[15], (1,), 1.0),
        "p3y_w": nrm(ks[16], (128, 1), 128),
        "p3y_b": nrm(ks[17], (1,), 1.0),
        "p3o_w": nrm(ks[18], (128, 1), 128),
        "p3o_b": nrm(ks[19], (1,), 1.0),
    }


# ---------------------------------------------------------------------------
# One-time weight packing (pure numpy, outside the hot path)
# ---------------------------------------------------------------------------
def pack_params(params):
    f32 = np.float32
    c1 = np.asarray(params["c1_w"], f32)   # (64, 4, 4, 4)  OIHW
    c1b = np.asarray(params["c1_b"], f32)
    c2 = np.asarray(params["c2_w"], f32)   # (32, 64, 4, 4)
    c2b = np.asarray(params["c2_b"], f32)
    c3 = np.asarray(params["c3_w"], f32)   # (16, 32, 3, 3)
    c3b = np.asarray(params["c3_b"], f32)

    # W1L: dense "local conv1": 10x10x4 crop (feature order ci, r, s) ->
    # 4x4x64 local map (feature order hl, wl, c1out).
    w1l = np.zeros((400, 1024), f32)
    b1l = np.zeros((1024,), f32)
    for hl in range(4):
        for wl in range(4):
            col0 = (hl * 4 + wl) * 64
            b1l[col0:col0 + 64] = c1b
            for kh in range(4):
                for kw in range(4):
                    r, s = 2 * hl + kh, 2 * wl + kw
                    rows = np.arange(4) * 100 + r * 10 + s       # ci = 0..3
                    w1l[rows, col0:col0 + 64] = c1[:, :, kh, kw].T

    # W2L: conv2 with K ordered (hl, wl, ci) to match W1L's output order.
    w2l = np.zeros((1024, 32), f32)
    for hl in range(4):
        for wl in range(4):
            k0 = (hl * 4 + wl) * 64
            w2l[k0:k0 + 64, :] = c2[:, :, hl, wl].T              # (64 ci, 32)

    # W3F: dense conv3 over the (oh2, ow2, c2)-ordered 4x4x32 conv2 map;
    # output columns ordered as torch's NCHW flatten (c3, oh3, ow3).
    w3f = np.zeros((512, 64), f32)
    b3f = np.zeros((64,), f32)
    for c3o in range(16):
        for oh3 in range(2):
            for ow3 in range(2):
                n = c3o * 4 + oh3 * 2 + ow3
                b3f[n] = c3b[c3o]
                for kh in range(3):
                    for kw in range(3):
                        oh2, ow2 = oh3 + kh, ow3 + kw
                        r0 = (oh2 * 4 + ow2) * 32
                        w3f[r0:r0 + 32, n] = c3[c3o, :, kh, kw]

    p1w = np.asarray(params["p1_w"], f32)
    p1b = np.asarray(params["p1_b"], f32)

    # proj2 heads concatenated -> lane-dense 384-wide matmul.
    w2cat = np.concatenate([np.asarray(params["p2x_w"], f32),
                            np.asarray(params["p2y_w"], f32),
                            np.asarray(params["p2o_w"], f32)], axis=1)
    b2cat = np.concatenate([np.asarray(params["p2x_b"], f32),
                            np.asarray(params["p2y_b"], f32),
                            np.asarray(params["p2o_b"], f32)])

    # proj3 heads as block-diagonal (384, 3), zero-padded to 128 lanes.
    w3cat = np.zeros((384, 128), f32)
    w3cat[0:128, 0] = np.asarray(params["p3x_w"], f32)[:, 0]
    w3cat[128:256, 1] = np.asarray(params["p3y_w"], f32)[:, 0]
    w3cat[256:384, 2] = np.asarray(params["p3o_w"], f32)[:, 0]
    b3cat = np.zeros((128,), f32)
    b3cat[0] = np.asarray(params["p3x_b"], f32)[0]
    b3cat[1] = np.asarray(params["p3y_b"], f32)[0]
    b3cat[2] = np.asarray(params["p3o_b"], f32)[0]
    # Guard: unused output lanes must be exactly zero (out[:, :3] relies on it).
    assert np.all(w3cat[:, 3:] == 0.0) and np.all(b3cat[3:] == 0.0)

    bf16 = jnp.bfloat16
    jf32 = jnp.float32
    return {
        "w1l": jnp.asarray(w1l, bf16),
        "b1l": jnp.asarray(b1l, jf32).reshape(1, 1024),
        "w2l": jnp.asarray(w2l, bf16),
        "b2": jnp.asarray(c2b, jf32).reshape(1, 32),
        "w3f": jnp.asarray(w3f, bf16),
        "b3f": jnp.asarray(b3f, jf32).reshape(1, 64),
        "wp1": jnp.asarray(p1w, bf16),
        "bp1": jnp.asarray(p1b, jf32).reshape(1, 1024),
        "w2cat": jnp.asarray(w2cat, bf16),
        "b2cat": jnp.asarray(b2cat, jf32).reshape(1, 384),
        "w3cat": jnp.asarray(w3cat, bf16),
        "b3cat": jnp.asarray(b3cat, jf32).reshape(1, 128),
    }


# ---------------------------------------------------------------------------
# Pure-JAX references (independent of the packing / fusion).
#   compute_dtype=float32  -> exact PyTorch-semantics reference (loose check)
#   compute_dtype=bfloat16 -> matches the kernel's bf16-input/f32-acc numerics
# ---------------------------------------------------------------------------
def reference_forward(params, x, compute_dtype=jnp.float32):
    def conv(h, w, b, stride):
        o = lax.conv_general_dilated(
            h.astype(compute_dtype), w.astype(compute_dtype),
            window_strides=stride, padding="VALID",
            dimension_numbers=("NCHW", "OIHW", "NCHW"),
            preferred_element_type=jnp.float32,
            precision=lax.Precision.HIGHEST)
        return jnp.maximum(o + b[None, :, None, None], 0.0)

    def lin(a, w, b, relu):
        o = jnp.dot(a.astype(compute_dtype), w.astype(compute_dtype),
                    preferred_element_type=jnp.float32,
                    precision=lax.Precision.HIGHEST) + b
        return jnp.maximum(o, 0.0) if relu else o

    h = conv(x, params["c1_w"], params["c1_b"], (2, 2))
    h = conv(h, params["c2_w"], params["c2_b"], (2, 2))
    h = conv(h, params["c3_w"], params["c3_b"], (1, 1))
    flat = h.reshape(x.shape[0], -1)
    proj1 = lin(flat, params["p1_w"], params["p1_b"], True)
    dx = lin(lin(proj1, params["p2x_w"], params["p2x_b"], True),
             params["p3x_w"], params["p3x_b"], False)
    dy = lin(lin(proj1, params["p2y_w"], params["p2y_b"], True),
             params["p3y_w"], params["p3y_b"], False)
    do_ = lin(lin(proj1, params["p2o_w"], params["p2o_b"], True),
              params["p3o_w"], params["p3o_b"], False)
    return jnp.concatenate([dx, dy, do_], axis=1)


if __name__ == "__main__":
    key = jax.random.PRNGKey(0)
    k_param, k_in = jax.random.split(key)
    params = init_params(k_param)

    batch = 2
    x = jax.random.normal(k_in, (batch, 4, VISION_RANGE, VISION_RANGE),
                          jnp.float32)

    packed = pack_params(params)                 # one-time weight packing
    fwd = jax.jit(fused_forward)
    out = jax.block_until_ready(fwd(packed, x))

    assert out.shape == (batch, 3), out.shape
    assert bool(jnp.all(jnp.isfinite(out)))

    # Tight check vs. a bf16-matched reference (catches packing/order bugs),
    # plus a loose check vs. the exact f32 PyTorch-semantics reference.
    ref_bf16 = reference_forward(params, x, jnp.bfloat16)
    ref_f32 = reference_forward(params, x, jnp.float32)
    assert bool(jnp.allclose(out, ref_bf16, rtol=5e-3, atol=5e-3)), (out, ref_bf16)
    assert bool(jnp.allclose(out, ref_f32, rtol=5e-2, atol=5e-2)), (out, ref_f32)

    print("KERNEL_OK")
</pallas_src>

<mosaic_0001>
module attributes {stable_mosaic.version = 11 : i64} {
  func.func @_fused_pose_kernel(%arg0: i32, %arg1: memref<32x400xf32, #tpu.memory_space<vmem>>, %arg2: memref<400x1024xbf16, #tpu.memory_space<vmem>>, %arg3: memref<1x1024xf32, #tpu.memory_space<vmem>>, %arg4: memref<1024x32xbf16, #tpu.memory_space<vmem>>, %arg5: memref<1x32xf32, #tpu.memory_space<vmem>>, %arg6: memref<512x64xbf16, #tpu.memory_space<vmem>>, %arg7: memref<1x64xf32, #tpu.memory_space<vmem>>, %arg8: memref<64x1024xbf16, #tpu.memory_space<vmem>>, %arg9: memref<1x1024xf32, #tpu.memory_space<vmem>>, %arg10: memref<1024x384xbf16, #tpu.memory_space<vmem>>, %arg11: memref<1x384xf32, #tpu.memory_space<vmem>>, %arg12: memref<384x128xbf16, #tpu.memory_space<vmem>>, %arg13: memref<1x128xf32, #tpu.memory_space<vmem>>, %arg14: memref<2x128xf32, #tpu.memory_space<vmem>>, %arg15: memref<32x32xf32, #tpu.memory_space<vmem>>) attributes {dimension_semantics = [#tpu.dimension_semantics<arbitrary>], iteration_bounds = array<i64: 1>, scalar_prefetch = 0 : i64, scratch_operands = 1 : i64, tpu.core_type = #tpu.core_type<tc>, window_params = [{pipeline_mode = #tpu.pipeline_mode<synchronous>, transform_indices = @transform_0, window_bounds = array<i64: 32, 400>}, {pipeline_mode = #tpu.pipeline_mode<synchronous>, transform_indices = @transform_1, window_bounds = array<i64: 400, 1024>}, {pipeline_mode = #tpu.pipeline_mode<synchronous>, transform_indices = @transform_2, window_bounds = array<i64: 1, 1024>}, {pipeline_mode = #tpu.pipeline_mode<synchronous>, transform_indices = @transform_3, window_bounds = array<i64: 1024, 32>}, {pipeline_mode = #tpu.pipeline_mode<synchronous>, transform_indices = @transform_4, window_bounds = array<i64: 1, 32>}, {pipeline_mode = #tpu.pipeline_mode<synchronous>, transform_indices = @transform_5, window_bounds = array<i64: 512, 64>}, {pipeline_mode = #tpu.pipeline_mode<synchronous>, transform_indices = @transform_6, window_bounds = array<i64: 1, 64>}, {pipeline_mode = #tpu.pipeline_mode<synchronous>, transform_indices = @transform_7, window_bounds = array<i64: 64, 1024>}, {pipeline_mode = #tpu.pipeline_mode<synchronous>, transform_indices = @transform_8, window_bounds = array<i64: 1, 1024>}, {pipeline_mode = #tpu.pipeline_mode<synchronous>, transform_indices = @transform_9, window_bounds = array<i64: 1024, 384>}, {pipeline_mode = #tpu.pipeline_mode<synchronous>, transform_indices = @transform_10, window_bounds = array<i64: 1, 384>}, {pipeline_mode = #tpu.pipeline_mode<synchronous>, transform_indices = @transform_11, window_bounds = array<i64: 384, 128>}, {pipeline_mode = #tpu.pipeline_mode<synchronous>, transform_indices = @transform_12, window_bounds = array<i64: 1, 128>}, {pipeline_mode = #tpu.pipeline_mode<synchronous>, transform_indices = @transform_13, window_bounds = array<i64: 2, 128>}]} {
    %c0 = arith.constant 0 : index
    %c0_0 = arith.constant 0 : index
    %0 = vector.load %arg1[%c0, %c0_0] : memref<32x400xf32, #tpu.memory_space<vmem>>, vector<32x400xf32>
    %1 = arith.truncf %0 : vector<32x400xf32> to vector<32x400xbf16>
    %c0_1 = arith.constant 0 : index
    %c0_2 = arith.constant 0 : index
    %2 = vector.load %arg2[%c0_1, %c0_2] : memref<400x1024xbf16, #tpu.memory_space<vmem>>, vector<400x1024xbf16>
    %cst = arith.constant dense<0.000000e+00> : vector<32x1024xf32>
    %3 = tpu.matmul %1, %2, %cst {dimension_numbers = #tpu.dot_dimension_numbers<[1], [0], [0], [1], [0, 0, 1, 1], [], []>} : vector<32x400xbf16>, vector<400x1024xbf16>, vector<32x1024xf32> -> vector<32x1024xf32>
    %c0_3 = arith.constant 0 : index
    %c0_4 = arith.constant 0 : index
    %4 = vector.load %arg3[%c0_3, %c0_4] : memref<1x1024xf32, #tpu.memory_space<vmem>>, vector<1x1024xf32>
    %5 = vector.broadcast %4 : vector<1x1024xf32> to vector<32x1024xf32>
    %6 = arith.addf %3, %5 : vector<32x1024xf32>
    %cst_5 = arith.constant 0.000000e+00 : f32
    %7 = vector.broadcast %cst_5 : f32 to vector<32x1024xf32>
    %8 = arith.maximumf %6, %7 : vector<32x1024xf32>
    %9 = arith.truncf %8 : vector<32x1024xf32> to vector<32x1024xbf16>
    %c0_6 = arith.constant 0 : index
    %c0_7 = arith.constant 0 : index
    %10 = vector.load %arg4[%c0_6, %c0_7] : memref<1024x32xbf16, #tpu.memory_space<vmem>>, vector<1024x32xbf16>
    %cst_8 = arith.constant dense<0.000000e+00> : vector<32x32xf32>
    %11 = tpu.matmul %9, %10, %cst_8 {dimension_numbers = #tpu.dot_dimension_numbers<[1], [0], [0], [1], [0, 0, 1, 1], [], []>} : vector<32x1024xbf16>, vector<1024x32xbf16>, vector<32x32xf32> -> vector<32x32xf32>
    %c0_9 = arith.constant 0 : index
    %c0_10 = arith.constant 0 : index
    %12 = vector.load %arg5[%c0_9, %c0_10] : memref<1x32xf32, #tpu.memory_space<vmem>>, vector<1x32xf32>
    %13 = vector.broadcast %12 : vector<1x32xf32> to vector<32x32xf32>
    %14 = arith.addf %11, %13 : vector<32x32xf32>
    %cst_11 = arith.constant 0.000000e+00 : f32
    %15 = vector.broadcast %cst_11 : f32 to vector<32x32xf32>
    %16 = arith.maximumf %14, %15 : vector<32x32xf32>
    %c0_12 = arith.constant 0 : index
    %c0_13 = arith.constant 0 : index
    %17 = vector.load %arg15[%c0_12, %c0_13] : memref<32x32xf32, #tpu.memory_space<vmem>>, vector<32x32xf32>
    tpu.vector_store %arg15[%c0_12, %c0_13], %16 {strides = array<i32>} : memref<32x32xf32, #tpu.memory_space<vmem>>, vector<32x32xf32>,
    %cst_14 = arith.constant 0.000000e+00 : f32
    %18 = vector.broadcast %cst_14 : f32 to vector<2x64xf32>
    %c0_15 = arith.constant 0 : index
    %c0_16 = arith.constant 0 : index
    %19 = vector.load %arg15[%c0_15, %c0_16] : memref<32x32xf32, #tpu.memory_space<vmem>>, vector<2x32xf32>
    %20 = arith.truncf %19 : vector<2x32xf32> to vector<2x32xbf16>
    %c0_17 = arith.constant 0 : index
    %c0_18 = arith.constant 0 : index
    %21 = vector.load %arg6[%c0_17, %c0_18] : memref<512x64xbf16, #tpu.memory_space<vmem>>, vector<32x64xbf16>
    %cst_19 = arith.constant dense<0.000000e+00> : vector<2x64xf32>
    %22 = tpu.matmul %20, %21, %cst_19 {dimension_numbers = #tpu.dot_dimension_numbers<[1], [0], [0], [1], [0, 0, 1, 1], [], []>} : vector<2x32xbf16>, vector<32x64xbf16>, vector<2x64xf32> -> vector<2x64xf32>
    %23 = arith.addf %18, %22 : vector<2x64xf32>
    %c2 = arith.constant 2 : index
    %c0_20 = arith.constant 0 : index
    %24 = vector.load %arg15[%c2, %c0_20] : memref<32x32xf32, #tpu.memory_space<vmem>>, vector<2x32xf32>
    %25 = arith.truncf %24 : vector<2x32xf32> to vector<2x32xbf16>
    %c32 = arith.constant 32 : index
    %c0_21 = arith.constant 0 : index
    %26 = vector.load %arg6[%c32, %c0_21] : memref<512x64xbf16, #tpu.memory_space<vmem>>, vector<32x64xbf16>
    %cst_22 = arith.constant dense<0.000000e+00> : vector<2x64xf32>
    %27 = tpu.matmul %25, %26, %cst_22 {dimension_numbers = #tpu.dot_dimension_numbers<[1], [0], [0], [1], [0, 0, 1, 1], [], []>} : vector<2x32xbf16>, vector<32x64xbf16>, vector<2x64xf32> -> vector<2x64xf32>
    %28 = arith.addf %23, %27 : vector<2x64xf32>
    %c4 = arith.constant 4 : index
    %c0_23 = arith.constant 0 : index
    %29 = vector.load %arg15[%c4, %c0_23] : memref<32x32xf32, #tpu.memory_space<vmem>>, vector<2x32xf32>
    %30 = arith.truncf %29 : vector<2x32xf32> to vector<2x32xbf16>
    %c64 = arith.constant 64 : index
    %c0_24 = arith.constant 0 : index
    %31 = vector.load %arg6[%c64, %c0_24] : memref<512x64xbf16, #tpu.memory_space<vmem>>, vector<32x64xbf16>
    %cst_25 = arith.constant dense<0.000000e+00> : vector<2x64xf32>
    %32 = tpu.matmul %30, %31, %cst_25 {dimension_numbers = #tpu.dot_dimension_numbers<[1], [0], [0], [1], [0, 0, 1, 1], [], []>} : vector<2x32xbf16>, vector<32x64xbf16>, vector<2x64xf32> -> vector<2x64xf32>
    %33 = arith.addf %28, %32 : vector<2x64xf32>
    %c6 = arith.constant 6 : index
    %c0_26 = arith.constant 0 : index
    %34 = vector.load %arg15[%c6, %c0_26] : memref<32x32xf32, #tpu.memory_space<vmem>>, vector<2x32xf32>
    %35 = arith.truncf %34 : vector<2x32xf32> to vector<2x32xbf16>
    %c96 = arith.constant 96 : index
    %c0_27 = arith.constant 0 : index
    %36 = vector.load %arg6[%c96, %c0_27] : memref<512x64xbf16, #tpu.memory_space<vmem>>, vector<32x64xbf16>
    %cst_28 = arith.constant dense<0.000000e+00> : vector<2x64xf32>
    %37 = tpu.matmul %35, %36, %cst_28 {dimension_numbers = #tpu.dot_dimension_numbers<[1], [0], [0], [1], [0, 0, 1, 1], [], []>} : vector<2x32xbf16>, vector<32x64xbf16>, vector<2x64xf32> -> vector<2x64xf32>
    %38 = arith.addf %33, %37 : vector<2x64xf32>
    %c8 = arith.constant 8 : index
    %c0_29 = arith.constant 0 : index
    %39 = vector.load %arg15[%c8, %c0_29] : memref<32x32xf32, #tpu.memory_space<vmem>>, vector<2x32xf32>
    %40 = arith.truncf %39 : vector<2x32xf32> to vector<2x32xbf16>
    %c128 = arith.constant 128 : index
    %c0_30 = arith.constant 0 : index
    %41 = vector.load %arg6[%c128, %c0_30] : memref<512x64xbf16, #tpu.memory_space<vmem>>, vector<32x64xbf16>
    %cst_31 = arith.constant dense<0.000000e+00> : vector<2x64xf32>
    %42 = tpu.matmul %40, %41, %cst_31 {dimension_numbers = #tpu.dot_dimension_numbers<[1], [0], [0], [1], [0, 0, 1, 1], [], []>} : vector<2x32xbf16>, vector<32x64xbf16>, vector<2x64xf32> -> vector<2x64xf32>
    %43 = arith.addf %38, %42 : vector<2x64xf32>
    %c10 = arith.constant 10 : index
    %c0_32 = arith.constant 0 : index
    %44 = vector.load %arg15[%c10, %c0_32] : memref<32x32xf32, #tpu.memory_space<vmem>>, vector<2x32xf32>
    %45 = arith.truncf %44 : vector<2x32xf32> to vector<2x32xbf16>
    %c160 = arith.constant 160 : index
    %c0_33 = arith.constant 0 : index
    %46 = vector.load %arg6[%c160, %c0_33] : memref<512x64xbf16, #tpu.memory_space<vmem>>, vector<32x64xbf16>
    %cst_34 = arith.constant dense<0.000000e+00> : vector<2x64xf32>
    %47 = tpu.matmul %45, %46, %cst_34 {dimension_numbers = #tpu.dot_dimension_numbers<[1], [0], [0], [1], [0, 0, 1, 1], [], []>} : vector<2x32xbf16>, vector<32x64xbf16>, vector<2x64xf32> -> vector<2x64xf32>
    %48 = arith.addf %43, %47 : vector<2x64xf32>
    %c12 = arith.constant 12 : index
    %c0_35 = arith.constant 0 : index
    %49 = vector.load %arg15[%c12, %c0_35] : memref<32x32xf32, #tpu.memory_space<vmem>>, vector<2x32xf32>
    %50 = arith.truncf %49 : vector<2x32xf32> to vector<2x32xbf16>
    %c192 = arith.constant 192 : index
    %c0_36 = arith.constant 0 : index
    %51 = vector.load %arg6[%c192, %c0_36] : memref<512x64xbf16, #tpu.memory_space<vmem>>, vector<32x64xbf16>
    %cst_37 = arith.constant dense<0.000000e+00> : vector<2x64xf32>
    %52 = tpu.matmul %50, %51, %cst_37 {dimension_numbers = #tpu.dot_dimension_numbers<[1], [0], [0], [1], [0, 0, 1, 1], [], []>} : vector<2x32xbf16>, vector<32x64xbf16>, vector<2x64xf32> -> vector<2x64xf32>
    %53 = arith.addf %48, %52 : vector<2x64xf32>
    %c14 = arith.constant 14 : index
    %c0_38 = arith.constant 0 : index
    %54 = vector.load %arg15[%c14, %c0_38] : memref<32x32xf32, #tpu.memory_space<vmem>>, vector<2x32xf32>
    %55 = arith.truncf %54 : vector<2x32xf32> to vector<2x32xbf16>
    %c224 = arith.constant 224 : index
    %c0_39 = arith.constant 0 : index
    %56 = vector.load %arg6[%c224, %c0_39] : memref<512x64xbf16, #tpu.memory_space<vmem>>, vector<32x64xbf16>
    %cst_40 = arith.constant dense<0.000000e+00> : vector<2x64xf32>
    %57 = tpu.matmul %55, %56, %cst_40 {dimension_numbers = #tpu.dot_dimension_numbers<[1], [0], [0], [1], [0, 0, 1, 1], [], []>} : vector<2x32xbf16>, vector<32x64xbf16>, vector<2x64xf32> -> vector<2x64xf32>
    %58 = arith.addf %53, %57 : vector<2x64xf32>
    %c16 = arith.constant 16 : index
    %c0_41 = arith.constant 0 : index
    %59 = vector.load %arg15[%c16, %c0_41] : memref<32x32xf32, #tpu.memory_space<vmem>>, vector<2x32xf32>
    %60 = arith.truncf %59 : vector<2x32xf32> to vector<2x32xbf16>
    %c256 = arith.constant 256 : index
    %c0_42 = arith.constant 0 : index
    %61 = vector.load %arg6[%c256, %c0_42] : memref<512x64xbf16, #tpu.memory_space<vmem>>, vector<32x64xbf16>
    %cst_43 = arith.constant dense<0.000000e+00> : vector<2x64xf32>
    %62 = tpu.matmul %60, %61, %cst_43 {dimension_numbers = #tpu.dot_dimension_numbers<[1], [0], [0], [1], [0, 0, 1, 1], [], []>} : vector<2x32xbf16>, vector<32x64xbf16>, vector<2x64xf32> -> vector<2x64xf32>
    %63 = arith.addf %58, %62 : vector<2x64xf32>
    %c18 = arith.constant 18 : index
    %c0_44 = arith.constant 0 : index
    %64 = vector.load %arg15[%c18, %c0_44] : memref<32x32xf32, #tpu.memory_space<vmem>>, vector<2x32xf32>
    %65 = arith.truncf %64 : vector<2x32xf32> to vector<2x32xbf16>
    %c288 = arith.constant 288 : index
    %c0_45 = arith.constant 0 : index
    %66 = vector.load %arg6[%c288, %c0_45] : memref<512x64xbf16, #tpu.memory_space<vmem>>, vector<32x64xbf16>
    %cst_46 = arith.constant dense<0.000000e+00> : vector<2x64xf32>
    %67 = tpu.matmul %65, %66, %cst_46 {dimension_numbers = #tpu.dot_dimension_numbers<[1], [0], [0], [1], [0, 0, 1, 1], [], []>} : vector<2x32xbf16>, vector<32x64xbf16>, vector<2x64xf32> -> vector<2x64xf32>
    %68 = arith.addf %63, %67 : vector<2x64xf32>
    %c20 = arith.constant 20 : index
    %c0_47 = arith.constant 0 : index
    %69 = vector.load %arg15[%c20, %c0_47] : memref<32x32xf32, #tpu.memory_space<vmem>>, vector<2x32xf32>
    %70 = arith.truncf %69 : vector<2x32xf32> to vector<2x32xbf16>
    %c320 = arith.constant 320 : index
    %c0_48 = arith.constant 0 : index
    %71 = vector.load %arg6[%c320, %c0_48] : memref<512x64xbf16, #tpu.memory_space<vmem>>, vector<32x64xbf16>
    %cst_49 = arith.constant dense<0.000000e+00> : vector<2x64xf32>
    %72 = tpu.matmul %70, %71, %cst_49 {dimension_numbers = #tpu.dot_dimension_numbers<[1], [0], [0], [1], [0, 0, 1, 1], [], []>} : vector<2x32xbf16>, vector<32x64xbf16>, vector<2x64xf32> -> vector<2x64xf32>
    %73 = arith.addf %68, %72 : vector<2x64xf32>
    %c22 = arith.constant 22 : index
    %c0_50 = arith.constant 0 : index
    %74 = vector.load %arg15[%c22, %c0_50] : memref<32x32xf32, #tpu.memory_space<vmem>>, vector<2x32xf32>
    %75 = arith.truncf %74 : vector<2x32xf32> to vector<2x32xbf16>
    %c352 = arith.constant 352 : index
    %c0_51 = arith.constant 0 : index
    %76 = vector.load %arg6[%c352, %c0_51] : memref<512x64xbf16, #tpu.memory_space<vmem>>, vector<32x64xbf16>
    %cst_52 = arith.constant dense<0.000000e+00> : vector<2x64xf32>
    %77 = tpu.matmul %75, %76, %cst_52 {dimension_numbers = #tpu.dot_dimension_numbers<[1], [0], [0], [1], [0, 0, 1, 1], [], []>} : vector<2x32xbf16>, vector<32x64xbf16>, vector<2x64xf32> -> vector<2x64xf32>
    %78 = arith.addf %73, %77 : vector<2x64xf32>
    %c24 = arith.constant 24 : index
    %c0_53 = arith.constant 0 : index
    %79 = vector.load %arg15[%c24, %c0_53] : memref<32x32xf32, #tpu.memory_space<vmem>>, vector<2x32xf32>
    %80 = arith.truncf %79 : vector<2x32xf32> to vector<2x32xbf16>
    %c384 = arith.constant 384 : index
    %c0_54 = arith.constant 0 : index
    %81 = vector.load %arg6[%c384, %c0_54] : memref<512x64xbf16, #tpu.memory_space<vmem>>, vector<32x64xbf16>
    %cst_55 = arith.constant dense<0.000000e+00> : vector<2x64xf32>
    %82 = tpu.matmul %80, %81, %cst_55 {dimension_numbers = #tpu.dot_dimension_numbers<[1], [0], [0], [1], [0, 0, 1, 1], [], []>} : vector<2x32xbf16>, vector<32x64xbf16>, vector<2x64xf32> -> vector<2x64xf32>
    %83 = arith.addf %78, %82 : vector<2x64xf32>
    %c26 = arith.constant 26 : index
    %c0_56 = arith.constant 0 : index
    %84 = vector.load %arg15[%c26, %c0_56] : memref<32x32xf32, #tpu.memory_space<vmem>>, vector<2x32xf32>
    %85 = arith.truncf %84 : vector<2x32xf32> to vector<2x32xbf16>
    %c416 = arith.constant 416 : index
    %c0_57 = arith.constant 0 : index
    %86 = vector.load %arg6[%c416, %c0_57] : memref<512x64xbf16, #tpu.memory_space<vmem>>, vector<32x64xbf16>
    %cst_58 = arith.constant dense<0.000000e+00> : vector<2x64xf32>
    %87 = tpu.matmul %85, %86, %cst_58 {dimension_numbers = #tpu.dot_dimension_numbers<[1], [0], [0], [1], [0, 0, 1, 1], [], []>} : vector<2x32xbf16>, vector<32x64xbf16>, vector<2x64xf32> -> vector<2x64xf32>
    %88 = arith.addf %83, %87 : vector<2x64xf32>
    %c28 = arith.constant 28 : index
    %c0_59 = arith.constant 0 : index
    %89 = vector.load %arg15[%c28, %c0_59] : memref<32x32xf32, #tpu.memory_space<vmem>>, vector<2x32xf32>
    %90 = arith.truncf %89 : vector<2x32xf32> to vector<2x32xbf16>
    %c448 = arith.constant 448 : index
    %c0_60 = arith.constant 0 : index
    %91 = vector.load %arg6[%c448, %c0_60] : memref<512x64xbf16, #tpu.memory_space<vmem>>, vector<32x64xbf16>
    %cst_61 = arith.constant dense<0.000000e+00> : vector<2x64xf32>
    %92 = tpu.matmul %90, %91, %cst_61 {dimension_numbers = #tpu.dot_dimension_numbers<[1], [0], [0], [1], [0, 0, 1, 1], [], []>} : vector<2x32xbf16>, vector<32x64xbf16>, vector<2x64xf32> -> vector<2x64xf32>
    %93 = arith.addf %88, %92 : vector<2x64xf32>
    %c30 = arith.constant 30 : index
    %c0_62 = arith.constant 0 : index
    %94 = vector.load %arg15[%c30, %c0_62] : memref<32x32xf32, #tpu.memory_space<vmem>>, vector<2x32xf32>
    %95 = arith.truncf %94 : vector<2x32xf32> to vector<2x32xbf16>
    %c480 = arith.constant 480 : index
    %c0_63 = arith.constant 0 : index
    %96 = vector.load %arg6[%c480, %c0_63] : memref<512x64xbf16, #tpu.memory_space<vmem>>, vector<32x64xbf16>
    %cst_64 = arith.constant dense<0.000000e+00> : vector<2x64xf32>
    %97 = tpu.matmul %95, %96, %cst_64 {dimension_numbers = #tpu.dot_dimension_numbers<[1], [0], [0], [1], [0, 0, 1, 1], [], []>} : vector<2x32xbf16>, vector<32x64xbf16>, vector<2x64xf32> -> vector<2x64xf32>
    %98 = arith.addf %93, %97 : vector<2x64xf32>
    %c0_65 = arith.constant 0 : index
    %c0_66 = arith.constant 0 : index
    %99 = vector.load %arg7[%c0_65, %c0_66] : memref<1x64xf32, #tpu.memory_space<vmem>>, vector<1x64xf32>
    %100 = vector.broadcast %99 : vector<1x64xf32> to vector<2x64xf32>
    %101 = arith.addf %98, %100 : vector<2x64xf32>
    %cst_67 = arith.constant 0.000000e+00 : f32
    %102 = vector.broadcast %cst_67 : f32 to vector<2x64xf32>
    %103 = arith.maximumf %101, %102 : vector<2x64xf32>
    %104 = arith.truncf %103 : vector<2x64xf32> to vector<2x64xbf16>
    %c0_68 = arith.constant 0 : index
    %c0_69 = arith.constant 0 : index
    %105 = vector.load %arg8[%c0_68, %c0_69] : memref<64x1024xbf16, #tpu.memory_space<vmem>>, vector<64x1024xbf16>
    %cst_70 = arith.constant dense<0.000000e+00> : vector<2x1024xf32>
    %106 = tpu.matmul %104, %105, %cst_70 {dimension_numbers = #tpu.dot_dimension_numbers<[1], [0], [0], [1], [0, 0, 1, 1], [], []>} : vector<2x64xbf16>, vector<64x1024xbf16>, vector<2x1024xf32> -> vector<2x1024xf32>
    %c0_71 = arith.constant 0 : index
    %c0_72 = arith.constant 0 : index
    %107 = vector.load %arg9[%c0_71, %c0_72] : memref<1x1024xf32, #tpu.memory_space<vmem>>, vector<1x1024xf32>
    %108 = vector.broadcast %107 : vector<1x1024xf32> to vector<2x1024xf32>
    %109 = arith.addf %106, %108 : vector<2x1024xf32>
    %cst_73 = arith.constant 0.000000e+00 : f32
    %110 = vector.broadcast %cst_73 : f32 to vector<2x1024xf32>
    %111 = arith.maximumf %109, %110 : vector<2x1024xf32>
    %112 = arith.truncf %111 : vector<2x1024xf32> to vector<2x1024xbf16>
    %c0_74 = arith.constant 0 : index
    %c0_75 = arith.constant 0 : index
    %113 = vector.load %arg10[%c0_74, %c0_75] : memref<1024x384xbf16, #tpu.memory_space<vmem>>, vector<1024x384xbf16>
    %cst_76 = arith.constant dense<0.000000e+00> : vector<2x384xf32>
    %114 = tpu.matmul %112, %113, %cst_76 {dimension_numbers = #tpu.dot_dimension_numbers<[1], [0], [0], [1], [0, 0, 1, 1], [], []>} : vector<2x1024xbf16>, vector<1024x384xbf16>, vector<2x384xf32> -> vector<2x384xf32>
    %c0_77 = arith.constant 0 : index
    %c0_78 = arith.constant 0 : index
    %115 = vector.load %arg11[%c0_77, %c0_78] : memref<1x384xf32, #tpu.memory_space<vmem>>, vector<1x384xf32>
    %116 = vector.broadcast %115 : vector<1x384xf32> to vector<2x384xf32>
    %117 = arith.addf %114, %116 : vector<2x384xf32>
    %cst_79 = arith.constant 0.000000e+00 : f32
    %118 = vector.broadcast %cst_79 : f32 to vector<2x384xf32>
    %119 = arith.maximumf %117, %118 : vector<2x384xf32>
    %120 = arith.truncf %119 : vector<2x384xf32> to vector<2x384xbf16>
    %c0_80 = arith.constant 0 : index
    %c0_81 = arith.constant 0 : index
    %121 = vector.load %arg12[%c0_80, %c0_81] : memref<384x128xbf16, #tpu.memory_space<vmem>>, vector<384x128xbf16>
    %cst_82 = arith.constant dense<0.000000e+00> : vector<2x128xf32>
    %122 = tpu.matmul %120, %121, %cst_82 {dimension_numbers = #tpu.dot_dimension_numbers<[1], [0], [0], [1], [0, 0, 1, 1], [], []>} : vector<2x384xbf16>, vector<384x128xbf16>, vector<2x128xf32> -> vector<2x128xf32>
    %c0_83 = arith.constant 0 : index
    %c0_84 = arith.constant 0 : index
    %123 = vector.load %arg13[%c0_83, %c0_84] : memref<1x128xf32, #tpu.memory_space<vmem>>, vector<1x128xf32>
    %124 = vector.broadcast %123 : vector<1x128xf32> to vector<2x128xf32>
    %125 = arith.addf %122, %124 : vector<2x128xf32>
    %c0_85 = arith.constant 0 : index
    %c0_86 = arith.constant 0 : index
    %126 = vector.load %arg14[%c0_85, %c0_86] : memref<2x128xf32, #tpu.memory_space<vmem>>, vector<2x128xf32>
    tpu.vector_store %arg14[%c0_85, %c0_86], %125 {strides = array<i32>} : memref<2x128xf32, #tpu.memory_space<vmem>>, vector<2x128xf32>,
    return
  }
  func.func @transform_0(%arg0: i32) -> (i32, i32) {
    %c0_i32 = arith.constant 0 : i32
    %c0_i32_0 = arith.constant 0 : i32
    %c0_i32_1 = arith.constant 0 : i32
    return %c0_i32, %c0_i32_0 : i32, i32
  }
  func.func @transform_1(%arg0: i32) -> (i32, i32) {
    %c0_i32 = arith.constant 0 : i32
    %c0_i32_0 = arith.constant 0 : i32
    %c0_i32_1 = arith.constant 0 : i32
    return %c0_i32, %c0_i32_0 : i32, i32
  }
  func.func @transform_2(%arg0: i32) -> (i32, i32) {
    %c0_i32 = arith.constant 0 : i32
    %c0_i32_0 = arith.constant 0 : i32
    %c0_i32_1 = arith.constant 0 : i32
    return %c0_i32, %c0_i32_0 : i32, i32
  }
  func.func @transform_3(%arg0: i32) -> (i32, i32) {
    %c0_i32 = arith.constant 0 : i32
    %c0_i32_0 = arith.constant 0 : i32
    %c0_i32_1 = arith.constant 0 : i32
    return %c0_i32, %c0_i32_0 : i32, i32
  }
  func.func @transform_4(%arg0: i32) -> (i32, i32) {
    %c0_i32 = arith.constant 0 : i32
    %c0_i32_0 = arith.constant 0 : i32
    %c0_i32_1 = arith.constant 0 : i32
    return %c0_i32, %c0_i32_0 : i32, i32
  }
  func.func @transform_5(%arg0: i32) -> (i32, i32) {
    %c0_i32 = arith.constant 0 : i32
    %c0_i32_0 = arith.constant 0 : i32
    %c0_i32_1 = arith.constant 0 : i32
    return %c0_i32, %c0_i32_0 : i32, i32
  }
  func.func @transform_6(%arg0: i32) -> (i32, i32) {
    %c0_i32 = arith.constant 0 : i32
    %c0_i32_0 = arith.constant 0 : i32
    %c0_i32_1 = arith.constant 0 : i32
    return %c0_i32, %c0_i32_0 : i32, i32
  }
  func.func @transform_7(%arg0: i32) -> (i32, i32) {
    %c0_i32 = arith.constant 0 : i32
    %c0_i32_0 = arith.constant 0 : i32
    %c0_i32_1 = arith.constant 0 : i32
    return %c0_i32, %c0_i32_0 : i32, i32
  }
  func.func @transform_8(%arg0: i32) -> (i32, i32) {
    %c0_i32 = arith.constant 0 : i32
    %c0_i32_0 = arith.constant 0 : i32
    %c0_i32_1 = arith.constant 0 : i32
    return %c0_i32, %c0_i32_0 : i32, i32
  }
  func.func @transform_9(%arg0: i32) -> (i32, i32) {
    %c0_i32 = arith.constant 0 : i32
    %c0_i32_0 = arith.constant 0 : i32
    %c0_i32_1 = arith.constant 0 : i32
    return %c0_i32, %c0_i32_0 : i32, i32
  }
  func.func @transform_10(%arg0: i32) -> (i32, i32) {
    %c0_i32 = arith.constant 0 : i32
    %c0_i32_0 = arith.constant 0 : i32
    %c0_i32_1 = arith.constant 0 : i32
    return %c0_i32, %c0_i32_0 : i32, i32
  }
  func.func @transform_11(%arg0: i32) -> (i32, i32) {
    %c0_i32 = arith.constant 0 : i32
    %c0_i32_0 = arith.constant 0 : i32
    %c0_i32_1 = arith.constant 0 : i32
    return %c0_i32, %c0_i32_0 : i32, i32
  }
  func.func @transform_12(%arg0: i32) -> (i32, i32) {
    %c0_i32 = arith.constant 0 : i32
    %c0_i32_0 = arith.constant 0 : i32
    %c0_i32_1 = arith.constant 0 : i32
    return %c0_i32, %c0_i32_0 : i32, i32
  }
  func.func @transform_13(%arg0: i32) -> (i32, i32) {
    %c0_i32 = arith.constant 0 : i32
    %c0_i32_0 = arith.constant 0 : i32
    %c0_i32_1 = arith.constant 0 : i32
    return %c0_i32, %c0_i32_0 : i32, i32
  }
}

</mosaic_0001>

<bundles_post_ra>
// kernel: fused_forward.1
= control target key start
LH: loop header
LB: loop body
LE: loop exit
PB: predicated region body
PF: predicated region fallthrough
CT: control target
= control target key end

     0   :  { %vm1312_vm0 = vcmask 130048   ;;  %s9402_s0 = inlined_call_operand.vmem [shape: f32[32,400], index: 0, kind: input, shape index: {}]   ;;  %s9403_s1 = inlined_call_operand.vmem [shape: bf16[400,1024], index: 1, kind: input, shape index: {}]   ;;  %s9404_s2 = inlined_call_operand.vmem [shape: f32[1,1024], index: 2, kind: input, shape index: {}]   ;;  %s9405_s3 = inlined_call_operand.vmem [shape: bf16[1024,32], index: 3, kind: input, shape index: {}]   ;;  %s9406_s4 = inlined_call_operand.vmem [shape: f32[1,32], index: 4, kind: input, shape index: {}]   ;;  %s9407_s5 = inlined_call_operand.vmem [shape: bf16[512,64], index: 5, kind: input, shape index: {}]   ;;  %s9408_s6 = inlined_call_operand.vmem [shape: f32[1,64], index: 6, kind: input, shape index: {}]   ;;  %s9409_s7 = inlined_call_operand.vmem [shape: bf16[64,1024], index: 7, kind: input, shape index: {}]   ;;  %s9410_s8 = inlined_call_operand.vmem [shape: f32[1,1024], index: 8, kind: input, shape index: {}]   ;;  %s9411_s9 = inlined_call_operand.vmem [shape: bf16[1024,384], index: 9, kind: input, shape index: {}]   ;;  %s9412_s10 = inlined_call_operand.vmem [shape: f32[1,384], index: 10, kind: input, shape index: {}]   ;;  %s9413_s11 = inlined_call_operand.vmem [shape: bf16[384,128], index: 11, kind: input, shape index: {}]   ;;  %s9414_s12 = inlined_call_operand.vmem [shape: f32[1,128], index: 12, kind: input, shape index: {}]   ;;  %s9415_s13 = inlined_call_operand.hbm [shape: f32[2,128], index: 13, kind: output, shape index: {}]  }
   0x1   :  { %v70_v0 = vld [vmem:[%s9403_s1] sm:$0xff]  ;;  %v71_v2 = vld [vmem:[%s9403_s1 + $0x8] sm:$0xff] }
   0x2   :  { %v74_v1 = vld [vmem:[%s9403_s1 + $0x20] sm:$0xff]  ;;  %v75_v4 = vld [vmem:[%s9403_s1 + $0x28] sm:$0xff] }
   0x3   :  { %v5855_v3 = vcombine.high %v70_v0, %v74_v1  ;;  %v5854_v5 = vcombine.low %v70_v0, %v74_v1  ;;  %v78_v6 = vld [vmem:[%s9403_s1 + $0x40] sm:$0xff]  ;;  %v5857_v8 = vcombine.high %v71_v2, %v75_v4  ;;  %v5856_v9 = vcombine.low %v71_v2, %v75_v4  ;;  %v79_v11 = vld [vmem:[%s9403_s1 + $0x48] sm:$0xff] }
   0x4   :  { %v82_v7 = vld [vmem:[%s9403_s1 + $0x60] sm:$0xff]  ;;  %v83_v12 = vld [vmem:[%s9403_s1 + $0x68] sm:$0xff] }
   0x5   :  { %v5863_v10 = vcombine.high %v78_v6, %v82_v7  ;;  %v86_v13 = vld [vmem:[%s9403_s1 + $0x80] sm:$0xff]  ;;  %1319 = vmatprep.subr.bf16.mxu0 %v5855_v3  ;;  %v5865_v14 = vcombine.high %v79_v11, %v83_v12  ;;  %v87_v16 = vld [vmem:[%s9403_s1 + $0x88] sm:$0xff]  ;;  %1425 = vmatprep.subr.bf16.mxu1 %v5857_v8  ;;  %v5862_v18 = vcombine.low %v78_v6, %v82_v7 }
   0x6   :  { %v90_v15 = vld [vmem:[%s9403_s1 + $0xa0] sm:$0xff]  ;;  %v91_v17 = vld [vmem:[%s9403_s1 + $0xa8] sm:$0xff]  ;;  %1320 = vmatpush1.bf16.msra.mxu0 %v5854_v5  ;;  %1426 = vmatpush1.bf16.msra.mxu1 %v5856_v9  ;;  %v5864_v19 = vcombine.low %v79_v11, %v83_v12 }
   0x7   :  { %1321 = vmatprep.subr.bf16.mxu0 %v5863_v10  ;;  %v5871_v20 = vcombine.high %v86_v13, %v90_v15  ;;  %1427 = vmatprep.subr.bf16.mxu1 %v5865_v14  ;;  %v5873_v21 = vcombine.high %v87_v16, %v91_v17  ;;  %v94_v22 = vld [vmem:[%s9403_s1 + $0xc0] sm:$0xff]  ;;  %v95_v24 = vld [vmem:[%s9403_s1 + $0xc8] sm:$0xff]  ;;  %v5870_v26 = vcombine.low %v86_v13, %v90_v15 }
   0x8   :  { %v98_v23 = vld [vmem:[%s9403_s1 + $0xe0] sm:$0xff]  ;;  %v99_v25 = vld [vmem:[%s9403_s1 + $0xe8] sm:$0xff]  ;;  %v5872_v27 = vcombine.low %v87_v16, %v91_v17 }
   0x9   :  { %v5879_v28 = vcombine.high %v94_v22, %v98_v23  ;;  %v5881_v29 = vcombine.high %v95_v24, %v99_v25  ;;  %v102_v30 = vld [vmem:[%s9403_s1 + $0x100] sm:$0xff]  ;;  %v103_v32 = vld [vmem:[%s9403_s1 + $0x108] sm:$0xff]  ;;  %v5878_v34 = vcombine.low %v94_v22, %v98_v23  ;;  %v5880_v35 = vcombine.low %v95_v24, %v99_v25 }
   0xa   :  { %1322 = vmatpush1.bf16.msra.mxu0 %v5862_v18  ;;  %1428 = vmatpush1.bf16.msra.mxu1 %v5864_v19  ;;  %v106_v31 = vld [vmem:[%s9403_s1 + $0x120] sm:$0xff]  ;;  %v107_v33 = vld [vmem:[%s9403_s1 + $0x128] sm:$0xff] }
   0xb   :  { %1323 = vmatprep.subr.bf16.mxu0 %v5871_v20  ;;  %1429 = vmatprep.subr.bf16.mxu1 %v5873_v21  ;;  %v5887_v36 = vcombine.high %v102_v30, %v106_v31  ;;  %v5889_v37 = vcombine.high %v103_v32, %v107_v33  ;;  %v110_v38 = vld [vmem:[%s9403_s1 + $0x140] sm:$0xff]  ;;  %v111_v40 = vld [vmem:[%s9403_s1 + $0x148] sm:$0xff]  ;;  %v5886_v42 = vcombine.low %v102_v30, %v106_v31 }
   0xc   :  { %v114_v39 = vld [vmem:[%s9403_s1 + $0x160] sm:$0xff]  ;;  %v115_v41 = vld [vmem:[%s9403_s1 + $0x168] sm:$0xff]  ;;  %v5888_v43 = vcombine.low %v103_v32, %v107_v33 }
   0xd   :  { %v5895_v44 = vcombine.high %v110_v38, %v114_v39  ;;  %v5897_v45 = vcombine.high %v111_v40, %v115_v41  ;;  %v118_v46 = vld [vmem:[%s9403_s1 + $0x180] sm:$0xff]  ;;  %v119_v48 = vld [vmem:[%s9403_s1 + $0x188] sm:$0xff]  ;;  %v5894_v50 = vcombine.low %v110_v38, %v114_v39  ;;  %v5896_v51 = vcombine.low %v111_v40, %v115_v41 }
   0xe   :  { %1324 = vmatpush1.bf16.msra.mxu0 %v5870_v26  ;;  %1430 = vmatpush1.bf16.msra.mxu1 %v5872_v27  ;;  %v122_v47 = vld [vmem:[%s9403_s1 + $0x1a0] sm:$0xff]  ;;  %v123_v49 = vld [vmem:[%s9403_s1 + $0x1a8] sm:$0xff] }
   0xf   :  { %1325 = vmatprep.subr.bf16.mxu0 %v5879_v28  ;;  %1431 = vmatprep.subr.bf16.mxu1 %v5881_v29  ;;  %v5903_v52 = vcombine.high %v118_v46, %v122_v47  ;;  %v47_v53 = vld [vmem:[%s9402_s0 + $0x8] sm:$0xff]  ;;  %v5905_v55 = vcombine.high %v119_v48, %v123_v49  ;;  %v126_v56 = vld [vmem:[%s9403_s1 + $0x1c0] sm:$0xff]  ;;  %v5902_v61 = vcombine.low %v118_v46, %v122_v47 }
  0x10   :  { %v51_v54 = vld [vmem:[%s9402_s0 + $0x28] sm:$0xff]  ;;  %v130_v57 = vld [vmem:[%s9403_s1 + $0x1e0] sm:$0xff]  ;;  %v5904_v62 = vcombine.low %v119_v48, %v123_v49 }
  0x11   :  { %v7508_v58 = vpack.c.bf16 %v51_v54, %v47_v53  ;;  %v127_v59 = vld [vmem:[%s9403_s1 + $0x1c8] sm:$0xff]  ;;  %v5911_v63 = vcombine.high %v126_v56, %v130_v57  ;;  %v134_v1 = vld [vmem:[%s9403_s1 + $0x200] sm:$0xff]  ;;  %v5910_v5 = vcombine.low %v126_v56, %v130_v57 }
  0x12   :  { %1326 = vmatpush1.bf16.msra.mxu0 %v5878_v34  ;;  %1432 = vmatpush1.bf16.msra.mxu1 %v5880_v35  ;;  %v131_v60 = vld [vmem:[%s9403_s1 + $0x1e8] sm:$0xff]  ;;  %v138_v2 = vld [vmem:[%s9403_s1 + $0x220] sm:$0xff] }
  0x13   :  { %1327 = vmatprep.subr.bf16.mxu0 %v5887_v36  ;;  %1433 = vmatprep.subr.bf16.mxu1 %v5889_v37  ;;  %v5913_v0 = vcombine.high %v127_v59, %v131_v60  ;;  %v135_v3 = vld [vmem:[%s9403_s1 + $0x208] sm:$0xff]  ;;  %v5912_v6 = vcombine.low %v127_v59, %v131_v60  ;;  %v5919_v7 = vcombine.high %v134_v1, %v138_v2  ;;  %v142_v9 = vld [vmem:[%s9403_s1 + $0x240] sm:$0xff] }
  0x14   :  { %1351 = vmatprep.mubr.bf16.mxu0 %v7508_v58  ;;  %1457 = vmatprep.mubr.bf16.mxu1 %v7508_v58  ;;  %v139_v4 = vld [vmem:[%s9403_s1 + $0x228] sm:$0xff]  ;;  %v146_v10 = vld [vmem:[%s9403_s1 + $0x260] sm:$0xff]  ;;  %v5918_v13 = vcombine.low %v134_v1, %v138_v2 }
  0x15   :  { %v5921_v8 = vcombine.high %v135_v3, %v139_v4  ;;  %v143_v11 = vld [vmem:[%s9403_s1 + $0x248] sm:$0xff]  ;;  %v5920_v14 = vcombine.low %v135_v3, %v139_v4  ;;  %v5927_v15 = vcombine.high %v142_v9, %v146_v10  ;;  %v150_v17 = vld [vmem:[%s9403_s1 + $0x280] sm:$0xff]  ;;  %v5926_v21 = vcombine.low %v142_v9, %v146_v10 }
  0x16   :  { %1328 = vmatpush1.bf16.msra.mxu0 %v5886_v42  ;;  %1434 = vmatpush1.bf16.msra.mxu1 %v5888_v43  ;;  %v147_v12 = vld [vmem:[%s9403_s1 + $0x268] sm:$0xff]  ;;  %v154_v18 = vld [vmem:[%s9403_s1 + $0x2a0] sm:$0xff] }
  0x17   :  { %1329 = vmatprep.subr.bf16.mxu0 %v5895_v44  ;;  %1435 = vmatprep.subr.bf16.mxu1 %v5897_v45  ;;  %v5929_v16 = vcombine.high %v143_v11, %v147_v12  ;;  %v151_v19 = vld [vmem:[%s9403_s1 + $0x288] sm:$0xff]  ;;  %v5928_v22 = vcombine.low %v143_v11, %v147_v12  ;;  %v5935_v23 = vcombine.high %v150_v17, %v154_v18  ;;  %v158_v25 = vld [vmem:[%s9403_s1 + $0x2c0] sm:$0xff] }
  0x18   :  { %v155_v20 = vld [vmem:[%s9403_s1 + $0x2a8] sm:$0xff]  ;;  %v162_v26 = vld [vmem:[%s9403_s1 + $0x2e0] sm:$0xff]  ;;  %v5934_v29 = vcombine.low %v150_v17, %v154_v18 }
  0x19   :  { %v5937_v24 = vcombine.high %v151_v19, %v155_v20  ;;  %v159_v27 = vld [vmem:[%s9403_s1 + $0x2c8] sm:$0xff]  ;;  %v5936_v30 = vcombine.low %v151_v19, %v155_v20  ;;  %v5943_v31 = vcombine.high %v158_v25, %v162_v26  ;;  %v166_v33 = vld [vmem:[%s9403_s1 + $0x300] sm:$0xff]  ;;  %v5942_v37 = vcombine.low %v158_v25, %v162_v26 }
  0x1a   :  { %1330 = vmatpush1.bf16.msra.mxu0 %v5894_v50  ;;  %1436 = vmatpush1.bf16.msra.mxu1 %v5896_v51  ;;  %v163_v28 = vld [vmem:[%s9403_s1 + $0x2e8] sm:$0xff]  ;;  %v170_v34 = vld [vmem:[%s9403_s1 + $0x320] sm:$0xff] }
  0x1b   :  { %1331 = vmatprep.subr.bf16.mxu0 %v5903_v52  ;;  %1437 = vmatprep.subr.bf16.mxu1 %v5905_v55  ;;  %v5945_v32 = vcombine.high %v159_v27, %v163_v28  ;;  %v167_v35 = vld [vmem:[%s9403_s1 + $0x308] sm:$0xff]  ;;  %v5944_v38 = vcombine.low %v159_v27, %v163_v28  ;;  %v5951_v39 = vcombine.high %v166_v33, %v170_v34  ;;  %v174_v41 = vld [vmem:[%s9403_s1 + $0x340] sm:$0xff] }
  0x1c   :  { %v171_v36 = vld [vmem:[%s9403_s1 + $0x328] sm:$0xff]  ;;  %v178_v42 = vld [vmem:[%s9403_s1 + $0x360] sm:$0xff]  ;;  %v5950_v45 = vcombine.low %v166_v33, %v170_v34 }
  0x1d   :  { %v5953_v40 = vcombine.high %v167_v35, %v171_v36  ;;  %v175_v43 = vld [vmem:[%s9403_s1 + $0x348] sm:$0xff]  ;;  %v5952_v46 = vcombine.low %v167_v35, %v171_v36  ;;  %v5959_v47 = vcombine.high %v174_v41, %v178_v42  ;;  %v182_v49 = vld [vmem:[%s9403_s1 + $0x380] sm:$0xff]  ;;  %v5958_v53 = vcombine.low %v174_v41, %v178_v42 }
  0x1e   :  { %1332 = vmatpush1.bf16.msra.mxu0 %v5902_v61  ;;  %1438 = vmatpush1.bf16.msra.mxu1 %v5904_v62  ;;  %v179_v44 = vld [vmem:[%s9403_s1 + $0x368] sm:$0xff]  ;;  %v186_v50 = vld [vmem:[%s9403_s1 + $0x3a0] sm:$0xff] }
  0x1f   :  { %1333 = vmatprep.subr.bf16.mxu0 %v5911_v63  ;;  %1439 = vmatprep.subr.bf16.mxu1 %v5913_v0  ;;  %v5961_v48 = vcombine.high %v175_v43, %v179_v44  ;;  %v183_v51 = vld [vmem:[%s9403_s1 + $0x388] sm:$0xff]  ;;  %v5960_v54 = vcombine.low %v175_v43, %v179_v44  ;;  %v5967_v55 = vcombine.high %v182_v49, %v186_v50  ;;  %v190_v57 = vld [vmem:[%s9403_s1 + $0x3c0] sm:$0xff] }
  0x20   :  { %v187_v52 = vld [vmem:[%s9403_s1 + $0x3a8] sm:$0xff]  ;;  %v194_v59 = vld [vmem:[%s9403_s1 + $0x3e0] sm:$0xff]  ;;  %v5966_v62 = vcombine.low %v182_v49, %v186_v50 }
  0x21   :  { %v5969_v56 = vcombine.high %v183_v51, %v187_v52  ;;  %v191_v60 = vld [vmem:[%s9403_s1 + $0x3c8] sm:$0xff]  ;;  %v5968_v63 = vcombine.low %v183_v51, %v187_v52  ;;  %v5975_v0 = vcombine.high %v190_v57, %v194_v59  ;;  %v198_v2 = vld [vmem:[%s9403_s1 + $0x400] sm:$0xff] }
  0x22   :  { %1334 = vmatpush1.bf16.msra.mxu0 %v5910_v5  ;;  %1440 = vmatpush1.bf16.msra.mxu1 %v5912_v6  ;;  %v195_v61 = vld [vmem:[%s9403_s1 + $0x3e8] sm:$0xff]  ;;  %v202_v3 = vld [vmem:[%s9403_s1 + $0x420] sm:$0xff]  ;;  %v5974_v6 = vcombine.low %v190_v57, %v194_v59 }
  0x23   :  { %1335 = vmatprep.subr.bf16.mxu0 %v5919_v7  ;;  %1441 = vmatprep.subr.bf16.mxu1 %v5921_v8  ;;  %v5977_v1 = vcombine.high %v191_v60, %v195_v61  ;;  %v199_v4 = vld [vmem:[%s9403_s1 + $0x408] sm:$0xff]  ;;  %v46_v7 = vld [vmem:[%s9402_s0] sm:$0xff]  ;;  %v5976_v9 = vcombine.low %v191_v60, %v195_v61  ;;  %v5983_v10 = vcombine.high %v198_v2, %v202_v3 }
  0x24   :  { %v203_v5 = vld [vmem:[%s9403_s1 + $0x428] sm:$0xff]  ;;  %v50_v8 = vld [vmem:[%s9402_s0 + $0x20] sm:$0xff]  ;;  %v5982_v19 = vcombine.low %v198_v2, %v202_v3 }
  0x25   :  { %v5985_v11 = vcombine.high %v199_v4, %v203_v5  ;;  %v206_v12 = vld [vmem:[%s9403_s1 + $0x440] sm:$0xff]  ;;  %v55_v17 = vld [vmem:[%s9402_s0 + $0x48] sm:$0xff]  ;;  %v5984_v20 = vcombine.low %v199_v4, %v203_v5 }
  0x26   :  { %1336 = vmatpush1.bf16.msra.mxu0 %v5918_v13  ;;  %1442 = vmatpush1.bf16.msra.mxu1 %v5920_v14  ;;  %v210_v13 = vld [vmem:[%s9403_s1 + $0x460] sm:$0xff]  ;;  %v207_v14 = vld [vmem:[%s9403_s1 + $0x448] sm:$0xff] }
  0x27   :  { %1337 = vmatprep.subr.bf16.mxu0 %v5927_v15  ;;  %1443 = vmatprep.subr.bf16.mxu1 %v5929_v16  ;;  %v7641_v15 = vpack.c.bf16 %v50_v8, %v46_v7  ;;  %v211_v16 = vld [vmem:[%s9403_s1 + $0x468] sm:$0xff]  ;;  %v5990_v28 = vcombine.low %v206_v12, %v210_v13  ;;  %v222_v34 = vld [vmem:[%s9403_s1 + $0x4c0] sm:$0xff] }
  0x28   :  { %v59_v18 = vld [vmem:[%s9402_s0 + $0x68] sm:$0xff]  ;;  %v226_v35 = vld [vmem:[%s9403_s1 + $0x4e0] sm:$0xff] }
  0x29   :  { %v7658_v25 = vpack.c.bf16 %v59_v18, %v55_v17  ;;  %v215_v26 = vld [vmem:[%s9403_s1 + $0x488] sm:$0xff]  ;;  %v230_v42 = vld [vmem:[%s9403_s1 + $0x500] sm:$0xff]  ;;  %v6006_v50 = vcombine.low %v222_v34, %v226_v35 }
  0x2a   :  { %1338 = vmatpush1.bf16.msra.mxu0 %v5926_v21  ;;  %1444 = vmatpush1.bf16.msra.mxu1 %v5928_v22  ;;  %v5991_v21 = vcombine.high %v206_v12, %v210_v13  ;;  %v5993_v22 = vcombine.high %v207_v14, %v211_v16  ;;  %v219_v27 = vld [vmem:[%s9403_s1 + $0x4a8] sm:$0xff]  ;;  %v234_v43 = vld [vmem:[%s9403_s1 + $0x520] sm:$0xff] }
  0x2b   :  { %1339 = vmatprep.subr.bf16.mxu0 %v5935_v23  ;;  %1445 = vmatprep.subr.bf16.mxu1 %v5937_v24  ;;  %v214_v23 = vld [vmem:[%s9403_s1 + $0x480] sm:$0xff]  ;;  %v6001_v33 = vcombine.high %v215_v26, %v219_v27  ;;  %v223_v36 = vld [vmem:[%s9403_s1 + $0x4c8] sm:$0xff]  ;;  %v6000_v44 = vcombine.low %v215_v26, %v219_v27  ;;  %v6014_v59 = vcombine.low %v230_v42, %v234_v43  ;;  %v73_v26 = vld [vmem:[%s9403_s1 + $0x18] sm:$0xff] }
  0x2c   :  { %v218_v24 = vld [vmem:[%s9403_s1 + $0x4a0] sm:$0xff]  ;;  %v263_v17 = vld [vmem:[%s9403_s1 + $0x608] sm:$0xff] }
  0x2d   :  { %v5998_v41 = vcombine.low %v214_v23, %v218_v24  ;;  %v238_v51 = vld [vmem:[%s9403_s1 + $0x540] sm:$0xff] }
  0x2e   :  { %1340 = vmatpush1.bf16.msra.mxu0 %v5934_v29  ;;  %1446 = vmatpush1.bf16.msra.mxu1 %v5936_v30  ;;  %v54_v29 = vld [vmem:[%s9402_s0 + $0x40] sm:$0xff] }
  0x2f   :  { %1341 = vmatprep.subr.bf16.mxu0 %v5943_v31  ;;  %1447 = vmatprep.subr.bf16.mxu1 %v5945_v32  ;;  %v58_v30 = vld [vmem:[%s9402_s0 + $0x60] sm:$0xff]  ;;  %v5992_v31 = vcombine.low %v207_v14, %v211_v16  ;;  %v5999_v32 = vcombine.high %v214_v23, %v218_v24 }
  0x30   :  { %v242_v52 = vld [vmem:[%s9403_s1 + $0x560] sm:$0xff] }
  0x31   :  { %v246_v60 = vld [vmem:[%s9403_s1 + $0x580] sm:$0xff]  ;;  %v6022_v3 = vcombine.low %v238_v51, %v242_v52 }
  0x32   :  { %1342 = vmatpush1.bf16.msra.mxu0 %v5942_v37  ;;  %1448 = vmatpush1.bf16.msra.mxu1 %v5944_v38  ;;  %v227_v37 = vld [vmem:[%s9403_s1 + $0x4e8] sm:$0xff]  ;;  %v7688_v38 = vpack.c.bf16 %v58_v30, %v54_v29  ;;  %v250_v61 = vld [vmem:[%s9403_s1 + $0x5a0] sm:$0xff]  ;;  %v52_v29 = vld [vmem:[%s9402_s0 + $0x30] sm:$0xff] }
  0x33   :  { %1343 = vmatprep.subr.bf16.mxu0 %v5951_v39  ;;  %1449 = vmatprep.subr.bf16.mxu1 %v5953_v40  ;;  %v49_v39 = vld [vmem:[%s9402_s0 + $0x18] sm:$0xff]  ;;  %v6031_v5 = vcombine.high %v246_v60, %v250_v61  ;;  %v258_v7 = vld [vmem:[%s9403_s1 + $0x5e0] sm:$0xff] }
  0x34   :  { %v53_v40 = vld [vmem:[%s9402_s0 + $0x38] sm:$0xff]  ;;  %v262_v12 = vld [vmem:[%s9403_s1 + $0x600] sm:$0xff] }
  0x35   :  { %v7708_v49 = vpack.c.bf16 %v53_v40, %v49_v39  ;;  %v266_v13 = vld [vmem:[%s9403_s1 + $0x620] sm:$0xff]  ;;  %v77_v30 = vld [vmem:[%s9403_s1 + $0x38] sm:$0xff] }
  0x36   :  { %1344 = vmatpush1.bf16.msra.mxu0 %v5950_v45  ;;  %1450 = vmatpush1.bf16.msra.mxu1 %v5952_v46  ;;  %v6007_v45 = vcombine.high %v222_v34, %v226_v35  ;;  %v231_v46 = vld [vmem:[%s9403_s1 + $0x508] sm:$0xff]  ;;  %v6047_v24 = vcombine.high %v262_v12, %v266_v13  ;;  %v57_v39 = vld [vmem:[%s9402_s0 + $0x58] sm:$0xff] }
  0x37   :  { %1345 = vmatprep.subr.bf16.mxu0 %v5959_v47  ;;  %1451 = vmatprep.subr.bf16.mxu1 %v5961_v48  ;;  %v235_v47 = vld [vmem:[%s9403_s1 + $0x528] sm:$0xff]  ;;  %v6009_v48 = vcombine.high %v223_v36, %v227_v37  ;;  %v61_v40 = vld [vmem:[%s9402_s0 + $0x78] sm:$0xff] }
  0x38   :  { %v6017_v57 = vcombine.high %v231_v46, %v235_v47 }
  0x3a   :  { %1346 = vmatpush1.bf16.msra.mxu0 %v5958_v53  ;;  %1452 = vmatpush1.bf16.msra.mxu1 %v5960_v54  ;;  %v6008_v53 = vcombine.low %v223_v36, %v227_v37  ;;  %v6015_v54 = vcombine.high %v230_v42, %v234_v43  ;;  %v81_v36 = vld [vmem:[%s9403_s1 + $0x58] sm:$0xff] }
  0x3b   :  { %1347 = vmatprep.subr.bf16.mxu0 %v5967_v55  ;;  %1453 = vmatprep.subr.bf16.mxu1 %v5969_v56  ;;  %v239_v55 = vld [vmem:[%s9403_s1 + $0x548] sm:$0xff]  ;;  %v85_v37 = vld [vmem:[%s9403_s1 + $0x78] sm:$0xff] }
  0x3c   :  { %v243_v56 = vld [vmem:[%s9403_s1 + $0x568] sm:$0xff] }
  0x3d   :  { %v6025_v2 = vcombine.high %v239_v55, %v243_v56  ;;  %v6024_v4 = vcombine.low %v239_v55, %v243_v56  ;;  %v96_v56 = vld [vmem:[%s9403_s1 + $0xd0] sm:$0xff] }
  0x3e   :  { %1348 = vmatpush1.bf16.msra.mxu0 %v5966_v62  ;;  %1454 = vmatpush1.bf16.msra.mxu1 %v5968_v63  ;;  %v6016_v62 = vcombine.low %v231_v46, %v235_v47  ;;  %v6023_v63 = vcombine.high %v238_v51, %v242_v52  ;;  %v5860_v46 = vcombine.low %v73_v26, %v77_v30 }
  0x3f   :  { %1349 = vmatprep.subr.bf16.mxu0 %v5975_v0  ;;  %1455 = vmatprep.subr.bf16.mxu1 %v5977_v1  ;;  %v247_v0 = vld [vmem:[%s9403_s1 + $0x588] sm:$0xff]  ;;  %v5869_v51 = vcombine.high %v81_v36, %v85_v37  ;;  %v7814_v52 = vpack.c.bf16 %v61_v40, %v57_v39  ;;  %v137_v40 = vld [vmem:[%s9403_s1 + $0x218] sm:$0xff] }
  0x40   :  { %v251_v1 = vld [vmem:[%s9403_s1 + $0x5a8] sm:$0xff] }
  0x41   :  { %v6033_v8 = vcombine.high %v247_v0, %v251_v1  ;;  %v6032_v14 = vcombine.low %v247_v0, %v251_v1 }
  0x42   :  { %1350 = vmatpush1.bf16.msra.mxu0 %v5974_v6  ;;  %1456 = vmatpush1.bf16.msra.mxu1 %v5976_v9  ;;  %v254_v6 = vld [vmem:[%s9403_s1 + $0x5c0] sm:$0xff]  ;;  %v255_v9 = vld [vmem:[%s9403_s1 + $0x5c8] sm:$0xff] }
  0x43   :  { %1372 = vmatprep.subr.bf16.mxu0 %v5983_v10  ;;  %1478 = vmatprep.subr.bf16.mxu1 %v5985_v11  ;;  %v259_v10 = vld [vmem:[%s9403_s1 + $0x5e8] sm:$0xff]  ;;  %v6030_v11 = vcombine.low %v246_v60, %v250_v61  ;;  %v6039_v16 = vcombine.high %v254_v6, %v258_v7  ;;  %v97_v61 = vld [vmem:[%s9403_s1 + $0xd8] sm:$0xff] }
  0x44   :  { %v6041_v18 = vcombine.high %v255_v9, %v259_v10  ;;  %v6040_v23 = vcombine.low %v255_v9, %v259_v10  ;;  %v112_v10 = vld [vmem:[%s9403_s1 + $0x150] sm:$0xff] }
  0x45   :  { %1352 = vmatmul.mubr.bf16.vlgmr.msra.gmra.mrb[0].mxu0 %v7641_v15  ;;  %1458 = vmatmul.mubr.bf16.vlgmr.msra.gmra.mrb[0].mxu1 %v7641_v15 }
  0x46   :  { %1373 = vmatpush1.bf16.msra.mxu0 %v5982_v19  ;;  %1479 = vmatpush1.bf16.msra.mxu1 %v5984_v20  ;;  %v267_v19 = vld [vmem:[%s9403_s1 + $0x628] sm:$0xff]  ;;  %v6038_v20 = vcombine.low %v254_v6, %v258_v7  ;;  %v105_v6 = vld [vmem:[%s9403_s1 + $0x118] sm:$0xff] }
  0x47   :  { %1374 = vmatprep.subr.bf16.mxu0 %v5991_v21  ;;  %1480 = vmatprep.subr.bf16.mxu1 %v5993_v22  ;;  %v72_v21 = vld [vmem:[%s9403_s1 + $0x10] sm:$0xff]  ;;  %v6049_v27 = vcombine.high %v263_v17, %v267_v19  ;;  %v6048_v34 = vcombine.low %v263_v17, %v267_v19  ;;  %v109_v7 = vld [vmem:[%s9403_s1 + $0x138] sm:$0xff] }
  0x48   :  { %1361 = vmatprep.mubr.bf16.mxu0 %v7658_v25  ;;  %1467 = vmatprep.mubr.bf16.mxu1 %v7658_v25  ;;  %v76_v22 = vld [vmem:[%s9403_s1 + $0x30] sm:$0xff]  ;;  %v5893_v17 = vcombine.high %v105_v6, %v109_v7 }
  0x49   :  { %v5859_v35 = vcombine.high %v72_v21, %v76_v22  ;;  %v5858_v43 = vcombine.low %v72_v21, %v76_v22  ;;  %v120_v19 = vld [vmem:[%s9403_s1 + $0x190] sm:$0xff]  ;;  %v5892_v21 = vcombine.low %v105_v6, %v109_v7  ;;  %v165_v6 = vld [vmem:[%s9403_s1 + $0x2f8] sm:$0xff] }
  0x4a   :  { %1375 = vmatpush1.bf16.msra.mxu0 %v5990_v28  ;;  %1481 = vmatpush1.bf16.msra.mxu1 %v5992_v31  ;;  %v48_v28 = vld [vmem:[%s9402_s0 + $0x10] sm:$0xff]  ;;  %v6046_v31 = vcombine.low %v262_v12, %v266_v13 }
  0x4b   :  { %1376 = vmatprep.subr.bf16.mxu0 %v5999_v32  ;;  %1482 = vmatprep.subr.bf16.mxu1 %v6001_v33  ;;  %v80_v32 = vld [vmem:[%s9403_s1 + $0x50] sm:$0xff]  ;;  %v7800_v42 = vpack.c.bf16 %v52_v29, %v48_v28 }
  0x4c   :  { %v84_v33 = vld [vmem:[%s9403_s1 + $0x70] sm:$0xff] }
  0x4d   :  { %1362 = vmatmul.mubr.bf16.gmra.mrb[4].mxu0 %v7688_v38  ;;  %1468 = vmatmul.mubr.bf16.gmra.mrb[4].mxu1 %v7688_v38  ;;  %v5867_v47 = vcombine.high %v80_v32, %v84_v33  ;;  %v5866_v55 = vcombine.low %v80_v32, %v84_v33  ;;  %v132_v28 = vld [vmem:[%s9403_s1 + $0x1f0] sm:$0xff]  ;;  %v133_v32 = vld [vmem:[%s9403_s1 + $0x1f8] sm:$0xff] }
  0x4e   :  { %1377 = vmatpush1.bf16.msra.mxu0 %v5998_v41  ;;  %1483 = vmatpush1.bf16.msra.mxu1 %v6000_v44  ;;  %v5861_v41 = vcombine.high %v73_v26, %v77_v30  ;;  %v88_v44 = vld [vmem:[%s9403_s1 + $0x90] sm:$0xff] }
  0x4f   :  { %1378 = vmatprep.subr.bf16.mxu0 %v6007_v45  ;;  %1484 = vmatprep.subr.bf16.mxu1 %v6009_v48  ;;  %v92_v45 = vld [vmem:[%s9403_s1 + $0xb0] sm:$0xff]  ;;  %v89_v48 = vld [vmem:[%s9403_s1 + $0x98] sm:$0xff] }
  0x50   :  { %6054 = vmatprep.mubr.msk.bf16.mxu0 %vm1312_vm0, %v7708_v49  ;;  %6056 = vmatprep.mubr.msk.bf16.mxu1 %vm1312_vm0, %v7708_v49  ;;  %v5875_v60 = vcombine.high %v88_v44, %v92_v45  ;;  %v5874_v1 = vcombine.low %v88_v44, %v92_v45  ;;  %v144_v45 = vld [vmem:[%s9403_s1 + $0x250] sm:$0xff] }
  0x52   :  { %1379 = vmatpush1.bf16.msra.mxu0 %v6006_v50  ;;  %1485 = vmatpush1.bf16.msra.mxu1 %v6008_v53  ;;  %v93_v50 = vld [vmem:[%s9403_s1 + $0xb8] sm:$0xff]  ;;  %v56_v53 = vld [vmem:[%s9402_s0 + $0x50] sm:$0xff] }
  0x53   :  { %1380 = vmatprep.subr.bf16.mxu0 %v6015_v54  ;;  %1486 = vmatprep.subr.bf16.mxu1 %v6017_v57  ;;  %v60_v54 = vld [vmem:[%s9402_s0 + $0x70] sm:$0xff] }
  0x54   :  { %v100_v57 = vld [vmem:[%s9403_s1 + $0xf0] sm:$0xff]  ;;  %v7840_v0 = vpack.c.bf16 %v60_v54, %v56_v53 }
  0x55   :  { %v5882_v9 = vcombine.low %v96_v56, %v100_v57 }
  0x56   :  { %1381 = vmatpush1.bf16.msra.mxu0 %v6014_v59  ;;  %1487 = vmatpush1.bf16.msra.mxu1 %v6016_v62  ;;  %v5868_v59 = vcombine.low %v81_v36, %v85_v37  ;;  %v101_v62 = vld [vmem:[%s9403_s1 + $0xf8] sm:$0xff]  ;;  %v140_v36 = vld [vmem:[%s9403_s1 + $0x230] sm:$0xff] }
  0x57   :  { %1382 = vmatprep.subr.bf16.mxu0 %v6023_v63  ;;  %1488 = vmatprep.subr.bf16.mxu1 %v6025_v2  ;;  %v5877_v63 = vcombine.high %v89_v48, %v93_v50  ;;  %v104_v2 = vld [vmem:[%s9403_s1 + $0x110] sm:$0xff]  ;;  %v5884_v12 = vcombine.low %v97_v61, %v101_v62 }
  0x5a   :  { %1383 = vmatpush1.bf16.msra.mxu0 %v6022_v3  ;;  %1489 = vmatpush1.bf16.msra.mxu1 %v6024_v4  ;;  %v108_v3 = vld [vmem:[%s9403_s1 + $0x130] sm:$0xff]  ;;  %v5876_v4 = vcombine.low %v89_v48, %v93_v50  ;;  %v145_v50 = vld [vmem:[%s9403_s1 + $0x258] sm:$0xff] }
  0x5b   :  { %1384 = vmatprep.subr.bf16.mxu0 %v6031_v5  ;;  %1490 = vmatprep.subr.bf16.mxu1 %v6033_v8  ;;  %v5883_v5 = vcombine.high %v96_v56, %v100_v57  ;;  %v5885_v8 = vcombine.high %v97_v61, %v101_v62  ;;  %v5891_v13 = vcombine.high %v104_v2, %v108_v3  ;;  %v156_v56 = vld [vmem:[%s9403_s1 + $0x2b0] sm:$0xff]  ;;  %v157_v61 = vld [vmem:[%s9403_s1 + $0x2b8] sm:$0xff] }
  0x5e   :  { %1385 = vmatpush1.bf16.msra.mxu0 %v6030_v11  ;;  %1491 = vmatpush1.bf16.msra.mxu1 %v6032_v14  ;;  %v116_v11 = vld [vmem:[%s9403_s1 + $0x170] sm:$0xff]  ;;  %v113_v14 = vld [vmem:[%s9403_s1 + $0x158] sm:$0xff] }
  0x5f   :  { %1386 = vmatprep.subr.bf16.mxu0 %v6039_v16  ;;  %1492 = vmatprep.subr.bf16.mxu1 %v6041_v18  ;;  %v117_v16 = vld [vmem:[%s9403_s1 + $0x178] sm:$0xff]  ;;  %v5890_v18 = vcombine.low %v104_v2, %v108_v3  ;;  %v5899_v22 = vcombine.high %v112_v10, %v116_v11  ;;  %v5898_v26 = vcombine.low %v112_v10, %v116_v11  ;;  %v164_v2 = vld [vmem:[%s9403_s1 + $0x2f0] sm:$0xff] }
  0x60   :  { %v5900_v29 = vcombine.low %v113_v14, %v117_v16  ;;  %v172_v10 = vld [vmem:[%s9403_s1 + $0x330] sm:$0xff] }
  0x62   :  { %1387 = vmatpush1.bf16.msra.mxu0 %v6038_v20  ;;  %1493 = vmatpush1.bf16.msra.mxu1 %v6040_v23  ;;  %v124_v20 = vld [vmem:[%s9403_s1 + $0x1b0] sm:$0xff]  ;;  %v121_v23 = vld [vmem:[%s9403_s1 + $0x198] sm:$0xff] }
  0x63   :  { %1388 = vmatprep.subr.bf16.mxu0 %v6047_v24  ;;  %1494 = vmatprep.subr.bf16.mxu1 %v6049_v27  ;;  %v5901_v24 = vcombine.high %v113_v14, %v117_v16  ;;  %v128_v27 = vld [vmem:[%s9403_s1 + $0x1d0] sm:$0xff]  ;;  %v5907_v30 = vcombine.high %v120_v19, %v124_v20  ;;  %v173_v14 = vld [vmem:[%s9403_s1 + $0x338] sm:$0xff] }
  0x64   :  { %v5915_v39 = vcombine.high %v128_v27, %v132_v28  ;;  %v5914_v44 = vcombine.low %v128_v27, %v132_v28  ;;  %v188_v27 = vld [vmem:[%s9403_s1 + $0x3b0] sm:$0xff] }
  0x66   :  { %1389 = vmatpush1.bf16.msra.mxu0 %v6046_v31  ;;  %1495 = vmatpush1.bf16.msra.mxu1 %v6048_v34  ;;  %v129_v31 = vld [vmem:[%s9403_s1 + $0x1d8] sm:$0xff]  ;;  %v5906_v34 = vcombine.low %v120_v19, %v124_v20  ;;  %v180_v19 = vld [vmem:[%s9403_s1 + $0x370] sm:$0xff] }
  0x67   :  { %1531 = vmatprep.subr.bf16.mxu0 %v5859_v35  ;;  %1637 = vmatprep.subr.bf16.mxu1 %v5861_v41  ;;  %v136_v35 = vld [vmem:[%s9403_s1 + $0x210] sm:$0xff]  ;;  %v141_v41 = vld [vmem:[%s9403_s1 + $0x238] sm:$0xff] }
  0x68   :  { %v5923_v48 = vcombine.high %v136_v35, %v140_v36  ;;  %v5925_v53 = vcombine.high %v137_v40, %v141_v41  ;;  %v5922_v54 = vcombine.low %v136_v35, %v140_v36  ;;  %v5924_v57 = vcombine.low %v137_v40, %v141_v41  ;;  %v196_v35 = vld [vmem:[%s9403_s1 + $0x3f0] sm:$0xff]  ;;  %v197_v40 = vld [vmem:[%s9403_s1 + $0x3f8] sm:$0xff] }
  0x69   :  { %1405 = vmatmul.mubr.bf16.vlgmr.msra.gmra.mrb[0].mxu0 %v7800_v42  ;;  %1511 = vmatmul.mubr.bf16.vlgmr.msra.gmra.mrb[0].mxu1 %v7800_v42 }
  0x6a   :  { %1532 = vmatpush1.bf16.msra.mxu0 %v5858_v43  ;;  %1638 = vmatpush1.bf16.msra.mxu1 %v5860_v46  ;;  %v5917_v43 = vcombine.high %v129_v31, %v133_v32  ;;  %v148_v46 = vld [vmem:[%s9403_s1 + $0x270] sm:$0xff] }
  0x6b   :  { %1533 = vmatprep.subr.bf16.mxu0 %v5867_v47  ;;  %1639 = vmatprep.subr.bf16.mxu1 %v5869_v51  ;;  %v5916_v47 = vcombine.low %v129_v31, %v133_v32  ;;  %v149_v51 = vld [vmem:[%s9403_s1 + $0x278] sm:$0xff] }
  0x6c   :  { %6055 = vmatprep.mubr.msk.bf16.mxu0 %vm1312_vm0, %v7814_v52  ;;  %6057 = vmatprep.mubr.msk.bf16.mxu1 %vm1312_vm0, %v7814_v52  ;;  %v5933_v62 = vcombine.high %v145_v50, %v149_v51  ;;  %v5932_v3 = vcombine.low %v145_v50, %v149_v51  ;;  %v189_v31 = vld [vmem:[%s9403_s1 + $0x3b8] sm:$0xff] }
  0x6d   :  { %v205_v50 = vld [vmem:[%s9403_s1 + $0x438] sm:$0xff] }
  0x6e   :  { %1534 = vmatpush1.bf16.msra.mxu0 %v5866_v55  ;;  %1640 = vmatpush1.bf16.msra.mxu1 %v5868_v59  ;;  %v152_v55 = vld [vmem:[%s9403_s1 + $0x290] sm:$0xff]  ;;  %v5931_v59 = vcombine.high %v144_v45, %v148_v46 }
  0x6f   :  { %1535 = vmatprep.subr.bf16.mxu0 %v5875_v60  ;;  %1641 = vmatprep.subr.bf16.mxu1 %v5877_v63  ;;  %v153_v60 = vld [vmem:[%s9403_s1 + $0x298] sm:$0xff]  ;;  %v5930_v63 = vcombine.low %v144_v45, %v148_v46  ;;  %v204_v45 = vld [vmem:[%s9403_s1 + $0x430] sm:$0xff] }
  0x70   :  { %v5941_v7 = vcombine.high %v153_v60, %v157_v61  ;;  %v5940_v11 = vcombine.low %v153_v60, %v157_v61  ;;  %v213_v60 = vld [vmem:[%s9403_s1 + $0x478] sm:$0xff] }
  0x71   :  { %1415 = vmatmul.mubr.bf16.gmra.mrb[4].mxu0 %v7840_v0  ;;  %1521 = vmatmul.mubr.bf16.gmra.mrb[4].mxu1 %v7840_v0 }
  0x72   :  { %1536 = vmatpush1.bf16.msra.mxu0 %v5874_v1  ;;  %1642 = vmatpush1.bf16.msra.mxu1 %v5876_v4  ;;  %v160_v1 = vld [vmem:[%s9403_s1 + $0x2d0] sm:$0xff]  ;;  %v5939_v4 = vcombine.high %v152_v55, %v156_v56 }
  0x73   :  { %1537 = vmatprep.subr.bf16.mxu0 %v5883_v5  ;;  %1643 = vmatprep.subr.bf16.mxu1 %v5885_v8  ;;  %v161_v5 = vld [vmem:[%s9403_s1 + $0x2d8] sm:$0xff]  ;;  %v5938_v8 = vcombine.low %v152_v55, %v156_v56  ;;  %v212_v55 = vld [vmem:[%s9403_s1 + $0x470] sm:$0xff] }
  0x74   :  { %1563 = vmatprep.mubr.bf16.mxu0 %v7508_v58  ;;  %1669 = vmatprep.mubr.bf16.mxu1 %v7508_v58  ;;  %v125_v58 = vld [vmem:[%s9403_s1 + $0x1b8] sm:$0xff]  ;;  %v5949_v16 = vcombine.high %v161_v5, %v165_v6  ;;  %v5948_v20 = vcombine.low %v161_v5, %v165_v6 }
  0x75   :  { %v5909_v33 = vcombine.high %v121_v23, %v125_v58  ;;  %v5908_v37 = vcombine.low %v121_v23, %v125_v58  ;;  %v181_v23 = vld [vmem:[%s9403_s1 + $0x378] sm:$0xff] }
  0x76   :  { %1538 = vmatpush1.bf16.msra.mxu0 %v5882_v9  ;;  %1644 = vmatpush1.bf16.msra.mxu1 %v5884_v12  ;;  %v168_v9 = vld [vmem:[%s9403_s1 + $0x310] sm:$0xff]  ;;  %v5947_v12 = vcombine.high %v160_v1, %v164_v2  ;;  %v221_v5 = vld [vmem:[%s9403_s1 + $0x4b8] sm:$0xff] }
  0x77   :  { %1539 = vmatprep.subr.bf16.mxu0 %v5891_v13  ;;  %1645 = vmatprep.subr.bf16.mxu1 %v5893_v17  ;;  %v169_v13 = vld [vmem:[%s9403_s1 + $0x318] sm:$0xff]  ;;  %v5946_v17 = vcombine.low %v160_v1, %v164_v2  ;;  %v220_v1 = vld [vmem:[%s9403_s1 + $0x4b0] sm:$0xff] }
  0x78   :  { %v5957_v58 = vcombine.high %v169_v13, %v173_v14  ;;  %v5956_v28 = vcombine.low %v169_v13, %v173_v14 }
  0x7a   :  { %1540 = vmatpush1.bf16.msra.mxu0 %v5890_v18  ;;  %1646 = vmatpush1.bf16.msra.mxu1 %v5892_v21  ;;  %v176_v18 = vld [vmem:[%s9403_s1 + $0x350] sm:$0xff]  ;;  %v5955_v21 = vcombine.high %v168_v9, %v172_v10 }
  0x7b   :  { %1541 = vmatprep.subr.bf16.mxu0 %v5899_v22  ;;  %1647 = vmatprep.subr.bf16.mxu1 %v5901_v24  ;;  %v177_v22 = vld [vmem:[%s9403_s1 + $0x358] sm:$0xff]  ;;  %v5954_v24 = vcombine.low %v168_v9, %v172_v10  ;;  %v228_v9 = vld [vmem:[%s9403_s1 + $0x4f0] sm:$0xff] }
  0x7c   :  { %v5965_v32 = vcombine.high %v177_v22, %v181_v23  ;;  %v5964_v36 = vcombine.low %v177_v22, %v181_v23  ;;  %v240_v23 = vld [vmem:[%s9403_s1 + $0x550] sm:$0xff] }
  0x7e   :  { %1542 = vmatpush1.bf16.msra.mxu0 %v5898_v26  ;;  %1648 = vmatpush1.bf16.msra.mxu1 %v5900_v29  ;;  %v184_v26 = vld [vmem:[%s9403_s1 + $0x390] sm:$0xff]  ;;  %v5963_v29 = vcombine.high %v176_v18, %v180_v19 }
  0x7f   :  { %1543 = vmatprep.subr.bf16.mxu0 %v5907_v30  ;;  %1649 = vmatprep.subr.bf16.mxu1 %v5909_v33  ;;  %v185_v30 = vld [vmem:[%s9403_s1 + $0x398] sm:$0xff]  ;;  %v5962_v33 = vcombine.low %v176_v18, %v180_v19 }
  0x80   :  { %v5973_v41 = vcombine.high %v185_v30, %v189_v31  ;;  %v5972_v46 = vcombine.low %v185_v30, %v189_v31  ;;  %v248_v30 = vld [vmem:[%s9403_s1 + $0x590] sm:$0xff] }
  0x81   :  { %v252_v31 = vld [vmem:[%s9403_s1 + $0x5b0] sm:$0xff] }
  0x82   :  { %1544 = vmatpush1.bf16.msra.mxu0 %v5906_v34  ;;  %1650 = vmatpush1.bf16.msra.mxu1 %v5908_v37  ;;  %v192_v34 = vld [vmem:[%s9403_s1 + $0x3d0] sm:$0xff]  ;;  %v5971_v37 = vcombine.high %v184_v26, %v188_v27 }
  0x83   :  { %1545 = vmatprep.subr.bf16.mxu0 %v5915_v39  ;;  %1651 = vmatprep.subr.bf16.mxu1 %v5917_v43  ;;  %v193_v39 = vld [vmem:[%s9403_s1 + $0x3d8] sm:$0xff]  ;;  %v5970_v43 = vcombine.low %v184_v26, %v188_v27 }
  0x84   :  { %v5981_v51 = vcombine.high %v193_v39, %v197_v40  ;;  %v5980_v56 = vcombine.low %v193_v39, %v197_v40  ;;  %v241_v27 = vld [vmem:[%s9403_s1 + $0x558] sm:$0xff]  ;;  %v260_v39 = vld [vmem:[%s9403_s1 + $0x5f0] sm:$0xff] }
  0x86   :  { %1546 = vmatpush1.bf16.msra.mxu0 %v5914_v44  ;;  %1652 = vmatpush1.bf16.msra.mxu1 %v5916_v47  ;;  %v200_v44 = vld [vmem:[%s9403_s1 + $0x410] sm:$0xff]  ;;  %v5979_v47 = vcombine.high %v192_v34, %v196_v35 }
  0x87   :  { %1547 = vmatprep.subr.bf16.mxu0 %v5923_v48  ;;  %1653 = vmatprep.subr.bf16.mxu1 %v5925_v53  ;;  %v201_v48 = vld [vmem:[%s9403_s1 + $0x418] sm:$0xff]  ;;  %v5978_v53 = vcombine.low %v192_v34, %v196_v35 }
  0x88   :  { %v5989_v61 = vcombine.high %v201_v48, %v205_v50  ;;  %v5988_v2 = vcombine.low %v201_v48, %v205_v50  ;;  %v249_v34 = vld [vmem:[%s9403_s1 + $0x598] sm:$0xff]  ;;  %v268_v48 = vld [vmem:[%s9403_s1 + $0x630] sm:$0xff] }
  0x8a   :  { %1548 = vmatpush1.bf16.msra.mxu0 %v5922_v54  ;;  %1654 = vmatpush1.bf16.msra.mxu1 %v5924_v57  ;;  %v208_v54 = vld [vmem:[%s9403_s1 + $0x450] sm:$0xff]  ;;  %v5987_v57 = vcombine.high %v200_v44, %v204_v45 }
  0x8b   :  { %1549 = vmatprep.subr.bf16.mxu0 %v5931_v59  ;;  %1655 = vmatprep.subr.bf16.mxu1 %v5933_v62  ;;  %v209_v59 = vld [vmem:[%s9403_s1 + $0x458] sm:$0xff]  ;;  %v5986_v62 = vcombine.low %v200_v44, %v204_v45 }
  0x8c   :  { %v5997_v6 = vcombine.high %v209_v59, %v213_v60  ;;  %v5996_v10 = vcombine.low %v209_v59, %v213_v60  ;;  %v261_v45 = vld [vmem:[%s9403_s1 + $0x5f8] sm:$0xff] }
  0x8e   :  { %1550 = vmatpush1.bf16.msra.mxu0 %v5930_v63  ;;  %1656 = vmatpush1.bf16.msra.mxu1 %v5932_v3  ;;  %v216_v63 = vld [vmem:[%s9403_s1 + $0x490] sm:$0xff]  ;;  %v5995_v3 = vcombine.high %v208_v54, %v212_v55 }
  0x8f   :  { %1551 = vmatprep.subr.bf16.mxu0 %v5939_v4  ;;  %1657 = vmatprep.subr.bf16.mxu1 %v5941_v7  ;;  %v217_v4 = vld [vmem:[%s9403_s1 + $0x498] sm:$0xff]  ;;  %v5994_v7 = vcombine.low %v208_v54, %v212_v55  ;;  %v6002_v14 = vcombine.low %v216_v63, %v220_v1 }
  0x90   :  { %v6005_v13 = vcombine.high %v217_v4, %v221_v5  ;;  %v6004_v18 = vcombine.low %v217_v4, %v221_v5  ;;  %v269_v55 = vld [vmem:[%s9403_s1 + $0x638] sm:$0xff]  ;;  %v6942_v4 = vld [vmem:[%s9405_s3 + $0x50] sm:$0xff]  }
  0x91   :  { %v6944_v5 = vld [vmem:[%s9405_s3 + $0x58] sm:$0xff]  }
  0x92   :  { %1552 = vmatpush1.bf16.msra.mxu0 %v5938_v8  ;;  %1658 = vmatpush1.bf16.msra.mxu1 %v5940_v11  ;;  %v224_v8 = vld [vmem:[%s9403_s1 + $0x4d0] sm:$0xff]  ;;  %v6003_v11 = vcombine.high %v216_v63, %v220_v1  ;;  %v6939_v1 = vld [vmem:[%s9405_s3] sm:$0xff]  }
  0x93   :  { %1553 = vmatprep.subr.bf16.mxu0 %v5947_v12  ;;  %1659 = vmatprep.subr.bf16.mxu1 %v5949_v16  ;;  %v225_v12 = vld [vmem:[%s9403_s1 + $0x4d8] sm:$0xff]  ;;  %v232_v16 = vld [vmem:[%s9403_s1 + $0x510] sm:$0xff]  ;;  %v6011_v19 = vcombine.high %v224_v8, %v228_v9  ;;  %v6010_v22 = vcombine.low %v224_v8, %v228_v9  ;;  %v6948_v8 = vld [vmem:[%s9405_s3 + $0x68] sm:$0xff]  }
  0x94   :  { %v6950_v9 = vld [vmem:[%s9405_s3 + $0x70] sm:$0xff]  }
  0x96   :  { %1554 = vmatpush1.bf16.msra.mxu0 %v5946_v17  ;;  %1660 = vmatpush1.bf16.msra.mxu1 %v5948_v20  ;;  %v236_v17 = vld [vmem:[%s9403_s1 + $0x530] sm:$0xff]  ;;  %v233_v20 = vld [vmem:[%s9403_s1 + $0x518] sm:$0xff] }
  0x97   :  { %1555 = vmatprep.subr.bf16.mxu0 %v5955_v21  ;;  %1661 = vmatprep.subr.bf16.mxu1 %v5957_v58  ;;  %v244_v58 = vld [vmem:[%s9403_s1 + $0x570] sm:$0xff]  ;;  %v6019_v26 = vcombine.high %v232_v16, %v236_v17 }
  0x9a   :  { %1556 = vmatpush1.bf16.msra.mxu0 %v5954_v24  ;;  %1662 = vmatpush1.bf16.msra.mxu1 %v5956_v28  ;;  %v245_v28 = vld [vmem:[%s9403_s1 + $0x578] sm:$0xff] }
  0x9b   :  { %1557 = vmatprep.subr.bf16.mxu0 %v5963_v29  ;;  %1663 = vmatprep.subr.bf16.mxu1 %v5965_v32  ;;  %v6029_v35 = vcombine.high %v241_v27, %v245_v28  ;;  %v6028_v40 = vcombine.low %v241_v27, %v245_v28 }
  0x9e   :  { %1558 = vmatpush1.bf16.msra.mxu0 %v5962_v33  ;;  %1664 = vmatpush1.bf16.msra.mxu1 %v5964_v36  ;;  %v6027_v33 = vcombine.high %v240_v23, %v244_v58  ;;  %v6026_v36 = vcombine.low %v240_v23, %v244_v58  ;;  %v6990_v23 = vld [vmem:[%s9405_s3 + $0x168] sm:$0xff]  }
  0x9f   :  { %1559 = vmatprep.subr.bf16.mxu0 %v5971_v37  ;;  %1665 = vmatprep.subr.bf16.mxu1 %v5973_v41  ;;  %v256_v37 = vld [vmem:[%s9403_s1 + $0x5d0] sm:$0xff]  ;;  %v6035_v41 = vcombine.high %v248_v30, %v252_v31 }
  0xa2   :  { %1560 = vmatpush1.bf16.msra.mxu0 %v5970_v43  ;;  %1666 = vmatpush1.bf16.msra.mxu1 %v5972_v46  ;;  %v257_v43 = vld [vmem:[%s9403_s1 + $0x5d8] sm:$0xff]  ;;  %v6034_v46 = vcombine.low %v248_v30, %v252_v31 }
  0xa3   :  { %1561 = vmatprep.subr.bf16.mxu0 %v5979_v47  ;;  %1667 = vmatprep.subr.bf16.mxu1 %v5981_v51  ;;  %v264_v47 = vld [vmem:[%s9403_s1 + $0x610] sm:$0xff]  ;;  %v6043_v51 = vcombine.high %v256_v37, %v260_v39  ;;  %v6045_v54 = vcombine.high %v257_v43, %v261_v45 }
  0xa4   :  { %v6051_v59 = vcombine.high %v264_v47, %v268_v48 }
  0xa6   :  { %1562 = vmatpush1.bf16.msra.mxu0 %v5978_v53  ;;  %1668 = vmatpush1.bf16.msra.mxu1 %v5980_v56  ;;  %v265_v53 = vld [vmem:[%s9403_s1 + $0x618] sm:$0xff]  ;;  %v6042_v56 = vcombine.low %v256_v37, %v260_v39 }
  0xa7   :  { %1584 = vmatprep.subr.bf16.mxu0 %v5987_v57  ;;  %1690 = vmatprep.subr.bf16.mxu1 %v5989_v61  ;;  %v6044_v57 = vcombine.low %v257_v43, %v261_v45  ;;  %v6053_v60 = vcombine.high %v265_v53, %v269_v55  ;;  %v6050_v61 = vcombine.low %v264_v47, %v268_v48 }
  0xa8   :  { %v6052_v63 = vcombine.low %v265_v53, %v269_v55 }
  0xa9   :  { %1564 = vmatmul.mubr.bf16.vlgmr.msra.gmra.mrb[8].mxu0 %v7641_v15  ;;  %1670 = vmatmul.mubr.bf16.vlgmr.msra.gmra.mrb[8].mxu1 %v7641_v15  ;;  %v229_v15 = vld [vmem:[%s9403_s1 + $0x4f8] sm:$0xff] }
  0xaa   :  { %1585 = vmatpush1.bf16.msra.mxu0 %v5986_v62  ;;  %1691 = vmatpush1.bf16.msra.mxu1 %v5988_v2  ;;  %v6013_v21 = vcombine.high %v225_v12, %v229_v15  ;;  %v6012_v24 = vcombine.low %v225_v12, %v229_v15  ;;  %v6938_v62 = vld [vmem:[%s9405_s3 + $0x40] sm:$0xff]   ;;  %v6940_v2 = vld [vmem:[%s9405_s3 + $0x48] sm:$0xff]   ;;  %v6953_v12 = vld [vmem:[%s9405_s3 + $0x38] sm:$0xff]  }
  0xab   :  { %1586 = vmatprep.subr.bf16.mxu0 %v5995_v3  ;;  %1692 = vmatprep.subr.bf16.mxu1 %v5997_v6  ;;  %v6941_v3 = vld [vmem:[%s9405_s3 + $0x8] sm:$0xff]   ;;  %v6946_v6 = vld [vmem:[%s9405_s3 + $0x60] sm:$0xff]  }
  0xac   :  { %1573 = vmatprep.mubr.bf16.mxu0 %v7658_v25  ;;  %1679 = vmatprep.mubr.bf16.mxu1 %v7658_v25  ;;  %v237_v25 = vld [vmem:[%s9403_s1 + $0x538] sm:$0xff]  ;;  %v6954_v15 = vld [vmem:[%s9405_s3 + $0xc0] sm:$0xff]  }
  0xad   :  { %v6021_v29 = vcombine.high %v233_v20, %v237_v25  ;;  %v6020_v32 = vcombine.low %v233_v20, %v237_v25  ;;  %v6982_v20 = vld [vmem:[%s9405_s3 + $0x158] sm:$0xff]  }
  0xae   :  { %1587 = vmatpush1.bf16.msra.mxu0 %v5994_v7  ;;  %1693 = vmatpush1.bf16.msra.mxu1 %v5996_v10  ;;  %v6947_v7 = vld [vmem:[%s9405_s3 + $0x20] sm:$0xff]   ;;  %v6951_v10 = vld [vmem:[%s9405_s3 + $0x30] sm:$0xff]   ;;  %v6984_v25 = vld [vmem:[%s9405_s3 + $0x118] sm:$0xff]  }
  0xaf   :  { %1588 = vmatprep.subr.bf16.mxu0 %v6003_v11  ;;  %1694 = vmatprep.subr.bf16.mxu1 %v6005_v13  ;;  %v6952_v11 = vld [vmem:[%s9405_s3 + $0x78] sm:$0xff]   ;;  %v6970_v13 = vld [vmem:[%s9405_s3 + $0x140] sm:$0xff]  }
  0xb1   :  { %1574 = vmatmul.mubr.bf16.gmra.mrb[12].mxu0 %v7688_v38  ;;  %1680 = vmatmul.mubr.bf16.gmra.mrb[12].mxu1 %v7688_v38  ;;  %v6018_v38 = vcombine.low %v232_v16, %v236_v17  ;;  %v6974_v16 = vld [vmem:[%s9405_s3 + $0x148] sm:$0xff]  }
  0xb2   :  { %1589 = vmatpush1.bf16.msra.mxu0 %v6002_v14  ;;  %1695 = vmatpush1.bf16.msra.mxu1 %v6004_v18  ;;  %v6972_v14 = vld [vmem:[%s9405_s3 + $0x100] sm:$0xff]   ;;  %v6976_v17 = vld [vmem:[%s9405_s3 + $0x108] sm:$0xff]   ;;  %v6978_v18 = vld [vmem:[%s9405_s3 + $0x150] sm:$0xff]  }
  0xb3   :  { %1590 = vmatprep.subr.bf16.mxu0 %v6011_v19  ;;  %1696 = vmatprep.subr.bf16.mxu1 %v6013_v21  ;;  %v6980_v19 = vld [vmem:[%s9405_s3 + $0x110] sm:$0xff]   ;;  %v6986_v21 = vld [vmem:[%s9405_s3 + $0x160] sm:$0xff]  }
  0xb4   :  { %6058 = vmatprep.mubr.msk.bf16.mxu0 %vm1312_vm0, %v7708_v49  ;;  %6060 = vmatprep.mubr.msk.bf16.mxu1 %vm1312_vm0, %v7708_v49  ;;  %v253_v49 = vld [vmem:[%s9403_s1 + $0x5b8] sm:$0xff] }
  0xb5   :  { %v6037_v44 = vcombine.high %v249_v34, %v253_v49  ;;  %v6036_v50 = vcombine.low %v249_v34, %v253_v49 }
  0xb6   :  { %1591 = vmatpush1.bf16.msra.mxu0 %v6010_v22  ;;  %1697 = vmatpush1.bf16.msra.mxu1 %v6012_v24  ;;  %v6988_v22 = vld [vmem:[%s9405_s3 + $0x120] sm:$0xff]  }
  0xb7   :  { %1592 = vmatprep.subr.bf16.mxu0 %v6019_v26  ;;  %1698 = vmatprep.subr.bf16.mxu1 %v6021_v29 }
  0xba   :  { %1593 = vmatpush1.bf16.msra.mxu0 %v6018_v38  ;;  %1699 = vmatpush1.bf16.msra.mxu1 %v6020_v32 }
  0xbb   :  { %1594 = vmatprep.subr.bf16.mxu0 %v6027_v33  ;;  %1700 = vmatprep.subr.bf16.mxu1 %v6029_v35 }
  0xbe   :  { %1595 = vmatpush1.bf16.msra.mxu0 %v6026_v36  ;;  %1701 = vmatpush1.bf16.msra.mxu1 %v6028_v40 }
  0xbf   :  { %1596 = vmatprep.subr.bf16.mxu0 %v6035_v41  ;;  %1702 = vmatprep.subr.bf16.mxu1 %v6037_v44 }
  0xc2   :  { %1597 = vmatpush1.bf16.msra.mxu0 %v6034_v46  ;;  %1703 = vmatpush1.bf16.msra.mxu1 %v6036_v50 }
  0xc3   :  { %1598 = vmatprep.subr.bf16.mxu0 %v6043_v51  ;;  %1704 = vmatprep.subr.bf16.mxu1 %v6045_v54 }
  0xc6   :  { %1599 = vmatpush1.bf16.msra.mxu0 %v6042_v56  ;;  %1705 = vmatpush1.bf16.msra.mxu1 %v6044_v57 }
  0xc7   :  { %1600 = vmatprep.subr.bf16.mxu0 %v6051_v59  ;;  %1706 = vmatprep.subr.bf16.mxu1 %v6053_v60 }
  0xca   :  { %1601 = vmatpush1.bf16.msra.mxu0 %v6050_v61  ;;  %1707 = vmatpush1.bf16.msra.mxu1 %v6052_v63 }
  0xcb   :  { %6429 = vmatprep.subr.bf16.mxu1 %v6938_v62  ;;  %6485 = vmatprep.subr.bf16.mxu0 %v6970_v13 }
  0xcd   :  { %1617 = vmatmul.mubr.bf16.vlgmr.msra.gmra.mrb[8].mxu0 %v7800_v42  ;;  %1723 = vmatmul.mubr.bf16.vlgmr.msra.gmra.mrb[8].mxu1 %v7800_v42  ;;  %v6943_v42 = vld [vmem:[%s9405_s3 + $0x10] sm:$0xff]  }
  0xce   :  { %6059 = vmatprep.mubr.msk.bf16.mxu0 %vm1312_vm0, %v7814_v52  ;;  %6061 = vmatprep.mubr.msk.bf16.mxu1 %vm1312_vm0, %v7814_v52  ;;  %v6945_v52 = vld [vmem:[%s9405_s3 + $0x18] sm:$0xff]  }
  0xcf   :  { %6430 = vmatpush3.bf16.msra.mxu1 %v6939_v1  ;;  %6486 = vmatpush3.bf16.msra.mxu0 %v6972_v14 }
  0xd0   :  { %6431 = vmatprep.subr.bf16.mxu1 %v6940_v2  ;;  %6487 = vmatprep.subr.bf16.mxu0 %v6974_v16 }
  0xd3   :  { %6432 = vmatpush3.bf16.msra.mxu1 %v6941_v3  ;;  %6488 = vmatpush3.bf16.msra.mxu0 %v6976_v17 }
  0xd4   :  { %6433 = vmatprep.subr.bf16.mxu1 %v6942_v4  ;;  %6489 = vmatprep.subr.bf16.mxu0 %v6978_v18 }
  0xd5   :  { %1627 = vmatmul.mubr.bf16.gmra.mrb[12].mxu0 %v7840_v0  ;;  %1733 = vmatmul.mubr.bf16.gmra.mrb[12].mxu1 %v7840_v0  ;;  %v6949_v0 = vld [vmem:[%s9405_s3 + $0x28] sm:$0xff]  }
  0xd7   :  { %6434 = vmatpush3.bf16.msra.mxu1 %v6943_v42  ;;  %6490 = vmatpush3.bf16.msra.mxu0 %v6980_v19 }
  0xd8   :  { %6435 = vmatprep.subr.bf16.mxu1 %v6944_v5  ;;  %6491 = vmatprep.subr.bf16.mxu0 %v6982_v20 }
  0xdb   :  { %6436 = vmatpush3.bf16.msra.mxu1 %v6945_v52  ;;  %6492 = vmatpush3.bf16.msra.mxu0 %v6984_v25 }
  0xdc   :  { %6437 = vmatprep.subr.bf16.mxu1 %v6946_v6  ;;  %6493 = vmatprep.subr.bf16.mxu0 %v6986_v21 }
  0xdf   :  { %6438 = vmatpush3.bf16.msra.mxu1 %v6947_v7  ;;  %6494 = vmatpush3.bf16.msra.mxu0 %v6988_v22 }
  0xe0   :  { %6439 = vmatprep.subr.bf16.mxu1 %v6948_v8 }
  0xe3   :  { %6440 = vmatpush3.bf16.msra.mxu1 %v6949_v0 }
  0xe4   :  { %6441 = vmatprep.subr.bf16.mxu1 %v6950_v9 }
  0xe7   :  { %6442 = vmatpush3.bf16.msra.mxu1 %v6951_v10 }
  0xe8   :  { %6443 = vmatprep.subr.bf16.mxu1 %v6952_v11 }
  0xeb   :  { %6444 = vmatpush3.bf16.msra.mxu1 %v6953_v12 }
  0xec   :  { %6457 = vmatprep.subr.bf16.mxu1 %v6954_v15 }
  0xed   :  { %18 = vsyncpa [#allocation4], 0  ;;  %6495 = vmatprep.subr.bf16.mxu0 %v6990_v23  ;;  %v6992_v58 = vld [vmem:[%s9405_s3 + $0x128] sm:$0xff]   ;;  %v6994_v24 = vld [vmem:[%s9405_s3 + $0x170] sm:$0xff]   ;;  %v272_v29 = vlaneseq  ;;  %vm7339_vm1 = vmmov 0   ;;  %vm2510_vm2 = vcmask 261120  }
  0xee   :  { %6496 = vmatpush3.bf16.msra.mxu0 %v6992_v58  ;;  %v6996_v26 = vld [vmem:[%s9405_s3 + $0x130] sm:$0xff]   ;;  %v6998_v27 = vld [vmem:[%s9405_s3 + $0x178] sm:$0xff]   ;;  %v8223_v31 = vld [vmem:[%s9404_s2] sm:$0xff]  ;;  %vm3749_vm3 = vcmask 523264   ;;  %s7341_s27 = smov [#allocation3]  }
  0xef   :  { %6497 = vmatprep.subr.bf16.mxu0 %v6994_v24  ;;  %v7000_v28 = vld [vmem:[%s9405_s3 + $0x138] sm:$0xff]   ;;  %v8215_v38 = vshrl.u32 %v272_v29, 7  ;;  %v6955_v6 = vld [vmem:[%s9405_s3 + $0x80] sm:$0xff]   ;;  %v6956_v10 = vld [vmem:[%s9405_s3 + $0xc8] sm:$0xff]   ;;  %s5846_s28 = sshll.u32 %s7341_s27, 4  ;;  %s5847_s28 = int_to_ptr.vmem [resolvable:$true] %s5846_s28 }
  0xf0   :  { %v6957_v21 = vld [vmem:[%s9405_s3 + $0x88] sm:$0xff]   ;;  %v6958_v24 = vld [vmem:[%s9405_s3 + $0xd0] sm:$0xff]   ;;  %p7319_p1 = scmp.lt.s32.totalorder %s5847_s28, %s5847_s28 }
  0xf1   :  { %v8218_v30 = vsub.s32 0, %v8215_v38  ;;  %v8226_v32 = vsub.s32 2, %v8215_v38  ;;  %v8229_v33 = vsub.s32 1, %v8215_v38  ;;  %v286_v34 = vsub.s32 3, %v8215_v38 }
  0xf2   :  { %6498 = vmatpush3.bf16.msra.mxu0 %v6996_v26 }
  0xf3   :  { %6499 = vmatprep.subr.bf16.mxu0 %v6998_v27  ;;  %v275_v49 = vrot.slane %v8223_v31, %v8218_v30  ;;  %v283_v35 = vrot.slane %v8223_v31, %v8226_v32  ;;  %v279_v36 = vrot.slane %v8223_v31, %v8229_v33  ;;  %v287_v37 = vrot.slane %v8223_v31, %v286_v34 }
  0xf6   :  { %6500 = vmatpush3.bf16.msra.mxu0 %v7000_v28 }
 0x13c   :  { %v1406_v39 = vpop.f32.mrb[0].mxu0  ;;  %v1512_v41 = vpop.f32.mrb[0].mxu1 }
 0x13d   :  { %v6856_v40 = vadd.f32 %v1406_v39, %v275_v49  ;;  %v1408_v43 = vpop.f32.mrb[1].mxu0  ;;  %v6864_v44 = vadd.f32 %v1512_v41, %v283_v35  ;;  %v1514_v46 = vpop.f32.mrb[1].mxu1  ;;  %v6959_v41 = vld [vmem:[%s9405_s3 + $0x90] sm:$0xff]  }
 0x13e   :  { %v6857_v45 = vadd.f32 %v1408_v43, %v279_v36  ;;  %v1410_v47 = vpop.f32.mrb[2].mxu0  ;;  %v6865_v48 = vadd.f32 %v1514_v46, %v287_v37  ;;  %v1516_v51 = vpop.f32.mrb[2].mxu1  ;;  %v6960_v43 = vld [vmem:[%s9405_s3 + $0xd8] sm:$0xff]   ;;  %v6963_v46 = vld [vmem:[%s9405_s3 + $0xa0] sm:$0xff]  }
 0x13f   :  { %v6858_v50 = vadd.f32 %v1410_v47, %v275_v49  ;;  %v1412_v53 = vpop.f32.mrb[3].mxu0  ;;  %v6866_v54 = vadd.f32 %v1516_v51, %v283_v35  ;;  %v1518_v56 = vpop.f32.mrb[3].mxu1  ;;  %v1743_v57 = vmax.f32 %v6856_v40, 0.0  ;;  %v1745_v61 = vmax.f32 %v6864_v44, 0.0  ;;  %v6961_v44 = vld [vmem:[%s9405_s3 + $0x98] sm:$0xff]   ;;  %v6964_v47 = vld [vmem:[%s9405_s3 + $0xe8] sm:$0xff]  }
 0x140   :  { %v6859_v55 = vadd.f32 %v1412_v53, %v279_v36  ;;  %v6867_v60 = vadd.f32 %v1518_v56, %v287_v37  ;;  %v1744_v62 = vmax.f32 %v6857_v45, 0.0  ;;  %v1746_v2 = vmax.f32 %v6865_v48, 0.0  ;;  %v6962_v45 = vld [vmem:[%s9405_s3 + $0xe0] sm:$0xff]   ;;  %v6965_v48 = vld [vmem:[%s9405_s3 + $0xa8] sm:$0xff]   ;;  %v6967_v51 = vld [vmem:[%s9405_s3 + $0xb0] sm:$0xff]  }
 0x141   :  { %v1751_v59 = vmax.f32 %v6858_v50, 0.0  ;;  %v1753_v63 = vmax.f32 %v6866_v54, 0.0  ;;  %v6966_v50 = vld [vmem:[%s9405_s3 + $0xf0] sm:$0xff]   ;;  %v6968_v53 = vld [vmem:[%s9405_s3 + $0xf8] sm:$0xff]   ;;  %v6973_v56 = vld [vmem:[%s9405_s3 + $0x180] sm:$0xff]  }
 0x142   :  { %v1752_v1 = vmax.f32 %v6859_v55, 0.0  ;;  %v1754_v4 = vmax.f32 %v6867_v60, 0.0  ;;  %v6969_v54 = vld [vmem:[%s9405_s3 + $0xb8] sm:$0xff]   ;;  %v6971_v55 = vld [vmem:[%s9405_s3 + $0x1c0] sm:$0xff]   ;;  %v6979_v60 = vld [vmem:[%s9405_s3 + $0x1d0] sm:$0xff]  }
 0x143   :  { %v1775_v3 = vpack.c.bf16 %v1751_v59, %v1743_v57  ;;  %v8241_v42 = vpack.c.bf16 %v1753_v63, %v1745_v61  ;;  %v6975_v57 = vld [vmem:[%s9405_s3 + $0x1c8] sm:$0xff]   ;;  %v6981_v61 = vld [vmem:[%s9405_s3 + $0x190] sm:$0xff]   ;;  %v6985_v63 = vld [vmem:[%s9405_s3 + $0x198] sm:$0xff]  }
 0x144   :  { %v1776_v5 = vpack.c.bf16 %v1752_v1, %v1744_v62  ;;  %v1416_v52 = vpop.f32.mrb[4].mxu0  ;;  %v1778_v7 = vpack.c.bf16 %v1754_v4, %v1746_v2  ;;  %v1522_v0 = vpop.f32.mrb[4].mxu1  ;;  %v6977_v59 = vld [vmem:[%s9405_s3 + $0x188] sm:$0xff]   ;;  %v6983_v62 = vld [vmem:[%s9405_s3 + $0x1d8] sm:$0xff]   ;;  %v6987_v1 = vld [vmem:[%s9405_s3 + $0x1e0] sm:$0xff]  }
 0x145   :  { %v6860_v8 = vadd.f32 %v1416_v52, %v275_v49  ;;  %v1418_v9 = vpop.f32.mrb[5].mxu0  ;;  %v6868_v11 = vadd.f32 %v1522_v0, %v283_v35  ;;  %v1524_v15 = vpop.f32.mrb[5].mxu1  ;;  %v6989_v2 = vld [vmem:[%s9405_s3 + $0x1a0] sm:$0xff]   ;;  %v6993_v4 = vld [vmem:[%s9405_s3 + $0x1a8] sm:$0xff]   ;;  %v6999_v52 = vld [vmem:[%s9405_s3 + $0x1f8] sm:$0xff]   ;;  %v294_v0 = vsub.s32 5, %v8215_v38 }
 0x146   :  { %v6861_v12 = vadd.f32 %v1418_v9, %v279_v36  ;;  %v1420_v13 = vpop.f32.mrb[6].mxu0  ;;  %2342 = vmatprep.mubr.bf16.mxu1 %v1776_v5  ;;  %v6869_v14 = vadd.f32 %v1524_v15, %v287_v37  ;;  %v1526_v17 = vpop.f32.mrb[6].mxu1  ;;  %v6997_v5 = vld [vmem:[%s9405_s3 + $0x1b0] sm:$0xff]   ;;  %v302_v9 = vsub.s32 7, %v8215_v38 }
 0x147   :  { %v6862_v16 = vadd.f32 %v1420_v13, %v275_v49  ;;  %v1422_v18 = vpop.f32.mrb[7].mxu0  ;;  %2343 = vmatmul.mubr.bf16.vlgmr.msra.gmra.mrb[16].mxu1 %v1775_v3  ;;  %v6870_v19 = vadd.f32 %v1526_v17, %v283_v35  ;;  %v1528_v25 = vpop.f32.mrb[7].mxu1  ;;  %v1759_v22 = vmax.f32 %v6860_v8, 0.0  ;;  %v1761_v26 = vmax.f32 %v6868_v11, 0.0  ;;  %v6991_v3 = vld [vmem:[%s9405_s3 + $0x1e8] sm:$0xff]  }
 0x148   :  { %v6863_v20 = vadd.f32 %v1422_v18, %v279_v36  ;;  %6458 = vmatpush3.bf16.msra.mxu1 %v6955_v6  ;;  %v6871_v58 = vadd.f32 %v1528_v25, %v287_v37  ;;  %v1760_v27 = vmax.f32 %v6861_v12, 0.0  ;;  %v1762_v49 = vmax.f32 %v6869_v14, 0.0  ;;  %v7001_v6 = vld [vmem:[%s9405_s3 + $0x1b8] sm:$0xff]  }
 0x149   :  { %v1767_v23 = vmax.f32 %v6862_v16, 0.0  ;;  %6459 = vmatprep.subr.bf16.mxu1 %v6956_v10  ;;  %v1769_v28 = vmax.f32 %v6870_v19, 0.0  ;;  %v298_v8 = vsub.s32 6, %v8215_v38  ;;  %v295_v12 = vrot.slane %v8223_v31, %v294_v0 }
 0x14a   :  { %v1768_v29 = vmax.f32 %v6863_v20, 0.0  ;;  %v1770_v36 = vmax.f32 %v6871_v58, 0.0  ;;  %v303_v15 = vrot.slane %v8223_v31, %v302_v9 }
 0x14b   :  { %v1783_v35 = vpack.c.bf16 %v1767_v23, %v1759_v22  ;;  %v1785_v39 = vpack.c.bf16 %v1769_v28, %v1761_v26  ;;  %v299_v11 = vrot.slane %v8223_v31, %v298_v8 }
 0x14c   :  { %v1784_v40 = vpack.c.bf16 %v1768_v29, %v1760_v27  ;;  %6460 = vmatpush3.bf16.msra.mxu1 %v6957_v21  ;;  %v1786_v37 = vpack.c.bf16 %v1770_v36, %v1762_v49 }
 0x14d   :  { %6461 = vmatprep.subr.bf16.mxu1 %v6958_v24 }
 0x14e   :  { %2350 = vmatprep.mubr.bf16.mxu1 %v1784_v40 }
 0x14f   :  { %2351 = vmatmul.mubr.bf16.gmra.mrb[20].mxu1 %v1783_v35 }
 0x150   :  { %6462 = vmatpush3.bf16.msra.mxu1 %v6959_v41  ;;  %2391 = vmatprep.mubr.bf16.mxu1 %v1778_v7  ;;  %v290_v7 = vsub.s32 4, %v8215_v38  ;;  %v7215_v38 = vld [vmem:[%s9411_s9 + $0x3ac] ss:$12 sps:$4 sm:$0xff]  }
 0x151   :  { %6463 = vmatprep.subr.bf16.mxu1 %v6960_v43 }
 0x152   :  { %v291_v10 = vrot.slane %v8223_v31, %v290_v7 }
 0x154   :  { %6464 = vmatpush3.bf16.msra.mxu1 %v6961_v44 }
 0x155   :  { %6465 = vmatprep.subr.bf16.mxu1 %v6962_v45 }
 0x158   :  { %6466 = vmatpush3.bf16.msra.mxu1 %v6963_v46 }
 0x159   :  { %6467 = vmatprep.subr.bf16.mxu1 %v6964_v47 }
 0x15c   :  { %6468 = vmatpush3.bf16.msra.mxu1 %v6965_v48 }
 0x15d   :  { %6469 = vmatprep.subr.bf16.mxu1 %v6966_v50 }
 0x160   :  { %6470 = vmatpush3.bf16.msra.mxu1 %v6967_v51 }
 0x161   :  { %6471 = vmatprep.subr.bf16.mxu1 %v6968_v53 }
 0x164   :  { %6472 = vmatpush3.bf16.msra.mxu1 %v6969_v54 }
 0x165   :  { %6513 = vmatprep.subr.bf16.mxu1 %v6971_v55 }
 0x167   :  { %2392 = vmatmul.mubr.bf16.vlgmr.msra.gmra.mrb[24].mxu1 %v8241_v42  ;;  %v6995_v42 = vld [vmem:[%s9405_s3 + $0x1f0] sm:$0xff]  }
 0x168   :  { %2399 = vmatprep.mubr.bf16.mxu1 %v1786_v37  ;;  %6514 = vmatpush3.bf16.msra.mxu1 %v6973_v56 }
 0x169   :  { %6515 = vmatprep.subr.bf16.mxu1 %v6975_v57 }
 0x16c   :  { %6516 = vmatpush3.bf16.msra.mxu1 %v6977_v59 }
 0x16d   :  { %6517 = vmatprep.subr.bf16.mxu1 %v6979_v60 }
 0x16f   :  { %2400 = vmatmul.mubr.bf16.gmra.mrb[28].mxu1 %v1785_v39 }
 0x170   :  { %6518 = vmatpush3.bf16.msra.mxu1 %v6981_v61 }
 0x171   :  { %6519 = vmatprep.subr.bf16.mxu1 %v6983_v62 }
 0x174   :  { %6520 = vmatpush3.bf16.msra.mxu1 %v6985_v63 }
 0x175   :  { %6521 = vmatprep.subr.bf16.mxu1 %v6987_v1 }
 0x178   :  { %6522 = vmatpush3.bf16.msra.mxu1 %v6989_v2 }
 0x179   :  { %6523 = vmatprep.subr.bf16.mxu1 %v6991_v3 }
 0x17c   :  { %6524 = vmatpush3.bf16.msra.mxu1 %v6993_v4 }
 0x17d   :  { %6525 = vmatprep.subr.bf16.mxu1 %v6995_v42 }
 0x180   :  { %6526 = vmatpush3.bf16.msra.mxu1 %v6997_v5 }
 0x181   :  { %6527 = vmatprep.subr.bf16.mxu1 %v6999_v52 }
 0x184   :  { %6528 = vmatpush3.bf16.msra.mxu1 %v7001_v6 }
 0x1a0   :  { %v1618_v13 = vpop.f32.mrb[8].mxu0  ;;  %v1724_v16 = vpop.f32.mrb[8].mxu1 }
 0x1a1   :  { %v6872_v14 = vadd.f32 %v1618_v13, %v291_v10  ;;  %v1620_v17 = vpop.f32.mrb[9].mxu0  ;;  %v6880_v18 = vadd.f32 %v1724_v16, %v299_v11  ;;  %v1726_v20 = vpop.f32.mrb[9].mxu1 }
 0x1a2   :  { %v6873_v19 = vadd.f32 %v1620_v17, %v295_v12  ;;  %v1622_v25 = vpop.f32.mrb[10].mxu0  ;;  %v6881_v21 = vadd.f32 %v1726_v20, %v303_v15  ;;  %v1728_v23 = vpop.f32.mrb[10].mxu1 }
 0x1a3   :  { %v6874_v22 = vadd.f32 %v1622_v25, %v291_v10  ;;  %v1624_v58 = vpop.f32.mrb[11].mxu0  ;;  %v6882_v24 = vadd.f32 %v1728_v23, %v299_v11  ;;  %v1730_v27 = vpop.f32.mrb[11].mxu1  ;;  %v1747_v28 = vmax.f32 %v6872_v14, 0.0  ;;  %v1749_v35 = vmax.f32 %v6880_v18, 0.0  ;;  %v7004_v18 = vld [vmem:[%s9407_s5 + $0x18] sm:$0xff]  }
 0x1a4   :  { %v6875_v26 = vadd.f32 %v1624_v58, %v295_v12  ;;  %v6883_v49 = vadd.f32 %v1730_v27, %v303_v15  ;;  %v1748_v31 = vmax.f32 %v6873_v19, 0.0  ;;  %v1750_v40 = vmax.f32 %v6881_v21, 0.0  ;;  %v7005_v19 = vld [vmem:[%s9407_s5 + $0x8] sm:$0xff]  }
 0x1a5   :  { %v1755_v29 = vmax.f32 %v6874_v22, 0.0  ;;  %v1757_v36 = vmax.f32 %v6882_v24, 0.0 }
 0x1a6   :  { %v1756_v39 = vmax.f32 %v6875_v26, 0.0  ;;  %v1758_v37 = vmax.f32 %v6883_v49, 0.0 }
 0x1a7   :  { %v1779_v41 = vpack.c.bf16 %v1755_v29, %v1747_v28  ;;  %v1781_v43 = vpack.c.bf16 %v1757_v36, %v1749_v35  ;;  %v6062_v35 = vld [vmem:[%s9406_s4] ss:$0 sm:$0xff] }
 0x1a8   :  { %v1780_v44 = vpack.c.bf16 %v1756_v39, %v1748_v31  ;;  %v1628_v45 = vpop.f32.mrb[12].mxu0  ;;  %v1782_v46 = vpack.c.bf16 %v1758_v37, %v1750_v40  ;;  %v1734_v48 = vpop.f32.mrb[12].mxu1 }
 0x1a9   :  { %v6876_v47 = vadd.f32 %v1628_v45, %v291_v10  ;;  %v1630_v50 = vpop.f32.mrb[13].mxu0  ;;  %v6884_v51 = vadd.f32 %v1734_v48, %v299_v11  ;;  %v1736_v54 = vpop.f32.mrb[13].mxu1 }
 0x1aa   :  { %v6877_v53 = vadd.f32 %v1630_v50, %v295_v12  ;;  %v1632_v55 = vpop.f32.mrb[14].mxu0  ;;  %2440 = vmatprep.mubr.bf16.mxu0 %v1780_v44  ;;  %v6885_v56 = vadd.f32 %v1736_v54, %v303_v15  ;;  %v1738_v59 = vpop.f32.mrb[14].mxu1  ;;  %2489 = vmatprep.mubr.bf16.mxu1 %v1782_v46 }
 0x1ab   :  { %v6878_v57 = vadd.f32 %v1632_v55, %v291_v10  ;;  %v1634_v60 = vpop.f32.mrb[15].mxu0  ;;  %2441 = vmatmul.mubr.bf16.vlgmr.msra.gmra.mrb[16].mxu0 %v1779_v41  ;;  %v6886_v61 = vadd.f32 %v1738_v59, %v299_v11  ;;  %v1740_v63 = vpop.f32.mrb[15].mxu1  ;;  %2490 = vmatmul.mubr.bf16.vlgmr.msra.gmra.mrb[32].mxu1 %v1781_v43  ;;  %v1763_v1 = vmax.f32 %v6876_v47, 0.0  ;;  %v1765_v4 = vmax.f32 %v6884_v51, 0.0  ;;  %v7002_v11 = vld [vmem:[%s9407_s5 + $0x10] sm:$0xff]  }
 0x1ac   :  { %v6879_v62 = vadd.f32 %v1634_v60, %v295_v12  ;;  %v6887_v3 = vadd.f32 %v1740_v63, %v303_v15  ;;  %v1764_v42 = vmax.f32 %v6877_v53, 0.0  ;;  %v1766_v6 = vmax.f32 %v6885_v56, 0.0  ;;  %v7003_v12 = vld [vmem:[%s9407_s5] sm:$0xff]  }
 0x1ad   :  { %v1771_v2 = vmax.f32 %v6878_v57, 0.0  ;;  %v1773_v5 = vmax.f32 %v6886_v61, 0.0  ;;  %v7338_v15 = vmov 0.0  }
 0x1ae   :  { %v1772_v52 = vmax.f32 %v6879_v62, 0.0  ;;  %v1774_v14 = vmax.f32 %v6887_v3, 0.0  ;;  %6708 = vmatprep.subr.bf16.mxu0 %v7338_v15  ;;  %6716 = vmatprep.subr.bf16.mxu1 %v7338_v15 }
 0x1af   :  { %v1787_v13 = vpack.c.bf16 %v1771_v2, %v1763_v1  ;;  %v1789_v16 = vpack.c.bf16 %v1773_v5, %v1765_v4  ;;  %6709 = vmatpush3.bf16.msra.mxu0 %v7002_v11  ;;  %6717 = vmatpush3.bf16.msra.mxu1 %v7003_v12 }
 0x1b0   :  { %v1788_v10 = vpack.c.bf16 %v1772_v52, %v1764_v42  ;;  %v1790_v17 = vpack.c.bf16 %v1774_v14, %v1766_v6  ;;  %6710 = vmatprep.subr.bf16.mxu0 %v7338_v15  ;;  %6718 = vmatprep.subr.bf16.mxu1 %v7338_v15 }
 0x1b2   :  { %2448 = vmatprep.mubr.bf16.mxu0 %v1788_v10  ;;  %2497 = vmatprep.mubr.bf16.mxu1 %v1790_v17 }
 0x1b3   :  { %2449 = vmatmul.mubr.bf16.gmra.mrb[20].mxu0 %v1787_v13  ;;  %2498 = vmatmul.mubr.bf16.gmra.mrb[36].mxu1 %v1789_v16 }
 0x1b4   :  { %6711 = vmatpush3.bf16.msra.mxu0 %v7004_v18  ;;  %6719 = vmatpush3.bf16.msra.mxu1 %v7005_v19 }
 0x1b5   :  { %6724 = vmatprep.subr.bf16.mxu0 %v7338_v15  ;;  %6732 = vmatprep.subr.bf16.mxu1 %v7338_v15 }
 0x1b6   :  { %6712 = vmatprep.mubr.msk.bf16.mxu0 %vm7339_vm1, %v7338_v15  ;;  %6720 = vmatprep.mubr.msk.bf16.mxu1 %vm7339_vm1, %v7338_v15 }
 0x21a   :  { %v6445_v20 = vpop.f32.mrb[16].mxu1 }
 0x21b   :  { %v6446_v25 = vpop.f32.mrb[17].mxu1 }
 0x21c   :  { %v6447_v21 = vadd.f32 %v6446_v25, %v6445_v20  ;;  %v6448_v22 = vpop.f32.mrb[18].mxu1 }
 0x21d   :  { %v6449_v23 = vpop.f32.mrb[19].mxu1 }
 0x21e   :  { %v6450_v58 = vadd.f32 %v6449_v23, %v6448_v22  ;;  %v2345_v39 = vadd.f32 %v6447_v21, %v6062_v35 }
 0x220   :  { %v2348_v43 = vadd.f32 %v6450_v58, %v6062_v35 }
 0x222   :  { %v6451_v24 = vpop.f32.mrb[20].mxu1 }
 0x223   :  { %v6452_v26 = vpop.f32.mrb[21].mxu1 }
 0x224   :  { %v6453_v27 = vadd.f32 %v6452_v26, %v6451_v24  ;;  %v6454_v28 = vpop.f32.mrb[22].mxu1 }
 0x225   :  { %v6455_v29 = vpop.f32.mrb[23].mxu1 }
 0x226   :  { %v6456_v49 = vadd.f32 %v6455_v29, %v6454_v28  ;;  %v2353_v50 = vadd.f32 %v6453_v27, %v6062_v35 }
 0x228   :  { %v2356_v55 = vadd.f32 %v6456_v49, %v6062_v35 }
 0x23a   :  { %v6473_v31 = vpop.f32.mrb[24].mxu1 }
 0x23b   :  { %v6474_v36 = vpop.f32.mrb[25].mxu1 }
 0x23c   :  { %v6475_v40 = vadd.f32 %v6474_v36, %v6473_v31  ;;  %v6476_v41 = vpop.f32.mrb[26].mxu1  ;;  %v7006_v36 = vld [vmem:[%s9407_s5 + $0x20] sm:$0xff]  }
 0x23d   :  { %v6477_v37 = vpop.f32.mrb[27].mxu1 }
 0x23e   :  { %v2394_v44 = vadd.f32 %v6475_v40, %v2345_v39  ;;  %v6478_v45 = vadd.f32 %v6477_v37, %v6476_v41  ;;  %v7007_v41 = vld [vmem:[%s9407_s5 + $0x30] sm:$0xff]  }
 0x240   :  { %v2397_v46 = vadd.f32 %v6478_v45, %v2348_v43  ;;  %v7008_v45 = vld [vmem:[%s9407_s5 + $0x28] sm:$0xff]  }
 0x242   :  { %v6479_v47 = vpop.f32.mrb[28].mxu1 }
 0x243   :  { %v6480_v48 = vpop.f32.mrb[29].mxu1 }
 0x244   :  { %v6481_v51 = vadd.f32 %v6480_v48, %v6479_v47  ;;  %v6482_v53 = vpop.f32.mrb[30].mxu1 }
 0x245   :  { %v6483_v54 = vpop.f32.mrb[31].mxu1 }
 0x246   :  { %v2402_v56 = vadd.f32 %v6481_v51, %v2353_v50  ;;  %v6484_v57 = vadd.f32 %v6483_v54, %v6482_v53  ;;  %v7010_v50 = vld [vmem:[%s9407_s5 + $0x40] sm:$0xff]   ;;  %v7011_v51 = vld [vmem:[%s9407_s5 + $0x50] sm:$0xff]  }
 0x248   :  { %v2405_v59 = vadd.f32 %v6484_v57, %v2356_v55  ;;  %v7012_v55 = vld [vmem:[%s9407_s5 + $0x48] sm:$0xff]  }
 0x27e   :  { %v6501_v60 = vpop.f32.mrb[16].mxu0  ;;  %v6529_v61 = vpop.f32.mrb[32].mxu1 }
 0x27f   :  { %v6502_v62 = vpop.f32.mrb[17].mxu0  ;;  %v6530_v1 = vpop.f32.mrb[33].mxu1 }
 0x280   :  { %v6503_v63 = vadd.f32 %v6502_v62, %v6501_v60  ;;  %v6504_v2 = vpop.f32.mrb[18].mxu0  ;;  %v6531_v3 = vadd.f32 %v6530_v1, %v6529_v61  ;;  %v6532_v4 = vpop.f32.mrb[34].mxu1  ;;  %v7014_v60 = vld [vmem:[%s9407_s5 + $0x60] sm:$0xff]   ;;  %v7015_v61 = vld [vmem:[%s9407_s5 + $0x70] sm:$0xff]   ;;  %v7016_v1 = vld [vmem:[%s9407_s5 + $0x68] sm:$0xff]  }
 0x281   :  { %v6505_v42 = vpop.f32.mrb[19].mxu0  ;;  %v6533_v6 = vpop.f32.mrb[35].mxu1 }
 0x282   :  { %v2443_v5 = vadd.f32 %v6503_v63, %v2394_v44  ;;  %v6506_v52 = vadd.f32 %v6505_v42, %v6504_v2  ;;  %v6534_v13 = vadd.f32 %v6533_v6, %v6532_v4  ;;  %v7017_v2 = vld [vmem:[%s9407_s5 + $0x78] sm:$0xff]   ;;  %v7018_v42 = vld [vmem:[%s9407_s5 + $0x80] sm:$0xff]  }
 0x284   :  { %v2492_v14 = vadd.f32 %v6531_v3, %v2443_v5  ;;  %v2446_v16 = vadd.f32 %v6506_v52, %v2397_v46  ;;  %v7009_v46 = vld [vmem:[%s9407_s5 + $0x38] sm:$0xff]   ;;  %v7019_v5 = vld [vmem:[%s9407_s5 + $0x90] sm:$0xff]  }
 0x286   :  { %v2506_v10 = vmax.f32 %v2492_v14, 0.0  ;;  %v2495_v17 = vadd.f32 %v6534_v13, %v2446_v16  ;;  %v6507_v11 = vpop.f32.mrb[20].mxu0  ;;  %v6535_v12 = vpop.f32.mrb[36].mxu1  ;;  %v7020_v13 = vld [vmem:[%s9407_s5 + $0x88] sm:$0xff]   ;;  %v7021_v14 = vld [vmem:[%s9407_s5 + $0x98] sm:$0xff]  }
 0x287   :  { %v6508_v18 = vpop.f32.mrb[21].mxu0  ;;  %v6536_v25 = vpop.f32.mrb[37].mxu1 }
 0x288   :  { %2511 = vst.msk [vmem:[#allocation2] sm:$0xff] %vm2510_vm2, %v2506_v10  ;;  %v2507_v19 = vmax.f32 %v2495_v17, 0.0  ;;  %v6509_v20 = vadd.f32 %v6508_v18, %v6507_v11  ;;  %v6510_v21 = vpop.f32.mrb[22].mxu0  ;;  %v6537_v22 = vadd.f32 %v6536_v25, %v6535_v12  ;;  %v6538_v23 = vpop.f32.mrb[38].mxu1  ;;  %v7022_v17 = vld [vmem:[%s9407_s5 + $0xa0] sm:$0xff]   ;;  %v7023_v11 = vld [vmem:[%s9407_s5 + $0xb0] sm:$0xff]  }
 0x289   :  { %v6511_v58 = vpop.f32.mrb[23].mxu0  ;;  %v6539_v27 = vpop.f32.mrb[39].mxu1 }
 0x28a   :  { %2512 = vst.msk [vmem:[#allocation2 + $0x8] sm:$0xff] %vm2510_vm2, %v2507_v19  ;;  %v2451_v24 = vadd.f32 %v6509_v20, %v2402_v56  ;;  %v6512_v26 = vadd.f32 %v6511_v58, %v6510_v21  ;;  %v6540_v28 = vadd.f32 %v6539_v27, %v6538_v23  ;;  %v7013_v56 = vld [vmem:[%s9407_s5 + $0x58] sm:$0xff]   ;;  %v7024_v19 = vld [vmem:[%s9407_s5 + $0xa8] sm:$0xff]   ;;  %v7027_v23 = vld [vmem:[%s9407_s5 + $0xd0] sm:$0xff]  }
 0x28b   :  { %v7025_v20 = vld [vmem:[%s9407_s5 + $0xb8] sm:$0xff]  }
 0x28c   :  { %v2500_v29 = vadd.f32 %v6537_v22, %v2451_v24  ;;  %v2454_v49 = vadd.f32 %v6512_v26, %v2405_v59  ;;  %v7026_v22 = vld [vmem:[%s9407_s5 + $0xc0] sm:$0xff]   ;;  %v7028_v26 = vld [vmem:[%s9407_s5 + $0xc8] sm:$0xff]   ;;  %v7029_v27 = vld [vmem:[%s9407_s5 + $0xd8] sm:$0xff]  }
 0x28e   :  { %v2508_v35 = vmax.f32 %v2500_v29, 0.0  ;;  %v2503_v31 = vadd.f32 %v6540_v28, %v2454_v49  ;;  %v7030_v49 = vld [vmem:[%s9407_s5 + $0xe0] sm:$0xff]  }
 0x28f   :  { %v2521_v39 = vld [vmem:[#allocation2 + $0x2] sm:$0x3]  ;;  %v2515_v40 = vld [vmem:[#allocation2] sm:$0x3]  ;;  %v2637_v47 = vld [vmem:[#allocation2 + $0x4] sm:$0x3] }
 0x290   :  { %2513 = vst.msk [vmem:[#allocation2 + $0x10] sm:$0xff] %vm2510_vm2, %v2508_v35  ;;  %v2509_v37 = vmax.f32 %v2503_v31, 0.0  ;;  %v2522_v43 = vpack.c.bf16 %v2521_v39, %v2521_v39  ;;  %v2516_v44 = vpack.c.bf16 %v2515_v40, %v2515_v40  ;;  %v2699_v48 = vld [vmem:[#allocation2 + $0x6] sm:$0x3]  ;;  %v2638_v53 = vpack.c.bf16 %v2637_v47, %v2637_v47  ;;  %v7031_v35 = vld [vmem:[%s9407_s5 + $0xf0] sm:$0xff]   ;;  %v7032_v39 = vld [vmem:[%s9407_s5 + $0xe8] sm:$0xff]  }
 0x291   :  { %v2700_v54 = vpack.c.bf16 %v2699_v48, %v2699_v48  ;;  %v2761_v57 = vld [vmem:[#allocation2 + $0x8] sm:$0x3]  ;;  %v2823_v59 = vld [vmem:[#allocation2 + $0xa] sm:$0x3]  ;;  %v2885_v3 = vld [vmem:[#allocation2 + $0xc] sm:$0x3] }
 0x292   :  { %2514 = vst.msk [vmem:[#allocation2 + $0x18] sm:$0xff] %vm2510_vm2, %v2509_v37  ;;  %6713 = vmatmul.mubr.msk.bf16.vlgmr.msra.gmra.mrb[24].mxu0 %vm2510_vm2, %v2522_v43  ;;  %6721 = vmatmul.mubr.msk.bf16.vlgmr.msra.gmra.mrb[40].mxu1 %vm2510_vm2, %v2516_v44  ;;  %v2762_v62 = vpack.c.bf16 %v2761_v57, %v2761_v57  ;;  %v2824_v63 = vpack.c.bf16 %v2823_v59, %v2823_v59  ;;  %v2947_v4 = vld [vmem:[#allocation2 + $0xe] sm:$0x3]  ;;  %v7033_v40 = vld [vmem:[%s9407_s5 + $0xf8] sm:$0xff]  }
 0x293   :  { %6725 = vmatpush3.bf16.msra.mxu0 %v7006_v36  ;;  %6733 = vmatpush3.bf16.msra.mxu1 %v7007_v41  ;;  %v2886_v52 = vpack.c.bf16 %v2885_v3, %v2885_v3  ;;  %v2948_v6 = vpack.c.bf16 %v2947_v4, %v2947_v4  ;;  %v3516_v47 = vld [vmem:[%s9409_s7 + $0x8] sm:$0xff] }
 0x294   :  { %6726 = vmatprep.subr.bf16.mxu0 %v7338_v15  ;;  %6734 = vmatprep.subr.bf16.mxu1 %v7338_v15  ;;  %v3524_v57 = vld [vmem:[%s9409_s7 + $0x48] sm:$0xff] }
 0x295   :  { %6728 = vmatprep.mubr.msk.bf16.mxu0 %vm7339_vm1, %v7338_v15  ;;  %6736 = vmatprep.mubr.msk.bf16.mxu1 %vm7339_vm1, %v7338_v15  ;;  %v3532_v3 = vld [vmem:[%s9409_s7 + $0x88] sm:$0xff] }
 0x297   :  { %6727 = vmatpush3.bf16.msra.mxu0 %v7008_v45  ;;  %6735 = vmatpush3.bf16.msra.mxu1 %v7009_v46  ;;  %v3009_v16 = vld [vmem:[#allocation2 + $0x10] sm:$0x3]  ;;  %v3071_v10 = vld [vmem:[#allocation2 + $0x12] sm:$0x3]  ;;  %v3133_v25 = vld [vmem:[#allocation2 + $0x14] sm:$0x3] }
 0x298   :  { %6740 = vmatprep.subr.bf16.mxu0 %v7338_v15  ;;  %6748 = vmatprep.subr.bf16.mxu1 %v7338_v15  ;;  %v3010_v12 = vpack.c.bf16 %v3009_v16, %v3009_v16  ;;  %v3072_v18 = vpack.c.bf16 %v3071_v10, %v3071_v10  ;;  %v3195_v21 = vld [vmem:[#allocation2 + $0x16] sm:$0x3]  ;;  %v3134_v58 = vpack.c.bf16 %v3133_v25, %v3133_v25  ;;  %v3515_v45 = vld [vmem:[%s9409_s7] sm:$0xff]  ;;  %v3540_v16 = vld [vmem:[%s9409_s7 + $0xc8] sm:$0xff] }
 0x299   :  { %v3196_v24 = vpack.c.bf16 %v3195_v21, %v3195_v21  ;;  %v3257_v28 = vld [vmem:[#allocation2 + $0x18] sm:$0x3]  ;;  %v3319_v29 = vld [vmem:[#allocation2 + $0x1a] sm:$0x3]  ;;  %v3381_v41 = vld [vmem:[#allocation2 + $0x1c] sm:$0x3] }
 0x29a   :  { %6729 = vmatmul.mubr.msk.bf16.vlgmr.msra.gmra.mrb[28].mxu0 %vm2510_vm2, %v2638_v53  ;;  %6737 = vmatmul.mubr.msk.bf16.vlgmr.msra.gmra.mrb[44].mxu1 %vm2510_vm2, %v2700_v54  ;;  %v3258_v31 = vpack.c.bf16 %v3257_v28, %v3257_v28  ;;  %v3320_v36 = vpack.c.bf16 %v3319_v29, %v3319_v29  ;;  %v3443_v37 = vld [vmem:[#allocation2 + $0x1e] sm:$0x3]  ;;  %v3382_v43 = vpack.c.bf16 %v3381_v41, %v3381_v41  ;;  %v3519_v46 = vld [vmem:[%s9409_s7 + $0x20] sm:$0xff] }
 0x29b   :  { %6741 = vmatpush3.bf16.msra.mxu0 %v7010_v50  ;;  %6749 = vmatpush3.bf16.msra.mxu1 %v7011_v51  ;;  %v3444_v44 = vpack.c.bf16 %v3443_v37, %v3443_v37  ;;  %v6177_v48 = vcombine.high %v3515_v45, %v3519_v46  ;;  %v3520_v50 = vld [vmem:[%s9409_s7 + $0x28] sm:$0xff]  ;;  %v6176_v51 = vcombine.low %v3515_v45, %v3519_v46  ;;  %v8597_v25 = vld [vmem:[%s9409_s7 + $0x18] sm:$0xff] }
 0x29c   :  { %6742 = vmatprep.subr.bf16.mxu0 %v7338_v15  ;;  %6750 = vmatprep.subr.bf16.mxu1 %v7338_v15  ;;  %v6178_v53 = vcombine.low %v3516_v47, %v3520_v50  ;;  %v6179_v54 = vcombine.high %v3516_v47, %v3520_v50 }
 0x29d   :  { %6744 = vmatprep.mubr.msk.bf16.mxu0 %vm7339_vm1, %v7338_v15  ;;  %6752 = vmatprep.mubr.msk.bf16.mxu1 %vm7339_vm1, %v7338_v15 }
 0x29f   :  { %6743 = vmatpush3.bf16.msra.mxu0 %v7012_v55  ;;  %6751 = vmatpush3.bf16.msra.mxu1 %v7013_v56  ;;  %v3523_v55 = vld [vmem:[%s9409_s7 + $0x40] sm:$0xff] }
 0x2a0   :  { %6756 = vmatprep.subr.bf16.mxu0 %v7338_v15  ;;  %6764 = vmatprep.subr.bf16.mxu1 %v7338_v15  ;;  %v3527_v56 = vld [vmem:[%s9409_s7 + $0x60] sm:$0xff] }
 0x2a1   :  { %v6184_v59 = vcombine.low %v3523_v55, %v3527_v56 }
 0x2a2   :  { %6745 = vmatmul.mubr.msk.bf16.vlgmr.msra.gmra.mrb[32].mxu0 %vm2510_vm2, %v2762_v62  ;;  %6753 = vmatmul.mubr.msk.bf16.vlgmr.msra.gmra.mrb[48].mxu1 %vm2510_vm2, %v2824_v63 }
 0x2a3   :  { %6757 = vmatpush3.bf16.msra.mxu0 %v7014_v60  ;;  %6765 = vmatpush3.bf16.msra.mxu1 %v7015_v61  ;;  %v6185_v60 = vcombine.high %v3523_v55, %v3527_v56  ;;  %v3528_v61 = vld [vmem:[%s9409_s7 + $0x68] sm:$0xff] }
 0x2a4   :  { %6758 = vmatprep.subr.bf16.mxu0 %v7338_v15  ;;  %6766 = vmatprep.subr.bf16.mxu1 %v7338_v15  ;;  %v6186_v62 = vcombine.low %v3524_v57, %v3528_v61  ;;  %v6187_v63 = vcombine.high %v3524_v57, %v3528_v61 }
 0x2a5   :  { %6760 = vmatprep.mubr.msk.bf16.mxu0 %vm7339_vm1, %v7338_v15  ;;  %6768 = vmatprep.mubr.msk.bf16.mxu1 %vm7339_vm1, %v7338_v15 }
 0x2a7   :  { %6759 = vmatpush3.bf16.msra.mxu0 %v7016_v1  ;;  %6767 = vmatpush3.bf16.msra.mxu1 %v7017_v2  ;;  %v3531_v1 = vld [vmem:[%s9409_s7 + $0x80] sm:$0xff] }
 0x2a8   :  { %6772 = vmatprep.subr.bf16.mxu0 %v7338_v15  ;;  %6780 = vmatprep.subr.bf16.mxu1 %v7338_v15  ;;  %v3535_v2 = vld [vmem:[%s9409_s7 + $0xa0] sm:$0xff] }
 0x2a9   :  { %v6193_v4 = vcombine.high %v3531_v1, %v3535_v2 }
 0x2aa   :  { %6761 = vmatmul.mubr.msk.bf16.vlgmr.msra.gmra.mrb[36].mxu0 %vm2510_vm2, %v2886_v52  ;;  %6769 = vmatmul.mubr.msk.bf16.vlgmr.msra.gmra.mrb[52].mxu1 %vm2510_vm2, %v2948_v6 }
 0x2ab   :  { %6773 = vmatpush3.bf16.msra.mxu0 %v7018_v42  ;;  %6781 = vmatpush3.bf16.msra.mxu1 %v7019_v5  ;;  %v3536_v42 = vld [vmem:[%s9409_s7 + $0xa8] sm:$0xff]  ;;  %v6192_v5 = vcombine.low %v3531_v1, %v3535_v2 }
 0x2ac   :  { %6774 = vmatprep.subr.bf16.mxu0 %v7338_v15  ;;  %6782 = vmatprep.subr.bf16.mxu1 %v7338_v15  ;;  %v6194_v52 = vcombine.low %v3532_v3, %v3536_v42  ;;  %v6195_v6 = vcombine.high %v3532_v3, %v3536_v42 }
 0x2ad   :  { %6776 = vmatprep.mubr.msk.bf16.mxu0 %vm7339_vm1, %v7338_v15  ;;  %6784 = vmatprep.mubr.msk.bf16.mxu1 %vm7339_vm1, %v7338_v15 }
 0x2af   :  { %6775 = vmatpush3.bf16.msra.mxu0 %v7020_v13  ;;  %6783 = vmatpush3.bf16.msra.mxu1 %v7021_v14  ;;  %v3539_v13 = vld [vmem:[%s9409_s7 + $0xc0] sm:$0xff] }
 0x2b0   :  { %6788 = vmatprep.subr.bf16.mxu0 %v7338_v15  ;;  %6796 = vmatprep.subr.bf16.mxu1 %v7338_v15  ;;  %v3543_v14 = vld [vmem:[%s9409_s7 + $0xe0] sm:$0xff] }
 0x2b1   :  { %v6201_v10 = vcombine.high %v3539_v13, %v3543_v14 }
 0x2b2   :  { %6777 = vmatmul.mubr.msk.bf16.vlgmr.msra.gmra.mrb[40].mxu0 %vm2510_vm2, %v3010_v12  ;;  %6785 = vmatmul.mubr.msk.bf16.vlgmr.msra.gmra.mrb[56].mxu1 %vm2510_vm2, %v3072_v18 }
 0x2b3   :  { %6789 = vmatpush3.bf16.msra.mxu0 %v7022_v17  ;;  %6797 = vmatpush3.bf16.msra.mxu1 %v7023_v11  ;;  %v3544_v17 = vld [vmem:[%s9409_s7 + $0xe8] sm:$0xff]  ;;  %v6200_v11 = vcombine.low %v3539_v13, %v3543_v14 }
 0x2b4   :  { %6790 = vmatprep.subr.bf16.mxu0 %v7338_v15  ;;  %6798 = vmatprep.subr.bf16.mxu1 %v7338_v15  ;;  %v6202_v12 = vcombine.low %v3540_v16, %v3544_v17  ;;  %v6203_v18 = vcombine.high %v3540_v16, %v3544_v17 }
 0x2b5   :  { %6792 = vmatprep.mubr.msk.bf16.mxu0 %vm7339_vm1, %v7338_v15  ;;  %6800 = vmatprep.mubr.msk.bf16.mxu1 %vm7339_vm1, %v7338_v15 }
 0x2b7   :  { %6791 = vmatpush3.bf16.msra.mxu0 %v7024_v19  ;;  %6799 = vmatpush3.bf16.msra.mxu1 %v7025_v20  ;;  %v8587_v19 = vld [vmem:[%s9409_s7 + $0x10] sm:$0xff] }
 0x2b8   :  { %6804 = vmatprep.subr.bf16.mxu0 %v7338_v15  ;;  %6812 = vmatprep.subr.bf16.mxu1 %v7338_v15  ;;  %v8592_v20 = vld [vmem:[%s9409_s7 + $0x30] sm:$0xff] }
 0x2b9   :  { %v6180_v21 = vcombine.low %v8587_v19, %v8592_v20 }
 0x2ba   :  { %6793 = vmatmul.mubr.msk.bf16.vlgmr.msra.gmra.mrb[44].mxu0 %vm2510_vm2, %v3134_v58  ;;  %6801 = vmatmul.mubr.msk.bf16.vlgmr.msra.gmra.mrb[60].mxu1 %vm2510_vm2, %v3196_v24  ;;  %v7340_v58 = vmov 0  }
 0x2bb   :  { %6805 = vmatpush3.bf16.msra.mxu0 %v7026_v22  ;;  %6813 = vmatpush3.bf16.msra.mxu1 %v7027_v23  ;;  %v6181_v22 = vcombine.high %v8587_v19, %v8592_v20  ;;  %v8606_v23 = vld [vmem:[%s9409_s7 + $0x38] sm:$0xff] }
 0x2bc   :  { %6806 = vmatprep.subr.bf16.mxu0 %v7338_v15  ;;  %6814 = vmatprep.subr.bf16.mxu1 %v7338_v15  ;;  %v6182_v24 = vcombine.low %v8597_v25, %v8606_v23  ;;  %v3542_v19 = vld [vmem:[%s9409_s7 + $0xd8] sm:$0xff] }
 0x2bd   :  { %6808 = vmatprep.mubr.msk.bf16.mxu0 %vm7339_vm1, %v7338_v15  ;;  %6816 = vmatprep.mubr.msk.bf16.mxu1 %vm7339_vm1, %v7338_v15  ;;  %v3546_v20 = vld [vmem:[%s9409_s7 + $0xf8] sm:$0xff] }
 0x2bf   :  { %6807 = vmatpush3.bf16.msra.mxu0 %v7028_v26  ;;  %6815 = vmatpush3.bf16.msra.mxu1 %v7029_v27  ;;  %v6183_v26 = vcombine.high %v8597_v25, %v8606_v23 }
 0x2c0   :  { %6820 = vmatprep.subr.bf16.mxu0 %v7338_v15  ;;  %6828 = vmatprep.subr.bf16.mxu1 %v7338_v15 }
 0x2c2   :  { %6809 = vmatmul.mubr.msk.bf16.vlgmr.msra.gmra.mrb[48].mxu0 %vm2510_vm2, %v3258_v31  ;;  %6817 = vmatmul.mubr.msk.bf16.vlgmr.msra.gmra.mrb[64].mxu1 %vm2510_vm2, %v3320_v36 }
 0x2c3   :  { %6821 = vmatpush3.bf16.msra.mxu0 %v7030_v49  ;;  %6829 = vmatpush3.bf16.msra.mxu1 %v7031_v35 }
 0x2c4   :  { %6822 = vmatprep.subr.bf16.mxu0 %v7338_v15  ;;  %6830 = vmatprep.subr.bf16.mxu1 %v7338_v15 }
 0x2c5   :  { %6824 = vmatprep.mubr.msk.bf16.mxu0 %vm7339_vm1, %v7338_v15  ;;  %6832 = vmatprep.mubr.msk.bf16.mxu1 %vm7339_vm1, %v7338_v15 }
 0x2c7   :  { %6823 = vmatpush3.bf16.msra.mxu0 %v7032_v39  ;;  %6831 = vmatpush3.bf16.msra.mxu1 %v7033_v40 }
 0x2c8   :  { %3753 = vmatprep.subr.bf16.mxu0 %v6177_v48  ;;  %3794 = vmatprep.subr.bf16.mxu1 %v6179_v54 }
 0x2ca   :  { %6825 = vmatmul.mubr.msk.bf16.vlgmr.msra.gmra.mrb[52].mxu0 %vm2510_vm2, %v3382_v43  ;;  %6833 = vmatmul.mubr.msk.bf16.vlgmr.msra.gmra.mrb[68].mxu1 %vm2510_vm2, %v3444_v44 }
 0x2cb   :  { %3754 = vmatpush1.bf16.msra.mxu0 %v6176_v51  ;;  %3795 = vmatpush1.bf16.msra.mxu1 %v6178_v53 }
 0x2cc   :  { %3755 = vmatprep.subr.bf16.mxu0 %v6185_v60  ;;  %3796 = vmatprep.subr.bf16.mxu1 %v6187_v63 }
 0x2cd   :  { %3785 = vmatprep.mubr.bf16.mxu0 %v7340_v58  ;;  %3826 = vmatprep.mubr.bf16.mxu1 %v7340_v58 }
 0x2cf   :  { %3756 = vmatpush1.bf16.msra.mxu0 %v6184_v59  ;;  %3797 = vmatpush1.bf16.msra.mxu1 %v6186_v62 }
 0x2d0   :  { %3757 = vmatprep.subr.bf16.mxu0 %v6193_v4  ;;  %3798 = vmatprep.subr.bf16.mxu1 %v6195_v6 }
 0x2d3   :  { %3758 = vmatpush1.bf16.msra.mxu0 %v6192_v5  ;;  %3799 = vmatpush1.bf16.msra.mxu1 %v6194_v52 }
 0x2d4   :  { %3759 = vmatprep.subr.bf16.mxu0 %v6201_v10  ;;  %3800 = vmatprep.subr.bf16.mxu1 %v6203_v18 }
 0x2d7   :  { %3760 = vmatpush1.bf16.msra.mxu0 %v6200_v11  ;;  %3801 = vmatpush1.bf16.msra.mxu1 %v6202_v12 }
 0x2d8   :  { %3835 = vmatprep.subr.bf16.mxu0 %v6181_v22  ;;  %3876 = vmatprep.subr.bf16.mxu1 %v6183_v26 }
 0x365   :  { %v2576_v27 = vpop.f32.mrb[24].mxu0  ;;  %v2631_v28 = vpop.f32.mrb[40].mxu1 }
 0x366   :  { %v2632_v29 = vadd.f32 %v2631_v28, %v2576_v27  ;;  %v6714_v49 = vpop.f32.mrb[25].mxu0  ;;  %v6722_v35 = vpop.f32.mrb[41].mxu1 }
 0x367   :  { %v2579_v31 = vpop.f32.mrb[26].mxu0  ;;  %v2634_v36 = vpop.f32.mrb[42].mxu1 }
 0x368   :  { %v6715_v39 = vpop.f32.mrb[27].mxu0  ;;  %v6723_v40 = vpop.f32.mrb[43].mxu1 }
 0x36d   :  { %v2692_v41 = vpop.f32.mrb[28].mxu0  ;;  %v2754_v37 = vpop.f32.mrb[44].mxu1 }
 0x36e   :  { %v2698_v43 = vadd.f32 %v2692_v41, %v2632_v29  ;;  %v6730_v44 = vpop.f32.mrb[29].mxu0  ;;  %v6738_v45 = vpop.f32.mrb[45].mxu1 }
 0x36f   :  { %v2695_v46 = vpop.f32.mrb[30].mxu0  ;;  %v2757_v47 = vpop.f32.mrb[46].mxu1 }
 0x370   :  { %v2760_v48 = vadd.f32 %v2754_v37, %v2698_v43  ;;  %v6731_v50 = vpop.f32.mrb[31].mxu0  ;;  %v6739_v51 = vpop.f32.mrb[47].mxu1 }
 0x375   :  { %v2816_v53 = vpop.f32.mrb[32].mxu0  ;;  %v2878_v54 = vpop.f32.mrb[48].mxu1 }
 0x376   :  { %v2822_v55 = vadd.f32 %v2816_v53, %v2760_v48  ;;  %v6746_v56 = vpop.f32.mrb[33].mxu0  ;;  %v6754_v57 = vpop.f32.mrb[49].mxu1 }
 0x377   :  { %v2819_v59 = vpop.f32.mrb[34].mxu0  ;;  %v2881_v60 = vpop.f32.mrb[50].mxu1 }
 0x378   :  { %v2884_v61 = vadd.f32 %v2878_v54, %v2822_v55  ;;  %v6747_v62 = vpop.f32.mrb[35].mxu0  ;;  %v6755_v63 = vpop.f32.mrb[51].mxu1 }
 0x379   :  { %v6175_v62 = vld [vmem:[%s9408_s6] ss:$0 sm:$0xff] }
 0x37d   :  { %v2940_v1 = vpop.f32.mrb[36].mxu0  ;;  %v3002_v2 = vpop.f32.mrb[52].mxu1 }
 0x37e   :  { %v2946_v3 = vadd.f32 %v2940_v1, %v2884_v61  ;;  %v6762_v4 = vpop.f32.mrb[37].mxu0  ;;  %v6770_v42 = vpop.f32.mrb[53].mxu1 }
 0x37f   :  { %v2943_v5 = vpop.f32.mrb[38].mxu0  ;;  %v3005_v52 = vpop.f32.mrb[54].mxu1 }
 0x380   :  { %v3008_v6 = vadd.f32 %v3002_v2, %v2946_v3  ;;  %v6763_v13 = vpop.f32.mrb[39].mxu0  ;;  %v6771_v14 = vpop.f32.mrb[55].mxu1  ;;  %v3525_v5 = vld [vmem:[%s9409_s7 + $0x50] sm:$0xff] }
 0x381   :  { %v3529_v52 = vld [vmem:[%s9409_s7 + $0x70] sm:$0xff]  ;;  %v3530_v13 = vld [vmem:[%s9409_s7 + $0x78] sm:$0xff] }
 0x385   :  { %v3064_v16 = vpop.f32.mrb[40].mxu0  ;;  %v3126_v10 = vpop.f32.mrb[56].mxu1 }
 0x386   :  { %v3070_v17 = vadd.f32 %v3064_v16, %v3008_v6  ;;  %v6778_v11 = vpop.f32.mrb[41].mxu0  ;;  %v6786_v12 = vpop.f32.mrb[57].mxu1  ;;  %v3526_v6 = vld [vmem:[%s9409_s7 + $0x58] sm:$0xff] }
 0x387   :  { %v3067_v18 = vpop.f32.mrb[42].mxu0  ;;  %v3129_v22 = vpop.f32.mrb[58].mxu1  ;;  %v3533_v11 = vld [vmem:[%s9409_s7 + $0x90] sm:$0xff] }
 0x388   :  { %v3132_v26 = vadd.f32 %v3126_v10, %v3070_v17  ;;  %v6779_v27 = vpop.f32.mrb[43].mxu0  ;;  %v6787_v28 = vpop.f32.mrb[59].mxu1  ;;  %v6189_v10 = vcombine.high %v3525_v5, %v3529_v52  ;;  %v6191_v17 = vcombine.high %v3526_v6, %v3530_v13  ;;  %v3537_v12 = vld [vmem:[%s9409_s7 + $0xb0] sm:$0xff]  ;;  %v3534_v18 = vld [vmem:[%s9409_s7 + $0x98] sm:$0xff] }
 0x389   :  { %v3538_v22 = vld [vmem:[%s9409_s7 + $0xb8] sm:$0xff]  ;;  %v6190_v27 = vcombine.low %v3526_v6, %v3530_v13  ;;  %v6197_v28 = vcombine.high %v3533_v11, %v3537_v12  ;;  %v6196_v25 = vcombine.low %v3533_v11, %v3537_v12  ;;  %v7080_v11 = vld [vmem:[%s9411_s9 + $0x124] ss:$12 sps:$4 sm:$0xff]   ;;  %v7078_v12 = vld [vmem:[%s9411_s9 + $0x120] ss:$12 sps:$4 sm:$0xff]  }
 0x38a   :  { %v7065_v6 = vld [vmem:[%s9411_s9 + $0xdc] ss:$12 sps:$4 sm:$0xff]   ;;  %v7063_v13 = vld [vmem:[%s9411_s9 + $0xd8] ss:$12 sps:$4 sm:$0xff]  }
 0x38d   :  { %v3188_v29 = vpop.f32.mrb[44].mxu0  ;;  %v3250_v49 = vpop.f32.mrb[60].mxu1 }
 0x38e   :  { %v3194_v35 = vadd.f32 %v3188_v29, %v3132_v26  ;;  %v6794_v31 = vpop.f32.mrb[45].mxu0  ;;  %v6802_v36 = vpop.f32.mrb[61].mxu1  ;;  %v6188_v26 = vcombine.low %v3525_v5, %v3529_v52  ;;  %v6199_v29 = vcombine.high %v3534_v18, %v3538_v22  ;;  %v7060_v5 = vld [vmem:[%s9411_s9 + $0xc4] ss:$12 sps:$4 sm:$0xff]   ;;  %v7058_v52 = vld [vmem:[%s9411_s9 + $0xc0] ss:$12 sps:$4 sm:$0xff]  }
 0x38f   :  { %v3191_v39 = vpop.f32.mrb[46].mxu0  ;;  %v3253_v40 = vpop.f32.mrb[62].mxu1  ;;  %v6206_v36 = vcombine.low %v3542_v19, %v3546_v20 }
 0x390   :  { %v3256_v41 = vadd.f32 %v3250_v49, %v3194_v35  ;;  %v6795_v37 = vpop.f32.mrb[47].mxu0  ;;  %v6803_v43 = vpop.f32.mrb[63].mxu1  ;;  %v3541_v49 = vld [vmem:[%s9409_s7 + $0xd0] sm:$0xff]  ;;  %v7034_v40 = vld [vmem:[%s9411_s9] ss:$12 sps:$4 sm:$0xff]  }
 0x391   :  { %v3545_v35 = vld [vmem:[%s9409_s7 + $0xf0] sm:$0xff]  ;;  %v7039_v37 = vld [vmem:[%s9411_s9 + $0x1c] ss:$12 sps:$4 sm:$0xff]   ;;  %v7066_v43 = vld [vmem:[%s9411_s9 + $0xe0] ss:$12 sps:$4 sm:$0xff]  }
 0x392   :  { %v6205_v23 = vcombine.high %v3541_v49, %v3545_v35  ;;  %v6204_v31 = vcombine.low %v3541_v49, %v3545_v35  ;;  %v7036_v39 = vld [vmem:[%s9411_s9 + $0x4] ss:$12 sps:$4 sm:$0xff]   ;;  %v7095_v49 = vld [vmem:[%s9411_s9 + $0x16c] ss:$12 sps:$4 sm:$0xff]  }
 0x393   :  { %v7096_v35 = vld [vmem:[%s9411_s9 + $0x170] ss:$12 sps:$4 sm:$0xff]  }
 0x395   :  { %v3312_v44 = vpop.f32.mrb[48].mxu0  ;;  %v3374_v45 = vpop.f32.mrb[64].mxu1 }
 0x396   :  { %v3318_v46 = vadd.f32 %v3312_v44, %v3256_v41  ;;  %v6810_v47 = vpop.f32.mrb[49].mxu0  ;;  %v6818_v48 = vpop.f32.mrb[65].mxu1  ;;  %v7062_v41 = vld [vmem:[%s9411_s9 + $0x8] ss:$12 sps:$4 sm:$0xff]   ;;  %v7037_v44 = vld [vmem:[%s9411_s9 + $0x18] ss:$12 sps:$4 sm:$0xff]  }
 0x397   :  { %v3315_v50 = vpop.f32.mrb[50].mxu0  ;;  %v3377_v51 = vpop.f32.mrb[66].mxu1  ;;  %v7071_v47 = vld [vmem:[%s9411_s9 + $0xf8] ss:$12 sps:$4 sm:$0xff]   ;;  %v7040_v48 = vld [vmem:[%s9411_s9 + $0x30] ss:$12 sps:$4 sm:$0xff]  }
 0x398   :  { %v3380_v53 = vadd.f32 %v3374_v45, %v3318_v46  ;;  %v6811_v54 = vpop.f32.mrb[51].mxu0  ;;  %v6819_v55 = vpop.f32.mrb[67].mxu1  ;;  %v7067_v45 = vld [vmem:[%s9411_s9 + $0x20] ss:$12 sps:$4 sm:$0xff]   ;;  %v7072_v50 = vld [vmem:[%s9411_s9 + $0x38] ss:$12 sps:$4 sm:$0xff]  }
 0x399   :  { %v7042_v46 = vld [vmem:[%s9411_s9 + $0x34] ss:$12 sps:$4 sm:$0xff]   ;;  %v7045_v51 = vld [vmem:[%s9411_s9 + $0x4c] ss:$12 sps:$4 sm:$0xff]   ;;  %v7077_v55 = vld [vmem:[%s9411_s9 + $0x50] ss:$12 sps:$4 sm:$0xff]  }
 0x39a   :  { %v7043_v54 = vld [vmem:[%s9411_s9 + $0x48] ss:$12 sps:$4 sm:$0xff]  }
 0x39d   :  { %v3436_v56 = vpop.f32.mrb[52].mxu0  ;;  %v3498_v57 = vpop.f32.mrb[68].mxu1 }
 0x39e   :  { %v3442_v59 = vadd.f32 %v3436_v56, %v3380_v53  ;;  %v6826_v60 = vpop.f32.mrb[53].mxu0  ;;  %v6834_v61 = vpop.f32.mrb[69].mxu1  ;;  %v7076_v53 = vld [vmem:[%s9411_s9 + $0x110] ss:$12 sps:$4 sm:$0xff]  }
 0x39f   :  { %v3439_v63 = vpop.f32.mrb[54].mxu0  ;;  %v3501_v1 = vpop.f32.mrb[70].mxu1  ;;  %v7048_v56 = vld [vmem:[%s9411_s9 + $0x64] ss:$12 sps:$4 sm:$0xff]   ;;  %v7082_v60 = vld [vmem:[%s9411_s9 + $0x68] ss:$12 sps:$4 sm:$0xff]  }
 0x3a0   :  { %v3504_v2 = vadd.f32 %v3498_v57, %v3442_v59  ;;  %v6827_v3 = vpop.f32.mrb[55].mxu0  ;;  %v6835_v4 = vpop.f32.mrb[71].mxu1  ;;  %v7081_v57 = vld [vmem:[%s9411_s9 + $0x128] ss:$12 sps:$4 sm:$0xff]   ;;  %v7046_v59 = vld [vmem:[%s9411_s9 + $0x60] ss:$12 sps:$4 sm:$0xff]  }
 0x3a1   :  { %v7051_v61 = vld [vmem:[%s9411_s9 + $0x7c] ss:$12 sps:$4 sm:$0xff]   ;;  %v7049_v63 = vld [vmem:[%s9411_s9 + $0x78] ss:$12 sps:$4 sm:$0xff]   ;;  %v7087_v1 = vld [vmem:[%s9411_s9 + $0x80] ss:$12 sps:$4 sm:$0xff]  }
 0x3a2   :  { %v3512_v42 = vadd.f32 %v6175_v62, %v3504_v2  ;;  %v7086_v62 = vld [vmem:[%s9411_s9 + $0x140] ss:$12 sps:$4 sm:$0xff]   ;;  %v7052_v3 = vld [vmem:[%s9411_s9 + $0x90] ss:$12 sps:$4 sm:$0xff]  }
 0x3a3   :  { %v7054_v2 = vld [vmem:[%s9411_s9 + $0x94] ss:$12 sps:$4 sm:$0xff]   ;;  %v7057_v4 = vld [vmem:[%s9411_s9 + $0xac] ss:$12 sps:$4 sm:$0xff]  }
 0x3a4   :  { %v3513_v14 = vmax.f32 %v3512_v42, 0.0  ;;  %v7055_v42 = vld [vmem:[%s9411_s9 + $0xa8] ss:$12 sps:$4 sm:$0xff]  }
 0x3a6   :  { %v3514_v16 = vpack.c.bf16 %v3513_v14, %v3513_v14  ;;  %v7070_v14 = vld [vmem:[%s9411_s9 + $0xf4] ss:$12 sps:$4 sm:$0xff]  }
 0x3a8   :  { %6208 = vmatmul.mubr.msk.bf16.vlgmr.msra.gmra.mrb[56].mxu0 %vm3749_vm3, %v3514_v16  ;;  %6209 = vmatmul.mubr.msk.bf16.vlgmr.msra.gmra.mrb[72].mxu1 %vm3749_vm3, %v3514_v16 }
 0x3a9   :  { %3836 = vmatpush1.bf16.msra.mxu0 %v6180_v21  ;;  %3877 = vmatpush1.bf16.msra.mxu1 %v6182_v24  ;;  %v6198_v21 = vcombine.low %v3534_v18, %v3538_v22  ;;  %v6207_v24 = vcombine.high %v3542_v19, %v3546_v20  ;;  %v7085_v18 = vld [vmem:[%s9411_s9 + $0x13c] ss:$12 sps:$4 sm:$0xff]   ;;  %v7083_v22 = vld [vmem:[%s9411_s9 + $0x138] ss:$12 sps:$4 sm:$0xff]  }
 0x3aa   :  { %3837 = vmatprep.subr.bf16.mxu0 %v6189_v10  ;;  %3878 = vmatprep.subr.bf16.mxu1 %v6191_v17  ;;  %v7075_v10 = vld [vmem:[%s9411_s9 + $0x10c] ss:$12 sps:$4 sm:$0xff]   ;;  %v7073_v17 = vld [vmem:[%s9411_s9 + $0x108] ss:$12 sps:$4 sm:$0xff]   ;;  %v7097_v20 = vld [vmem:[%s9411_s9 + $0xb0] ss:$12 sps:$4 sm:$0xff]  }
 0x3ab   :  { %3867 = vmatprep.mubr.bf16.mxu0 %v7340_v58  ;;  %3908 = vmatprep.mubr.bf16.mxu1 %v7340_v58  ;;  %v7061_v58 = vld [vmem:[%s9411_s9 + $0xc8] ss:$12 sps:$4 sm:$0xff]  }
 0x3ac   :  { %v7093_v19 = vld [vmem:[%s9411_s9 + $0x168] ss:$12 sps:$4 sm:$0xff]  }
 0x3ad   :  { %3838 = vmatpush1.bf16.msra.mxu0 %v6188_v26  ;;  %3879 = vmatpush1.bf16.msra.mxu1 %v6190_v27  ;;  %v7090_v26 = vld [vmem:[%s9411_s9 + $0x154] ss:$12 sps:$4 sm:$0xff]   ;;  %v7091_v27 = vld [vmem:[%s9411_s9 + $0x158] ss:$12 sps:$4 sm:$0xff]  }
 0x3ae   :  { %3839 = vmatprep.subr.bf16.mxu0 %v6197_v28  ;;  %3880 = vmatprep.subr.bf16.mxu1 %v6199_v29  ;;  %v7088_v28 = vld [vmem:[%s9411_s9 + $0x150] ss:$12 sps:$4 sm:$0xff]   ;;  %v7092_v29 = vld [vmem:[%s9411_s9 + $0x98] ss:$12 sps:$4 sm:$0xff]  }
 0x3b1   :  { %3840 = vmatpush1.bf16.msra.mxu0 %v6196_v25  ;;  %3881 = vmatpush1.bf16.msra.mxu1 %v6198_v21  ;;  %v7100_v25 = vld [vmem:[%s9411_s9 + $0x184] ss:$12 sps:$4 sm:$0xff]   ;;  %v7101_v21 = vld [vmem:[%s9411_s9 + $0x248] ss:$12 sps:$4 sm:$0xff]  }
 0x3b2   :  { %3841 = vmatprep.subr.bf16.mxu0 %v6205_v23  ;;  %3882 = vmatprep.subr.bf16.mxu1 %v6207_v24  ;;  %v8818_v23 = vld [vmem:[%s9410_s8] sm:$0xff] }
 0x3b3   :  { %v3552_v24 = vrot.slane %v8818_v23, %v8218_v30 }
 0x3b5   :  { %3842 = vmatpush1.bf16.msra.mxu0 %v6204_v31  ;;  %3883 = vmatpush1.bf16.msra.mxu1 %v6206_v36  ;;  %v3556_v31 = vrot.slane %v8818_v23, %v8229_v33  ;;  %v3564_v36 = vrot.slane %v8818_v23, %v286_v34  ;;  %v7098_v34 = vld [vmem:[%s9411_s9 + $0x180] ss:$12 sps:$4 sm:$0xff]  }
 0x3b6   :  { %5230 = vmatprep.subr.bf16.mxu0 %v7036_v39  ;;  %6589 = vmatprep.subr.bf16.mxu1 %v7061_v58 }
 0x3b8   :  { %6210 = vmatmul.mubr.msk.bf16.vlgmr.msra.gmra.mrb[60].mxu0 %vm3749_vm3, %v3514_v16  ;;  %6211 = vmatmul.mubr.msk.bf16.vlgmr.msra.gmra.mrb[76].mxu1 %vm3749_vm3, %v3514_v16  ;;  %v7068_v16 = vld [vmem:[%s9411_s9 + $0xf0] ss:$12 sps:$4 sm:$0xff]  }
 0x3b9   :  { %5231 = vmatpush1.bf16.msra.mxu0 %v7034_v40  ;;  %6590 = vmatpush3.bf16.msra.mxu1 %v7062_v41 }
 0x3ba   :  { %5232 = vmatprep.subr.bf16.mxu0 %v7039_v37  ;;  %6591 = vmatprep.subr.bf16.mxu1 %v7066_v43 }
 0x3bd   :  { %5233 = vmatpush1.bf16.msra.mxu0 %v7037_v44  ;;  %6592 = vmatpush3.bf16.msra.mxu1 %v7067_v45 }
 0x3be   :  { %5234 = vmatprep.subr.bf16.mxu0 %v7042_v46  ;;  %6593 = vmatprep.subr.bf16.mxu1 %v7071_v47 }
 0x3c1   :  { %5235 = vmatpush1.bf16.msra.mxu0 %v7040_v48  ;;  %6594 = vmatpush3.bf16.msra.mxu1 %v7072_v50 }
 0x3c2   :  { %5236 = vmatprep.subr.bf16.mxu0 %v7045_v51  ;;  %6595 = vmatprep.subr.bf16.mxu1 %v7076_v53 }
 0x3c5   :  { %5237 = vmatpush1.bf16.msra.mxu0 %v7043_v54  ;;  %6596 = vmatpush3.bf16.msra.mxu1 %v7077_v55  ;;  %v7102_v55 = vld [vmem:[%s9411_s9 + $0x188] ss:$12 sps:$4 sm:$0xff]  }
 0x3c6   :  { %5238 = vmatprep.subr.bf16.mxu0 %v7048_v56  ;;  %6597 = vmatprep.subr.bf16.mxu1 %v7081_v57  ;;  %v7105_v57 = vld [vmem:[%s9411_s9 + $0x19c] ss:$12 sps:$4 sm:$0xff]  }
 0x3c9   :  { %5239 = vmatpush1.bf16.msra.mxu0 %v7046_v59  ;;  %6598 = vmatpush3.bf16.msra.mxu1 %v7082_v60  ;;  %v7106_v59 = vld [vmem:[%s9411_s9 + $0x260] ss:$12 sps:$4 sm:$0xff]  }
 0x3ca   :  { %5240 = vmatprep.subr.bf16.mxu0 %v7051_v61  ;;  %6599 = vmatprep.subr.bf16.mxu1 %v7086_v62  ;;  %v7103_v61 = vld [vmem:[%s9411_s9 + $0x198] ss:$12 sps:$4 sm:$0xff]   ;;  %v7107_v62 = vld [vmem:[%s9411_s9 + $0x1a0] ss:$12 sps:$4 sm:$0xff]  }
 0x3cd   :  { %5241 = vmatpush1.bf16.msra.mxu0 %v7049_v63  ;;  %6600 = vmatpush3.bf16.msra.mxu1 %v7087_v1  ;;  %v7110_v63 = vld [vmem:[%s9411_s9 + $0x1b4] ss:$12 sps:$4 sm:$0xff]   ;;  %v7111_v1 = vld [vmem:[%s9411_s9 + $0x278] ss:$12 sps:$4 sm:$0xff]  }
 0x3ce   :  { %5242 = vmatprep.subr.bf16.mxu0 %v7054_v2  ;;  %6601 = vmatprep.subr.bf16.mxu1 %v7091_v27  ;;  %v7108_v2 = vld [vmem:[%s9411_s9 + $0x1b0] ss:$12 sps:$4 sm:$0xff]   ;;  %v7122_v27 = vld [vmem:[%s9411_s9 + $0x1e8] ss:$12 sps:$4 sm:$0xff]  }
 0x3d1   :  { %5243 = vmatpush1.bf16.msra.mxu0 %v7052_v3  ;;  %6602 = vmatpush3.bf16.msra.mxu1 %v7092_v29  ;;  %v7112_v3 = vld [vmem:[%s9411_s9 + $0x1b8] ss:$12 sps:$4 sm:$0xff]   ;;  %v7126_v29 = vld [vmem:[%s9411_s9 + $0x2c0] ss:$12 sps:$4 sm:$0xff]  }
 0x3d2   :  { %5244 = vmatprep.subr.bf16.mxu0 %v7057_v4  ;;  %6603 = vmatprep.subr.bf16.mxu1 %v7096_v35  ;;  %v7115_v4 = vld [vmem:[%s9411_s9 + $0x1cc] ss:$12 sps:$4 sm:$0xff]  }
 0x3d3   :  { %v7127_v35 = vld [vmem:[%s9411_s9 + $0x200] ss:$12 sps:$4 sm:$0xff]  }
 0x3d5   :  { %5245 = vmatpush1.bf16.msra.mxu0 %v7055_v42  ;;  %6604 = vmatpush3.bf16.msra.mxu1 %v7097_v20  ;;  %v7116_v42 = vld [vmem:[%s9411_s9 + $0x290] ss:$12 sps:$4 sm:$0xff]   ;;  %v7130_v20 = vld [vmem:[%s9411_s9 + $0x214] ss:$12 sps:$4 sm:$0xff]  }
 0x3d6   :  { %5246 = vmatprep.subr.bf16.mxu0 %v7060_v5  ;;  %6611 = vmatprep.subr.bf16.mxu1 %v7101_v21  ;;  %v3572_v21 = vrot.slane %v8818_v23, %v294_v0  ;;  %v7136_v0 = vld [vmem:[%s9411_s9 + $0x2f0] ss:$12 sps:$4 sm:$0xff]  }
 0x3d9   :  { %5247 = vmatpush1.bf16.msra.mxu0 %v7058_v52 }
 0x3da   :  { %5248 = vmatprep.subr.bf16.mxu0 %v7065_v6 }
 0x3dd   :  { %5249 = vmatpush1.bf16.msra.mxu0 %v7063_v13 }
 0x3de   :  { %5250 = vmatprep.subr.bf16.mxu0 %v7070_v14 }
 0x3e1   :  { %5251 = vmatpush1.bf16.msra.mxu0 %v7068_v16 }
 0x3e2   :  { %5252 = vmatprep.subr.bf16.mxu0 %v7075_v10  ;;  %v7113_v10 = vld [vmem:[%s9411_s9 + $0x1c8] ss:$12 sps:$4 sm:$0xff]  }
 0x3e5   :  { %5253 = vmatpush1.bf16.msra.mxu0 %v7073_v17  ;;  %v7117_v17 = vld [vmem:[%s9411_s9 + $0x1d0] ss:$12 sps:$4 sm:$0xff]  }
 0x3e6   :  { %5254 = vmatprep.subr.bf16.mxu0 %v7080_v11 }
 0x3e9   :  { %5255 = vmatpush1.bf16.msra.mxu0 %v7078_v12 }
 0x3ea   :  { %5256 = vmatprep.subr.bf16.mxu0 %v7085_v18  ;;  %v7120_v18 = vld [vmem:[%s9411_s9 + $0x1e4] ss:$12 sps:$4 sm:$0xff]  }
 0x3ed   :  { %5257 = vmatpush1.bf16.msra.mxu0 %v7083_v22  ;;  %v7121_v22 = vld [vmem:[%s9411_s9 + $0x2a8] ss:$12 sps:$4 sm:$0xff]  }
 0x3ee   :  { %5258 = vmatprep.subr.bf16.mxu0 %v7090_v26  ;;  %v7118_v26 = vld [vmem:[%s9411_s9 + $0x1e0] ss:$12 sps:$4 sm:$0xff]  }
 0x3f1   :  { %5259 = vmatpush1.bf16.msra.mxu0 %v7088_v28  ;;  %v7125_v28 = vld [vmem:[%s9411_s9 + $0x1fc] ss:$12 sps:$4 sm:$0xff]  }
 0x3f2   :  { %5260 = vmatprep.subr.bf16.mxu0 %v7095_v49  ;;  %v7123_v49 = vld [vmem:[%s9411_s9 + $0x1f8] ss:$12 sps:$4 sm:$0xff]  }
 0x3f5   :  { %5261 = vmatpush1.bf16.msra.mxu0 %v7093_v19  ;;  %v3560_v19 = vrot.slane %v8818_v23, %v8226_v32 }
 0x3f6   :  { %5271 = vmatprep.subr.bf16.mxu0 %v7100_v25  ;;  %v7131_v25 = vld [vmem:[%s9411_s9 + $0x2d8] ss:$12 sps:$4 sm:$0xff]  }
 0x47b   :  { %v3787_v39 = vpop.f32.mrb[56].mxu0  ;;  %v8827_v58 = vpop.f32.mrb[72].mxu1 }
 0x47c   :  { %v3788_v40 = vadd.f32 %v3787_v39, %v3552_v24  ;;  %v3789_v41 = vpop.f32.mrb[57].mxu0  ;;  %v3830_v37 = vpop.f32.mrb[73].mxu1  ;;  %v7128_v24 = vld [vmem:[%s9411_s9 + $0x210] ss:$12 sps:$4 sm:$0xff]   ;;  %v7135_v39 = vld [vmem:[%s9411_s9 + $0x22c] ss:$12 sps:$4 sm:$0xff]  }
 0x47d   :  { %v3790_v43 = vadd.f32 %v3789_v41, %v3556_v31  ;;  %v3831_v44 = vadd.f32 %v3830_v37, %v3564_v36  ;;  %v3791_v45 = vpop.f32.mrb[58].mxu0  ;;  %v3832_v46 = vpop.f32.mrb[74].mxu1  ;;  %v7132_v31 = vld [vmem:[%s9411_s9 + $0x218] ss:$12 sps:$4 sm:$0xff]   ;;  %v3829_v36 = vadd.f32 %v8827_v58, %v3560_v19  ;;  %v7133_v41 = vld [vmem:[%s9411_s9 + $0x228] ss:$12 sps:$4 sm:$0xff]  }
 0x47e   :  { %v3917_v47 = vmax.f32 %v3788_v40, 0.0  ;;  %v3792_v48 = vpop.f32.mrb[59].mxu0  ;;  %v3833_v50 = vpop.f32.mrb[75].mxu1  ;;  %v7137_v58 = vld [vmem:[%s9411_s9 + $0x230] ss:$12 sps:$4 sm:$0xff]  }
 0x47f   :  { %v3918_v51 = vmax.f32 %v3790_v43, 0.0  ;;  %v3920_v53 = vmax.f32 %v3831_v44, 0.0  ;;  %v3919_v37 = vmax.f32 %v3829_v36, 0.0  ;;  %v7140_v43 = vld [vmem:[%s9411_s9 + $0x244] ss:$12 sps:$4 sm:$0xff]  }
 0x480   :  { %v3925_v56 = vpack.c.bf16 %v3917_v47, %v3917_v47  ;;  %v7141_v44 = vld [vmem:[%s9411_s9 + $0x3c8] ss:$12 sps:$4 sm:$0xff]   ;;  %v7138_v46 = vld [vmem:[%s9411_s9 + $0x240] ss:$12 sps:$4 sm:$0xff]   ;;  %v7183_v36 = vld [vmem:[%s9411_s9 + $0x318] ss:$12 sps:$4 sm:$0xff]  }
 0x481   :  { %v3926_v54 = vpack.c.bf16 %v3918_v51, %v3918_v51  ;;  %v3928_v60 = vpack.c.bf16 %v3920_v53, %v3920_v53  ;;  %v7142_v47 = vld [vmem:[%s9411_s9 + $0x308] ss:$12 sps:$4 sm:$0xff]   ;;  %v8943_v48 = vpack.c.bf16 %v3919_v37, %v3919_v37  ;;  %v7146_v51 = vld [vmem:[%s9411_s9 + $0x3e0] ss:$12 sps:$4 sm:$0xff]  }
 0x482   :  { %v7145_v50 = vld [vmem:[%s9411_s9 + $0x25c] ss:$12 sps:$4 sm:$0xff]   ;;  %v7178_v19 = vld [vmem:[%s9411_s9 + $0x300] ss:$12 sps:$4 sm:$0xff]  }
 0x483   :  { %5262 = vmatprep.mubr.bf16.mxu0 %v3926_v54  ;;  %5426 = vmatprep.mubr.bf16.mxu1 %v3926_v54  ;;  %v7143_v54 = vld [vmem:[%s9411_s9 + $0x258] ss:$12 sps:$4 sm:$0xff]  }
 0x484   :  { %5263 = vmatmul.mubr.bf16.vlgmr.msra.gmra.mrb[64].mxu0 %v3925_v56  ;;  %5427 = vmatmul.mubr.bf16.vlgmr.msra.gmra.mrb[80].mxu1 %v3925_v56  ;;  %v7151_v56 = vld [vmem:[%s9411_s9 + $0x3f8] ss:$12 sps:$4 sm:$0xff]  }
 0x485   :  { %5272 = vmatpush1.bf16.msra.mxu0 %v7098_v34  ;;  %6612 = vmatpush3.bf16.msra.mxu1 %v7102_v55  ;;  %v7147_v34 = vld [vmem:[%s9411_s9 + $0x320] ss:$12 sps:$4 sm:$0xff]  }
 0x486   :  { %5303 = vmatprep.mubr.bf16.mxu0 %v3928_v60  ;;  %5466 = vmatprep.mubr.bf16.mxu1 %v3928_v60  ;;  %v7150_v55 = vld [vmem:[%s9411_s9 + $0x274] ss:$12 sps:$4 sm:$0xff]   ;;  %v7155_v60 = vld [vmem:[%s9411_s9 + $0x28c] ss:$12 sps:$4 sm:$0xff]  }
 0x487   :  { %5273 = vmatprep.subr.bf16.mxu0 %v7105_v57  ;;  %6613 = vmatprep.subr.bf16.mxu1 %v7106_v59  ;;  %v7148_v57 = vld [vmem:[%s9411_s9 + $0x270] ss:$12 sps:$4 sm:$0xff]   ;;  %v7152_v59 = vld [vmem:[%s9411_s9 + $0x338] ss:$12 sps:$4 sm:$0xff]  }
 0x488   :  { %v7195_v37 = vld [vmem:[%s9411_s9 + $0x34c] ss:$12 sps:$4 sm:$0xff]  }
 0x489   :  { %5274 = vmatpush1.bf16.msra.mxu0 %v7103_v61  ;;  %6614 = vmatpush3.bf16.msra.mxu1 %v7107_v62  ;;  %v7156_v61 = vld [vmem:[%s9411_s9 + $0x410] ss:$12 sps:$4 sm:$0xff]   ;;  %v7153_v62 = vld [vmem:[%s9411_s9 + $0x288] ss:$12 sps:$4 sm:$0xff]  }
 0x48a   :  { %5275 = vmatprep.subr.bf16.mxu0 %v7110_v63  ;;  %6615 = vmatprep.subr.bf16.mxu1 %v7111_v1  ;;  %v7157_v63 = vld [vmem:[%s9411_s9 + $0x350] ss:$12 sps:$4 sm:$0xff]  }
 0x48b   :  { %v8865_v5 = vpop.f32.mrb[60].mxu0  ;;  %v8867_v52 = vpop.f32.mrb[76].mxu1  ;;  %v7160_v1 = vld [vmem:[%s9411_s9 + $0x2a4] ss:$12 sps:$4 sm:$0xff]  }
 0x48c   :  { %v3871_v6 = vpop.f32.mrb[61].mxu0  ;;  %v8869_v13 = vpop.f32.mrb[77].mxu1 }
 0x48d   :  { %v3873_v14 = vpop.f32.mrb[62].mxu0  ;;  %v3914_v16 = vpop.f32.mrb[78].mxu1  ;;  %5276 = vmatpush1.bf16.msra.mxu0 %v7108_v2  ;;  %6616 = vmatpush3.bf16.msra.mxu1 %v7112_v3  ;;  %v3872_v40 = vadd.f32 %v3871_v6, %v3572_v21  ;;  %v7161_v2 = vld [vmem:[%s9411_s9 + $0x428] ss:$12 sps:$4 sm:$0xff]   ;;  %v7158_v3 = vld [vmem:[%s9411_s9 + $0x2a0] ss:$12 sps:$4 sm:$0xff]  }
 0x48e   :  { %v3874_v11 = vpop.f32.mrb[63].mxu0  ;;  %v3915_v12 = vpop.f32.mrb[79].mxu1  ;;  %5277 = vmatprep.subr.bf16.mxu0 %v7115_v4  ;;  %6617 = vmatprep.subr.bf16.mxu1 %v7116_v42  ;;  %v7162_v4 = vld [vmem:[%s9411_s9 + $0x368] ss:$12 sps:$4 sm:$0xff]   ;;  %v7166_v6 = vld [vmem:[%s9411_s9 + $0x440] ss:$12 sps:$4 sm:$0xff]  }
 0x48f   :  { %v3922_v45 = vmax.f32 %v3872_v40, 0.0  ;;  %v7165_v42 = vld [vmem:[%s9411_s9 + $0x2bc] ss:$12 sps:$4 sm:$0xff]   ;;  %v7163_v14 = vld [vmem:[%s9411_s9 + $0x2b8] ss:$12 sps:$4 sm:$0xff]   ;;  %v3580_v12 = vrot.slane %v8818_v23, %v302_v9 }
 0x490   :  { %v7167_v16 = vld [vmem:[%s9411_s9 + $0x380] ss:$12 sps:$4 sm:$0xff]   ;;  %v7171_v11 = vld [vmem:[%s9411_s9 + $0x458] ss:$12 sps:$4 sm:$0xff]   ;;  %v7176_v9 = vld [vmem:[%s9411_s9 + $0x470] ss:$12 sps:$4 sm:$0xff]  }
 0x491   :  { %5278 = vmatpush1.bf16.msra.mxu0 %v7113_v10  ;;  %6618 = vmatpush3.bf16.msra.mxu1 %v7117_v17  ;;  %v8951_v53 = vpack.c.bf16 %v3922_v45, %v3922_v45  ;;  %v3568_v10 = vrot.slane %v8818_v23, %v290_v7  ;;  %v7170_v17 = vld [vmem:[%s9411_s9 + $0x2d4] ss:$12 sps:$4 sm:$0xff]   ;;  %v7168_v7 = vld [vmem:[%s9411_s9 + $0x2d0] ss:$12 sps:$4 sm:$0xff]   ;;  %v7191_v40 = vld [vmem:[%s9411_s9 + $0x578] ss:$12 sps:$4 sm:$0xff]  }
 0x492   :  { %5279 = vmatprep.subr.bf16.mxu0 %v7120_v18  ;;  %6619 = vmatprep.subr.bf16.mxu1 %v7121_v22  ;;  %v7172_v18 = vld [vmem:[%s9411_s9 + $0x398] ss:$12 sps:$4 sm:$0xff]   ;;  %v7185_v21 = vld [vmem:[%s9411_s9 + $0x31c] ss:$12 sps:$4 sm:$0xff]  }
 0x493   :  { %v3870_v22 = vadd.f32 %v8865_v5, %v3568_v10  ;;  %v7177_v5 = vld [vmem:[%s9411_s9 + $0x3b0] ss:$12 sps:$4 sm:$0xff]  }
 0x494   :  { %v7197_v45 = vld [vmem:[%s9411_s9 + $0x4d0] ss:$12 sps:$4 sm:$0xff]  }
 0x495   :  { %5280 = vmatpush1.bf16.msra.mxu0 %v7118_v26  ;;  %6620 = vmatpush3.bf16.msra.mxu1 %v7122_v27  ;;  %v7175_v26 = vld [vmem:[%s9411_s9 + $0x2ec] ss:$12 sps:$4 sm:$0xff]   ;;  %v3913_v27 = vadd.f32 %v8869_v13, %v3580_v12  ;;  %v7181_v13 = vld [vmem:[%s9411_s9 + $0x548] ss:$12 sps:$4 sm:$0xff]   ;;  %v7232_v10 = vld [vmem:[%s9411_s9 + $0x424] ss:$12 sps:$4 sm:$0xff]  }
 0x496   :  { %5281 = vmatprep.subr.bf16.mxu0 %v7125_v28  ;;  %6621 = vmatprep.subr.bf16.mxu1 %v7126_v29  ;;  %v7173_v28 = vld [vmem:[%s9411_s9 + $0x2e8] ss:$12 sps:$4 sm:$0xff]   ;;  %v3921_v29 = vmax.f32 %v3870_v22, 0.0  ;;  %v7233_v12 = vld [vmem:[%s9411_s9 + $0x438] ss:$12 sps:$4 sm:$0xff]  }
 0x497   :  { %v7241_v22 = vld [vmem:[%s9411_s9 + $0x46c] ss:$12 sps:$4 sm:$0xff]  }
 0x499   :  { %5282 = vmatpush1.bf16.msra.mxu0 %v7123_v49  ;;  %6622 = vmatpush3.bf16.msra.mxu1 %v7127_v35  ;;  %v7180_v49 = vld [vmem:[%s9411_s9 + $0x304] ss:$12 sps:$4 sm:$0xff]   ;;  %v3924_v35 = vmax.f32 %v3913_v27, 0.0  ;;  %v7242_v27 = vld [vmem:[%s9411_s9 + $0x480] ss:$12 sps:$4 sm:$0xff]  }
 0x49a   :  { %5283 = vmatprep.subr.bf16.mxu0 %v7130_v20  ;;  %6623 = vmatprep.subr.bf16.mxu1 %v7131_v25  ;;  %v9050_v20 = vpack.c.bf16 %v3921_v29, %v3921_v29  ;;  %v7182_v25 = vld [vmem:[%s9411_s9 + $0x488] ss:$12 sps:$4 sm:$0xff]  }
 0x49b   :  { %v7250_v29 = vld [vmem:[%s9411_s9 + $0x4b4] ss:$12 sps:$4 sm:$0xff]  }
 0x49d   :  { %5284 = vmatpush1.bf16.msra.mxu0 %v7128_v24  ;;  %6624 = vmatpush3.bf16.msra.mxu1 %v7132_v31  ;;  %v7186_v24 = vld [vmem:[%s9411_s9 + $0x560] ss:$12 sps:$4 sm:$0xff]   ;;  %v9061_v31 = vpack.c.bf16 %v3924_v35, %v3924_v35  ;;  %v7251_v35 = vld [vmem:[%s9411_s9 + $0x4c8] ss:$12 sps:$4 sm:$0xff]  }
 0x49e   :  { %5285 = vmatprep.subr.bf16.mxu0 %v7135_v39  ;;  %6625 = vmatprep.subr.bf16.mxu1 %v7136_v0  ;;  %v7187_v39 = vld [vmem:[%s9411_s9 + $0x4a0] ss:$12 sps:$4 sm:$0xff]  }
 0x49f   :  { %v7190_v0 = vld [vmem:[%s9411_s9 + $0x334] ss:$12 sps:$4 sm:$0xff]  }
 0x4a1   :  { %5286 = vmatpush1.bf16.msra.mxu0 %v7133_v41  ;;  %6626 = vmatpush3.bf16.msra.mxu1 %v7137_v58  ;;  %v7188_v41 = vld [vmem:[%s9411_s9 + $0x330] ss:$12 sps:$4 sm:$0xff]   ;;  %v7192_v58 = vld [vmem:[%s9411_s9 + $0x4b8] ss:$12 sps:$4 sm:$0xff]  }
 0x4a2   :  { %5287 = vmatprep.subr.bf16.mxu0 %v7140_v43  ;;  %6633 = vmatprep.subr.bf16.mxu1 %v7141_v44  ;;  %v7196_v43 = vld [vmem:[%s9411_s9 + $0x590] ss:$12 sps:$4 sm:$0xff]   ;;  %v7193_v44 = vld [vmem:[%s9411_s9 + $0x348] ss:$12 sps:$4 sm:$0xff]  }
 0x4a4   :  { %5467 = vmatmul.mubr.bf16.vlgmr.msra.gmra.mrb[84].mxu1 %v8943_v48 }
 0x4a5   :  { %5288 = vmatpush1.bf16.msra.mxu0 %v7138_v46  ;;  %6634 = vmatpush3.bf16.msra.mxu1 %v7142_v47  ;;  %v7200_v46 = vld [vmem:[%s9411_s9 + $0x364] ss:$12 sps:$4 sm:$0xff]   ;;  %v7201_v47 = vld [vmem:[%s9411_s9 + $0x5a8] ss:$12 sps:$4 sm:$0xff]  }
 0x4a6   :  { %5506 = vmatprep.mubr.bf16.mxu1 %v8951_v53  ;;  %5289 = vmatprep.subr.bf16.mxu0 %v7145_v50  ;;  %v7202_v50 = vld [vmem:[%s9411_s9 + $0x4e8] ss:$12 sps:$4 sm:$0xff]  }
 0x4a7   :  { %6635 = vmatprep.subr.bf16.mxu1 %v7146_v51  ;;  %v7205_v51 = vld [vmem:[%s9411_s9 + $0x37c] ss:$12 sps:$4 sm:$0xff]  }
 0x4a9   :  { %5290 = vmatpush1.bf16.msra.mxu0 %v7143_v54  ;;  %6636 = vmatpush3.bf16.msra.mxu1 %v7147_v34  ;;  %v7203_v54 = vld [vmem:[%s9411_s9 + $0x378] ss:$12 sps:$4 sm:$0xff]   ;;  %v7207_v34 = vld [vmem:[%s9411_s9 + $0x500] ss:$12 sps:$4 sm:$0xff]  }
 0x4aa   :  { %5291 = vmatprep.subr.bf16.mxu0 %v7150_v55  ;;  %6637 = vmatprep.subr.bf16.mxu1 %v7151_v56  ;;  %v7210_v55 = vld [vmem:[%s9411_s9 + $0x394] ss:$12 sps:$4 sm:$0xff]   ;;  %v3576_v56 = vrot.slane %v8818_v23, %v298_v8  ;;  %v7216_v23 = vld [vmem:[%s9411_s9 + $0x5f0] ss:$12 sps:$4 sm:$0xff]  }
 0x4ac   :  { %v3911_v8 = vadd.f32 %v8867_v52, %v3576_v56  ;;  %v7220_v52 = vld [vmem:[%s9411_s9 + $0x3c4] ss:$12 sps:$4 sm:$0xff]  }
 0x4ad   :  { %5292 = vmatpush1.bf16.msra.mxu0 %v7148_v57  ;;  %6638 = vmatpush3.bf16.msra.mxu1 %v7152_v59  ;;  %v7211_v57 = vld [vmem:[%s9411_s9 + $0x5d8] ss:$12 sps:$4 sm:$0xff]   ;;  %v7208_v59 = vld [vmem:[%s9411_s9 + $0x390] ss:$12 sps:$4 sm:$0xff]  }
 0x4ae   :  { %5293 = vmatprep.subr.bf16.mxu0 %v7155_v60  ;;  %6639 = vmatprep.subr.bf16.mxu1 %v7156_v61  ;;  %v7212_v60 = vld [vmem:[%s9411_s9 + $0x518] ss:$12 sps:$4 sm:$0xff]   ;;  %v7213_v61 = vld [vmem:[%s9411_s9 + $0x3a8] ss:$12 sps:$4 sm:$0xff]  }
 0x4af   :  { %v7291_v56 = vld [vmem:[%s9413_s11] sm:$0xff]  }
 0x4b1   :  { %5294 = vmatpush1.bf16.msra.mxu0 %v7153_v62  ;;  %6640 = vmatpush3.bf16.msra.mxu1 %v7157_v63  ;;  %v7217_v62 = vld [vmem:[%s9411_s9 + $0x530] ss:$12 sps:$4 sm:$0xff]   ;;  %v3923_v63 = vmax.f32 %v3911_v8, 0.0 }
 0x4b2   :  { %5295 = vmatprep.subr.bf16.mxu0 %v7160_v1  ;;  %6641 = vmatprep.subr.bf16.mxu1 %v7161_v2  ;;  %v7218_v1 = vld [vmem:[%s9411_s9 + $0x3c0] ss:$12 sps:$4 sm:$0xff]   ;;  %v7223_v2 = vld [vmem:[%s9411_s9 + $0x3dc] ss:$12 sps:$4 sm:$0xff]  }
 0x4b3   :  { %v7296_v8 = vld [vmem:[%s9413_s11 + $0x58] sm:$0xff]  }
 0x4b5   :  { %5296 = vmatpush1.bf16.msra.mxu0 %v7158_v3  ;;  %6642 = vmatpush3.bf16.msra.mxu1 %v7162_v4  ;;  %v9158_v3 = vpack.c.bf16 %v3923_v63, %v3923_v63  ;;  %v7221_v4 = vld [vmem:[%s9411_s9 + $0x3d8] ss:$12 sps:$4 sm:$0xff]   ;;  %v7301_v63 = vld [vmem:[%s9413_s11 + $0x28] sm:$0xff]  }
 0x4b6   :  { %5297 = vmatprep.subr.bf16.mxu0 %v7165_v42  ;;  %6643 = vmatprep.subr.bf16.mxu1 %v7166_v6  ;;  %v7226_v42 = vld [vmem:[%s9411_s9 + $0x3f4] ss:$12 sps:$4 sm:$0xff]   ;;  %v7224_v6 = vld [vmem:[%s9411_s9 + $0x3f0] ss:$12 sps:$4 sm:$0xff]  }
 0x4b9   :  { %5298 = vmatpush1.bf16.msra.mxu0 %v7163_v14  ;;  %6644 = vmatpush3.bf16.msra.mxu1 %v7167_v16  ;;  %v7229_v14 = vld [vmem:[%s9411_s9 + $0x40c] ss:$12 sps:$4 sm:$0xff]   ;;  %v7227_v16 = vld [vmem:[%s9411_s9 + $0x408] ss:$12 sps:$4 sm:$0xff]  }
 0x4ba   :  { %5299 = vmatprep.subr.bf16.mxu0 %v7170_v17  ;;  %6645 = vmatprep.subr.bf16.mxu1 %v7171_v11  ;;  %v7230_v17 = vld [vmem:[%s9411_s9 + $0x420] ss:$12 sps:$4 sm:$0xff]   ;;  %v7235_v11 = vld [vmem:[%s9411_s9 + $0x43c] ss:$12 sps:$4 sm:$0xff]  }
 0x4bd   :  { %5300 = vmatpush1.bf16.msra.mxu0 %v7168_v7  ;;  %6646 = vmatpush3.bf16.msra.mxu1 %v7172_v18  ;;  %v7238_v7 = vld [vmem:[%s9411_s9 + $0x454] ss:$12 sps:$4 sm:$0xff]   ;;  %v7236_v18 = vld [vmem:[%s9411_s9 + $0x450] ss:$12 sps:$4 sm:$0xff]  }
 0x4be   :  { %5301 = vmatprep.subr.bf16.mxu0 %v7175_v26  ;;  %6647 = vmatprep.subr.bf16.mxu1 %v7176_v9  ;;  %v7239_v26 = vld [vmem:[%s9411_s9 + $0x468] ss:$12 sps:$4 sm:$0xff]   ;;  %v7244_v9 = vld [vmem:[%s9411_s9 + $0x484] ss:$12 sps:$4 sm:$0xff]  }
 0x4c1   :  { %5302 = vmatpush1.bf16.msra.mxu0 %v7173_v28  ;;  %6648 = vmatpush3.bf16.msra.mxu1 %v7177_v5  ;;  %v7247_v28 = vld [vmem:[%s9411_s9 + $0x49c] ss:$12 sps:$4 sm:$0xff]   ;;  %v7245_v5 = vld [vmem:[%s9411_s9 + $0x498] ss:$12 sps:$4 sm:$0xff]  }
 0x4c2   :  { %5312 = vmatprep.subr.bf16.mxu0 %v7180_v49  ;;  %6655 = vmatprep.subr.bf16.mxu1 %v7181_v13  ;;  %v7248_v49 = vld [vmem:[%s9411_s9 + $0x4b0] ss:$12 sps:$4 sm:$0xff]   ;;  %v7253_v13 = vld [vmem:[%s9411_s9 + $0x4cc] ss:$12 sps:$4 sm:$0xff]  }
 0x4c4   :  { %5304 = vmatmul.mubr.bf16.vlgmr.msra.gmra.mrb[64].mxu0 %v8943_v48  ;;  %5507 = vmatmul.mubr.bf16.vlgmr.msra.gmra.mrb[88].mxu1 %v9050_v20  ;;  %v7198_v48 = vld [vmem:[%s9411_s9 + $0x360] ss:$12 sps:$4 sm:$0xff]  }
 0x4c5   :  { %5313 = vmatpush1.bf16.msra.mxu0 %v7178_v19  ;;  %5344 = vmatprep.mubr.bf16.mxu0 %v8951_v53  ;;  %v7206_v53 = vld [vmem:[%s9411_s9 + $0x5c0] ss:$12 sps:$4 sm:$0xff]   ;;  %v7256_v19 = vld [vmem:[%s9411_s9 + $0x4e4] ss:$12 sps:$4 sm:$0xff]  }
 0x4c6   :  { %6656 = vmatpush3.bf16.msra.mxu1 %v7182_v25  ;;  %5546 = vmatprep.mubr.bf16.mxu1 %v9061_v31  ;;  %v7259_v25 = vld [vmem:[%s9411_s9 + $0x4fc] ss:$12 sps:$4 sm:$0xff]  }
 0x4c7   :  { %5314 = vmatprep.subr.bf16.mxu0 %v7185_v21  ;;  %6657 = vmatprep.subr.bf16.mxu1 %v7186_v24  ;;  %v7257_v21 = vld [vmem:[%s9411_s9 + $0x4f8] ss:$12 sps:$4 sm:$0xff]   ;;  %v7262_v24 = vld [vmem:[%s9411_s9 + $0x514] ss:$12 sps:$4 sm:$0xff]  }
 0x4c9   :  { %5315 = vmatpush1.bf16.msra.mxu0 %v7183_v36  ;;  %v7265_v36 = vld [vmem:[%s9411_s9 + $0x52c] ss:$12 sps:$4 sm:$0xff]  }
 0x4ca   :  { %6658 = vmatpush3.bf16.msra.mxu1 %v7187_v39  ;;  %5316 = vmatprep.subr.bf16.mxu0 %v7190_v0  ;;  %v7263_v39 = vld [vmem:[%s9411_s9 + $0x528] ss:$12 sps:$4 sm:$0xff]   ;;  %v7268_v0 = vld [vmem:[%s9411_s9 + $0x544] ss:$12 sps:$4 sm:$0xff]  }
 0x4cb   :  { %6659 = vmatprep.subr.bf16.mxu1 %v7191_v40  ;;  %v7266_v40 = vld [vmem:[%s9411_s9 + $0x540] ss:$12 sps:$4 sm:$0xff]  }
 0x4cd   :  { %5317 = vmatpush1.bf16.msra.mxu0 %v7188_v41  ;;  %v7271_v41 = vld [vmem:[%s9411_s9 + $0x55c] ss:$12 sps:$4 sm:$0xff]  }
 0x4ce   :  { %6660 = vmatpush3.bf16.msra.mxu1 %v7192_v58  ;;  %5318 = vmatprep.subr.bf16.mxu0 %v7195_v37  ;;  %v7269_v58 = vld [vmem:[%s9411_s9 + $0x558] ss:$12 sps:$4 sm:$0xff]   ;;  %v7274_v37 = vld [vmem:[%s9411_s9 + $0x574] ss:$12 sps:$4 sm:$0xff]  }
 0x4cf   :  { %6661 = vmatprep.subr.bf16.mxu1 %v7196_v43  ;;  %v7272_v43 = vld [vmem:[%s9411_s9 + $0x570] ss:$12 sps:$4 sm:$0xff]  }
 0x4d1   :  { %5319 = vmatpush1.bf16.msra.mxu0 %v7193_v44  ;;  %v7277_v44 = vld [vmem:[%s9411_s9 + $0x58c] ss:$12 sps:$4 sm:$0xff]  }
 0x4d2   :  { %6662 = vmatpush3.bf16.msra.mxu1 %v7197_v45  ;;  %5320 = vmatprep.subr.bf16.mxu0 %v7200_v46  ;;  %v7275_v45 = vld [vmem:[%s9411_s9 + $0x588] ss:$12 sps:$4 sm:$0xff]   ;;  %v7280_v46 = vld [vmem:[%s9411_s9 + $0x5a4] ss:$12 sps:$4 sm:$0xff]  }
 0x4d3   :  { %6663 = vmatprep.subr.bf16.mxu1 %v7201_v47  ;;  %v7278_v47 = vld [vmem:[%s9411_s9 + $0x5a0] ss:$12 sps:$4 sm:$0xff]  }
 0x4d5   :  { %5321 = vmatpush1.bf16.msra.mxu0 %v7198_v48  ;;  %v7283_v48 = vld [vmem:[%s9411_s9 + $0x5bc] ss:$12 sps:$4 sm:$0xff]  }
 0x4d6   :  { %6664 = vmatpush3.bf16.msra.mxu1 %v7202_v50  ;;  %5322 = vmatprep.subr.bf16.mxu0 %v7205_v51  ;;  %v7281_v50 = vld [vmem:[%s9411_s9 + $0x5b8] ss:$12 sps:$4 sm:$0xff]   ;;  %v7286_v51 = vld [vmem:[%s9411_s9 + $0x5d4] ss:$12 sps:$4 sm:$0xff]  }
 0x4d7   :  { %6665 = vmatprep.subr.bf16.mxu1 %v7206_v53  ;;  %v7284_v53 = vld [vmem:[%s9411_s9 + $0x5d0] ss:$12 sps:$4 sm:$0xff]  }
 0x4d9   :  { %5323 = vmatpush1.bf16.msra.mxu0 %v7203_v54  ;;  %v7289_v54 = vld [vmem:[%s9411_s9 + $0x5ec] ss:$12 sps:$4 sm:$0xff]  }
 0x4da   :  { %6666 = vmatpush3.bf16.msra.mxu1 %v7207_v34  ;;  %5324 = vmatprep.subr.bf16.mxu0 %v7210_v55  ;;  %v7287_v34 = vld [vmem:[%s9411_s9 + $0x5e8] ss:$12 sps:$4 sm:$0xff]   ;;  %v7290_v55 = vld [vmem:[%s9413_s11 + $0x40] sm:$0xff]  }
 0x4db   :  { %6667 = vmatprep.subr.bf16.mxu1 %v7211_v57  ;;  %v7292_v57 = vld [vmem:[%s9413_s11 + $0x48] sm:$0xff]  }
 0x4dd   :  { %5325 = vmatpush1.bf16.msra.mxu0 %v7208_v59  ;;  %v7293_v59 = vld [vmem:[%s9413_s11 + $0x8] sm:$0xff]  }
 0x4de   :  { %6668 = vmatpush3.bf16.msra.mxu1 %v7212_v60  ;;  %5326 = vmatprep.subr.bf16.mxu0 %v7215_v38  ;;  %v7294_v60 = vld [vmem:[%s9413_s11 + $0x50] sm:$0xff]  }
 0x4df   :  { %6669 = vmatprep.subr.bf16.mxu1 %v7216_v23  ;;  %v7295_v38 = vld [vmem:[%s9413_s11 + $0x10] sm:$0xff]   ;;  %v7297_v23 = vld [vmem:[%s9413_s11 + $0x18] sm:$0xff]  }
 0x4e1   :  { %5327 = vmatpush1.bf16.msra.mxu0 %v7213_v61  ;;  %v7298_v61 = vld [vmem:[%s9413_s11 + $0x60] sm:$0xff]  }
 0x4e2   :  { %6670 = vmatpush3.bf16.msra.mxu1 %v7217_v62  ;;  %5328 = vmatprep.subr.bf16.mxu0 %v7220_v52  ;;  %v7299_v62 = vld [vmem:[%s9413_s11 + $0x20] sm:$0xff]   ;;  %v7300_v52 = vld [vmem:[%s9413_s11 + $0x68] sm:$0xff]  }
 0x4e3   :  { %6677 = vmatprep.subr.bf16.mxu1 %v7290_v55 }
 0x4e5   :  { %5547 = vmatmul.mubr.bf16.vlgmr.msra.gmra.mrb[92].mxu1 %v9158_v3  ;;  %5329 = vmatpush1.bf16.msra.mxu0 %v7218_v1 }
 0x4e6   :  { %5330 = vmatprep.subr.bf16.mxu0 %v7223_v2  ;;  %6678 = vmatpush3.bf16.msra.mxu1 %v7291_v56 }
 0x4e7   :  { %6679 = vmatprep.subr.bf16.mxu1 %v7292_v57 }
 0x4e9   :  { %5331 = vmatpush1.bf16.msra.mxu0 %v7221_v4 }
 0x4ea   :  { %5332 = vmatprep.subr.bf16.mxu0 %v7226_v42  ;;  %6680 = vmatpush3.bf16.msra.mxu1 %v7293_v59 }
 0x4eb   :  { %6681 = vmatprep.subr.bf16.mxu1 %v7294_v60 }
 0x4ed   :  { %5333 = vmatpush1.bf16.msra.mxu0 %v7224_v6  ;;  %v4189_v6 = vld [vmem:[%s9412_s10] sm:$0x7] }
 0x4ee   :  { %5334 = vmatprep.subr.bf16.mxu0 %v7229_v14  ;;  %6682 = vmatpush3.bf16.msra.mxu1 %v7295_v38  ;;  %v4202_v14 = vrot.slane %v4189_v6, %v8226_v32 }
 0x4ef   :  { %6683 = vmatprep.subr.bf16.mxu1 %v7296_v8  ;;  %v6404_v8 = vld [vmem:[%s9414_s12] ss:$0 sm:$0xff] }
 0x4f1   :  { %5335 = vmatpush1.bf16.msra.mxu0 %v7227_v16 }
 0x4f2   :  { %5336 = vmatprep.subr.bf16.mxu0 %v7232_v10  ;;  %6684 = vmatpush3.bf16.msra.mxu1 %v7297_v23 }
 0x4f3   :  { %6685 = vmatprep.subr.bf16.mxu1 %v7298_v61 }
 0x4f5   :  { %5337 = vmatpush1.bf16.msra.mxu0 %v7230_v17 }
 0x4f6   :  { %5338 = vmatprep.subr.bf16.mxu0 %v7235_v11  ;;  %6686 = vmatpush3.bf16.msra.mxu1 %v7299_v62 }
 0x4f7   :  { %6687 = vmatprep.subr.bf16.mxu1 %v7300_v52 }
 0x4f9   :  { %5339 = vmatpush1.bf16.msra.mxu0 %v7233_v12 }
 0x4fa   :  { %5340 = vmatprep.subr.bf16.mxu0 %v7238_v7  ;;  %6688 = vmatpush3.bf16.msra.mxu1 %v7301_v63 }
 0x4fd   :  { %5341 = vmatpush1.bf16.msra.mxu0 %v7236_v18 }
 0x4fe   :  { %5342 = vmatprep.subr.bf16.mxu0 %v7241_v22  ;;  %v7302_v22 = vld [vmem:[%s9413_s11 + $0x70] sm:$0xff]  }
 0x4ff   :  { %6689 = vmatprep.subr.bf16.mxu1 %v7302_v22 }
 0x501   :  { %5343 = vmatpush1.bf16.msra.mxu0 %v7239_v26 }
 0x502   :  { %5353 = vmatprep.subr.bf16.mxu0 %v7244_v9  ;;  %v7303_v9 = vld [vmem:[%s9413_s11 + $0x30] sm:$0xff]  }
 0x503   :  { %6690 = vmatpush3.bf16.msra.mxu1 %v7303_v9 }
 0x504   :  { %5345 = vmatmul.mubr.bf16.vlgmr.msra.gmra.mrb[64].mxu0 %v9050_v20  ;;  %v7254_v20 = vld [vmem:[%s9411_s9 + $0x4e0] ss:$12 sps:$4 sm:$0xff]  }
 0x505   :  { %5354 = vmatpush1.bf16.msra.mxu0 %v7242_v27  ;;  %5385 = vmatprep.mubr.bf16.mxu0 %v9061_v31  ;;  %v7260_v31 = vld [vmem:[%s9411_s9 + $0x510] ss:$12 sps:$4 sm:$0xff]  }
 0x506   :  { %5355 = vmatprep.subr.bf16.mxu0 %v7247_v28 }
 0x509   :  { %5356 = vmatpush1.bf16.msra.mxu0 %v7245_v5 }
 0x50a   :  { %5357 = vmatprep.subr.bf16.mxu0 %v7250_v29  ;;  %v7304_v29 = vld [vmem:[%s9413_s11 + $0x78] sm:$0xff]  }
 0x50b   :  { %6691 = vmatprep.subr.bf16.mxu1 %v7304_v29 }
 0x50d   :  { %5358 = vmatpush1.bf16.msra.mxu0 %v7248_v49 }
 0x50e   :  { %5359 = vmatprep.subr.bf16.mxu0 %v7253_v13  ;;  %v7305_v13 = vld [vmem:[%s9413_s11 + $0x38] sm:$0xff]  }
 0x50f   :  { %6692 = vmatpush3.bf16.msra.mxu1 %v7305_v13 }
 0x510   :  { %6836 = vmatprep.subr.bf16.mxu1 %v7338_v15 }
 0x511   :  { %5360 = vmatpush1.bf16.msra.mxu0 %v7251_v35 }
 0x512   :  { %5361 = vmatprep.subr.bf16.mxu0 %v7256_v19 }
 0x515   :  { %5362 = vmatpush1.bf16.msra.mxu0 %v7254_v20 }
 0x516   :  { %5363 = vmatprep.subr.bf16.mxu0 %v7259_v25 }
 0x519   :  { %5364 = vmatpush1.bf16.msra.mxu0 %v7257_v21 }
 0x51a   :  { %5365 = vmatprep.subr.bf16.mxu0 %v7262_v24 }
 0x51d   :  { %5366 = vmatpush1.bf16.msra.mxu0 %v7260_v31  ;;  %v4194_v31 = vrot.slane %v4189_v6, %v8218_v30  ;;  %v7307_v30 = vld [vmem:[%s9413_s11 + $0x88] sm:$0xff]  }
 0x51e   :  { %5367 = vmatprep.subr.bf16.mxu0 %v7265_v36  ;;  %v4198_v36 = vrot.slane %v4189_v6, %v8229_v33  ;;  %v7308_v33 = vld [vmem:[%s9413_s11 + $0x90] sm:$0xff]  }
 0x521   :  { %5368 = vmatpush1.bf16.msra.mxu0 %v7263_v39 }
 0x522   :  { %5369 = vmatprep.subr.bf16.mxu0 %v7268_v0 }
 0x525   :  { %5370 = vmatpush1.bf16.msra.mxu0 %v7266_v40 }
 0x526   :  { %5371 = vmatprep.subr.bf16.mxu0 %v7271_v41 }
 0x529   :  { %5372 = vmatpush1.bf16.msra.mxu0 %v7269_v58 }
 0x52a   :  { %5373 = vmatprep.subr.bf16.mxu0 %v7274_v37 }
 0x52d   :  { %5374 = vmatpush1.bf16.msra.mxu0 %v7272_v43 }
 0x52e   :  { %5375 = vmatprep.subr.bf16.mxu0 %v7277_v44 }
 0x531   :  { %5376 = vmatpush1.bf16.msra.mxu0 %v7275_v45 }
 0x532   :  { %5377 = vmatprep.subr.bf16.mxu0 %v7280_v46  ;;  %v7306_v46 = vld [vmem:[%s9413_s11 + $0x80] sm:$0xff]  }
 0x535   :  { %5378 = vmatpush1.bf16.msra.mxu0 %v7278_v47 }
 0x536   :  { %5379 = vmatprep.subr.bf16.mxu0 %v7283_v48  ;;  %v7309_v48 = vld [vmem:[%s9413_s11 + $0x98] sm:$0xff]  }
 0x539   :  { %5380 = vmatpush1.bf16.msra.mxu0 %v7281_v50  ;;  %v7310_v50 = vld [vmem:[%s9413_s11 + $0xa0] sm:$0xff]  }
 0x53a   :  { %5381 = vmatprep.subr.bf16.mxu0 %v7286_v51  ;;  %v7311_v51 = vld [vmem:[%s9413_s11 + $0xa8] sm:$0xff]  }
 0x53d   :  { %5382 = vmatpush1.bf16.msra.mxu0 %v7284_v53  ;;  %v7312_v53 = vld [vmem:[%s9413_s11 + $0xb0] sm:$0xff]  }
 0x53e   :  { %5383 = vmatprep.subr.bf16.mxu0 %v7289_v54  ;;  %v7313_v54 = vld [vmem:[%s9413_s11 + $0xb8] sm:$0xff]   ;;  %s7314_s11 = scalar_lea.vmem %s5847_s28, 32 }
 0x53f   :  { %p7315_p0 = scmp.ne.s32.totalorder %s5847_s28, %s7314_s11  ;;  %p7320_p2 = scmp.lt.s32.totalorder %s7314_s11, %s7314_s11 }
 0x541   :  { %5384 = vmatpush1.bf16.msra.mxu0 %v7287_v34  ;;  %p7321_p3 = por %p7320_p2, %p7319_p1 }
 0x543   :  { %p7322_p4 = pnand %p7321_p3, %p7315_p0 }
 0x544   :  { %5386 = vmatmul.mubr.bf16.vlgmr.msra.gmra.mrb[64].mxu0 %v9158_v3 }
 0x557   :  { %v6605_v1 = vpop.f32.mrb[80].mxu1 }
 0x558   :  { %v6606_v2 = vpop.f32.mrb[81].mxu1 }
 0x559   :  { %v6607_v3 = vadd.f32 %v6606_v2, %v6605_v1  ;;  %v6608_v4 = vpop.f32.mrb[82].mxu1 }
 0x55a   :  { %v6609_v42 = vpop.f32.mrb[83].mxu1 }
 0x55b   :  { %v5429_v17 = vadd.f32 %v6607_v3, %v4202_v14 }
 0x577   :  { %v6627_v16 = vpop.f32.mrb[84].mxu1 }
 0x578   :  { %v6628_v10 = vpop.f32.mrb[85].mxu1 }
 0x579   :  { %v6629_v11 = vadd.f32 %v6628_v10, %v6627_v16  ;;  %v6630_v12 = vpop.f32.mrb[86].mxu1 }
 0x57a   :  { %v6631_v7 = vpop.f32.mrb[87].mxu1 }
 0x57b   :  { %v5469_v18 = vadd.f32 %v6629_v11, %v5429_v17 }
 0x597   :  { %v6649_v26 = vpop.f32.mrb[88].mxu1 }
 0x598   :  { %v6650_v27 = vpop.f32.mrb[89].mxu1 }
 0x599   :  { %v6651_v28 = vadd.f32 %v6650_v27, %v6649_v26  ;;  %v6652_v32 = vpop.f32.mrb[90].mxu1 }
 0x59a   :  { %v6653_v5 = vpop.f32.mrb[91].mxu1 }
 0x59b   :  { %v5509_v49 = vadd.f32 %v6651_v28, %v5469_v18 }
 0x5b8   :  { %v6671_v35 = vpop.f32.mrb[92].mxu1 }
 0x5b9   :  { %v6672_v19 = vpop.f32.mrb[93].mxu1 }
 0x5ba   :  { %v6673_v20 = vadd.f32 %v6672_v19, %v6671_v35  ;;  %v6674_v25 = vpop.f32.mrb[94].mxu1 }
 0x5bb   :  { %v6675_v21 = vpop.f32.mrb[95].mxu1 }
 0x5bc   :  { %v5549_v24 = vadd.f32 %v6673_v20, %v5509_v49 }
 0x5be   :  { %v5556_v34 = vmax.f32 %v5549_v24, 0.0 }
 0x5c0   :  { %v5559_v55 = vpack.c.bf16 %v5556_v34, %v5556_v34 }
 0x617   :  { %v5387_v39 = vpop.f32.mrb[64].mxu0 }
 0x618   :  { %v6888_v0 = vadd.f32 %v5387_v39, %v4194_v31  ;;  %v5389_v40 = vpop.f32.mrb[65].mxu0 }
 0x619   :  { %v6889_v41 = vadd.f32 %v5389_v40, %v4198_v36  ;;  %v5391_v58 = vpop.f32.mrb[66].mxu0 }
 0x61a   :  { %v5554_v37 = vmax.f32 %v6888_v0, 0.0  ;;  %v5392_v43 = vpop.f32.mrb[67].mxu0 }
 0x61b   :  { %v5555_v44 = vmax.f32 %v6889_v41, 0.0 }
 0x61c   :  { %v5557_v47 = vpack.c.bf16 %v5554_v37, %v5554_v37 }
 0x61d   :  { %v5558_v45 = vpack.c.bf16 %v5555_v44, %v5555_v44 }
 0x61f   :  { %5791 = vmatprep.mubr.bf16.mxu1 %v5558_v45 }
 0x620   :  { %5792 = vmatmul.mubr.bf16.vlgmr.msra.gmra.mrb[96].mxu1 %v5557_v47 }
 0x621   :  { %6837 = vmatpush3.bf16.msra.mxu1 %v7306_v46  ;;  %6852 = vmatprep.mubr.msk.bf16.mxu1 %vm7339_vm1, %v7338_v15 }
 0x622   :  { %6838 = vmatprep.subr.bf16.mxu1 %v7338_v15 }
 0x625   :  { %6839 = vmatpush3.bf16.msra.mxu1 %v7307_v30 }
 0x626   :  { %6840 = vmatprep.subr.bf16.mxu1 %v7338_v15 }
 0x629   :  { %6841 = vmatpush3.bf16.msra.mxu1 %v7308_v33 }
 0x62a   :  { %6842 = vmatprep.subr.bf16.mxu1 %v7338_v15 }
 0x62d   :  { %6843 = vmatpush3.bf16.msra.mxu1 %v7309_v48 }
 0x62e   :  { %6844 = vmatprep.subr.bf16.mxu1 %v7338_v15 }
 0x631   :  { %6845 = vmatpush3.bf16.msra.mxu1 %v7310_v50 }
 0x632   :  { %6846 = vmatprep.subr.bf16.mxu1 %v7338_v15 }
 0x635   :  { %6847 = vmatpush3.bf16.msra.mxu1 %v7311_v51 }
 0x636   :  { %6848 = vmatprep.subr.bf16.mxu1 %v7338_v15 }
 0x639   :  { %6849 = vmatpush3.bf16.msra.mxu1 %v7312_v53 }
 0x63a   :  { %6850 = vmatprep.subr.bf16.mxu1 %v7338_v15 }
 0x63d   :  { %6851 = vmatpush3.bf16.msra.mxu1 %v7313_v54 }
 0x640   :  { %6853 = vmatmul.mubr.bf16.vlgmr.msra.gmra.mrb[100].mxu1 %v5559_v55 }
 0x6f3   :  { %v6693_v56 = vpop.f32.mrb[96].mxu1 }
 0x6f4   :  { %v6694_v57 = vpop.f32.mrb[97].mxu1 }
 0x6f5   :  { %v6695_v59 = vadd.f32 %v6694_v57, %v6693_v56  ;;  %v6696_v60 = vpop.f32.mrb[98].mxu1 }
 0x6f6   :  { %v6697_v38 = vpop.f32.mrb[99].mxu1 }
 0x6f7   :  { %v5794_v23 = vadd.f32 %v6695_v59, %v6404_v8 }
 0x713   :  { %v5833_v61 = vpop.f32.mrb[100].mxu1 }
 0x714   :  { %v5834_v62 = vadd.f32 %v5833_v61, %v5794_v23  ;;  %v6854_v52 = vpop.f32.mrb[101].mxu1 }
 0x715   :  { %v5836_v15 = vpop.f32.mrb[102].mxu1 }
 0x716   :  { %5839 = vst [vmem:[#allocation3] sm:$0x3] %v5834_v62  ;;  %v6855_v63 = vpop.f32.mrb[103].mxu1 }
 0x717   :  { %7325 = shalt.err (!%p7322_p4)
}
 0x718   :  { %s7326_s12 = scalar_lea.hbm %s9415_s13, 32 }
 0x719   :  { %p7327_p5 = scmp.ne.s32.totalorder %s9415_s13, %s7326_s12  ;;  %p7330_p6 = scmp.lt.u32.totalorder %s7326_s12, %s9415_s13 }
 0x71b   :  { %p7332_p7 = pnand %p7330_p6, %p7327_p5 }
 0x71d   :  { %7335 = shalt.err (!%p7332_p7)
}
 0x71e   :  { %5849 = dma.vmem_to_hbm [thread:$0]  %s5847_s28, 32, %s9415_s13, [#allocation4]  }
 0x71f   :  { %7336 = dma.done.wait [#allocation4], 32  }
 0x720   :  { %7337 = vsyncadd [#allocation4], 4294967264 }
 0x721   :  { %5853 = vsyncpa [#allocation4], 1 }

</bundles_post_ra>
